<compile_context>
chip_gen: v7x
topology: tpu7x:2x2x1
jax: 0.10.0
libtpu: 0.0.40
codegen_flags: <defaults>
</compile_context>

<pallas_src>
import jax
import jax.numpy as jnp
from jax import lax
from jax.experimental import pallas as pl
from jax.experimental.pallas import tpu as pltpu


def _round_up(x, m):
    return (x + m - 1) // m * m


def make_lstm_kernel(T, BB, Hp):
    Gp = 4 * Hp

    def cell(pre, h, c, whh):
        # pre: (BB, Gp) f32 = precomputed x @ W_ih + b; only the recurrent matmul is done here.
        gates = pre + jnp.dot(h.astype(jnp.bfloat16), whh,
                              preferred_element_type=jnp.float32)   # (BB, Gp) f32
        i = jax.nn.sigmoid(gates[:, 0 * Hp:1 * Hp])
        f = jax.nn.sigmoid(gates[:, 1 * Hp:2 * Hp])
        g = jnp.tanh(gates[:, 2 * Hp:3 * Hp])
        o = jax.nn.sigmoid(gates[:, 3 * Hp:4 * Hp])
        c_new = f * c + i * g
        h_new = o * jnp.tanh(c_new)
        return h_new, c_new

    def kernel(len_ref, xg0_ref, whh0_ref, wih1_ref, whh1_ref, b1_ref,
               out_ref, hseq0, xg1):
        lengths = len_ref[...]                      # (BB, 1) int32 valid lengths
        whh0 = whh0_ref[...]                        # (Hp, Gp) bf16
        whh1 = whh1_ref[...]                        # (Hp, Gp) bf16
        zeros = jnp.zeros((BB, Hp), jnp.float32)

        # ---------------- layer 0: recurrence only (input gates precomputed in wrapper) -----
        def l0_step(t, carry):
            h, c = carry
            h_new, c_new = cell(xg0_ref[t], h, c, whh0)
            valid = t < lengths                     # (BB, 1): freeze padded steps
            h = jnp.where(valid, h_new, h)
            c = jnp.where(valid, c_new, c)
            row = pl.multiple_of(t * BB, BB)
            hseq0[pl.ds(row, BB), :] = h            # stash layer-0 output for layer 1
            return h, c

        lax.fori_loop(0, T, l0_step, (zeros, zeros), unroll=True)

        # ---------- layer-1 input gates: one batched (T*BB, Hp) @ (Hp, Gp) MXU matmul -------
        xg1[...] = (jnp.dot(hseq0[...].astype(jnp.bfloat16), wih1_ref[...],
                            preferred_element_type=jnp.float32)
                    + b1_ref[...])

        # ---------------- layer 1: recurrence only ------------------------------------------
        def l1_step(t, carry):
            h, c = carry
            row = pl.multiple_of(t * BB, BB)
            h_new, c_new = cell(xg1[pl.ds(row, BB), :], h, c, whh1)
            valid = t < lengths
            return jnp.where(valid, h_new, h), jnp.where(valid, c_new, c)

        h1, _ = lax.fori_loop(0, T, l1_step, (zeros, zeros), unroll=True)
        out_ref[...] = h1                           # (BB, Hp) lane-dense final hidden

    return kernel


def lstm_w2v_forward(text, text_len, params):
    """text: (B, T) int32 token ids; text_len: (B,) int32 valid lengths."""
    emb = params["embedding"]                       # (V, E)
    B, T = text.shape
    H = params["whh0"].shape[0]                     # whh0 stored pre-transposed as (H, 4H)
    Hp = _round_up(H, 128)                          # lane-dense hidden
    Gp = 4 * Hp
    BB = min(128, _round_up(B, 8))                  # batch rows per grid step (sublane multiple)
    Bp = _round_up(B, BB)

    def pad_gate_cols(w):                           # (in, 4H) -> (in, 4*Hp), gate k at k*Hp
        return jnp.concatenate(
            [jnp.pad(w[:, k * H:(k + 1) * H], ((0, 0), (0, Hp - H))) for k in range(4)],
            axis=1)

    def pad_rows(w):                                # (H, .) -> (Hp, .)
        return jnp.pad(w, ((0, Hp - H), (0, 0)))

    wih0_p = pad_gate_cols(params["wih0"])                                   # (E, Gp) f32
    b0_p = pad_gate_cols(params["b0"])                                       # (1, Gp) f32
    whh0_p = pad_rows(pad_gate_cols(params["whh0"])).astype(jnp.bfloat16)    # (Hp, Gp)
    wih1_p = pad_rows(pad_gate_cols(params["wih1"])).astype(jnp.bfloat16)    # (Hp, Gp)
    whh1_p = pad_rows(pad_gate_cols(params["whh1"])).astype(jnp.bfloat16)    # (Hp, Gp)
    b1_p = pad_gate_cols(params["b1"]).astype(jnp.float32)                   # (1, Gp)

    # Embedding gather + hoisted layer-0 input-gate matmul: one big (T*B, E) @ (E, 4Hp).
    x = jnp.take(emb, text, axis=0).astype(jnp.float32)        # (B, T, E)
    x = jnp.transpose(x, (1, 0, 2))                            # (T, B, E) time-major
    xg0 = jnp.einsum("tbe,eg->tbg", x, wih0_p) + b0_p          # (T, B, Gp), bias folded in
    xg0 = jnp.pad(xg0, ((0, 0), (0, Bp - B), (0, 0)))          # pad batch to sublane multiple

    lengths = jnp.pad(text_len.astype(jnp.int32), (0, Bp - B)).reshape(Bp, 1)

    kernel = make_lstm_kernel(T, BB, Hp)
    nb = Bp // BB
    h_last = pl.pallas_call(
        kernel,
        out_shape=jax.ShapeDtypeStruct((Bp, Hp), jnp.float32),
        grid_spec=pltpu.PrefetchScalarGridSpec(
            num_scalar_prefetch=0,
            grid=(nb,),
            in_specs=[
                pl.BlockSpec((BB, 1), lambda b: (b, 0)),            # lengths
                pl.BlockSpec((T, BB, Gp), lambda b: (0, b, 0)),     # precomputed layer-0 gates
                pl.BlockSpec((Hp, Gp), lambda b: (0, 0)),           # whh0 (bf16)
                pl.BlockSpec((Hp, Gp), lambda b: (0, 0)),           # wih1 (bf16)
                pl.BlockSpec((Hp, Gp), lambda b: (0, 0)),           # whh1 (bf16)
                pl.BlockSpec((1, Gp), lambda b: (0, 0)),            # b1
            ],
            out_specs=pl.BlockSpec((BB, Hp), lambda b: (b, 0)),
            scratch_shapes=[
                # TODO(synk): at production T*B*H these scratches should be bf16 / time-chunked
                # or streamed from HBM with make_async_copy to fit v7x's 64 MiB VMEM.
                pltpu.VMEM((T * BB, Hp), jnp.float32),   # layer-0 hidden sequence
                pltpu.VMEM((T * BB, Gp), jnp.float32),   # layer-1 input-gate preactivations
            ],
        ),
        compiler_params=pltpu.CompilerParams(
            dimension_semantics=("parallel",),
            vmem_limit_bytes=32 * 1024 * 1024,
        ),
    )(lengths, xg0, whh0_p, wih1_p, whh1_p, b1_p)

    # Final classifier: trivial (B, H) @ (H, 1) + sigmoid kept in plain JAX (lane-sparse matmul).
    feats = h_last[:B, :H] @ params["fcw"] + params["fcb"]
    return jax.nn.sigmoid(feats)


def init_params(key, vocab_num, embedding_length, dimension):
    """Deterministic synthetic parameters matching the PyTorch module's shapes."""
    E, H = embedding_length, dimension
    keys = jax.random.split(key, 12)
    k = 1.0 / jnp.sqrt(H)
    u = lambda kk, shape: jax.random.uniform(kk, shape, jnp.float32, -k, k)
    params = dict(
        embedding=jax.random.normal(keys[0], (vocab_num, E), jnp.float32),
        # layer 0: weight_ih (4H, E), weight_hh (4H, H) — stored pre-transposed as (in, 4H)
        wih0=u(keys[1], (E, 4 * H)),
        whh0=u(keys[2], (H, 4 * H)),
        b0=(u(keys[3], (1, 4 * H)) + u(keys[4], (1, 4 * H))),   # b_ih + b_hh folded
        # layer 1: weight_ih (4H, H), weight_hh (4H, H)
        wih1=u(keys[5], (H, 4 * H)),
        whh1=u(keys[6], (H, 4 * H)),
        b1=(u(keys[7], (1, 4 * H)) + u(keys[8], (1, 4 * H))),
        # fc: Linear(H, 1)
        fcw=u(keys[9], (H, 1)),
        fcb=u(keys[10], (1, 1)),
    )
    return params


if __name__ == "__main__":
    # small shapes consistent with the module: LSTM input_size is hard-coded to 300 in the
    # PyTorch code, so embedding_length = 300; hidden dimension = 32; 2 layers.
    B, T = 2, 8
    VOCAB = 50
    EMB = 300
    HIDDEN = 32

    key = jax.random.PRNGKey(0)
    pkey, tkey = jax.random.split(key)
    params = init_params(pkey, VOCAB, EMB, HIDDEN)

    text = jax.random.randint(tkey, (B, T), 0, VOCAB, dtype=jnp.int32)
    text_len = jnp.array([T, 5], dtype=jnp.int32)   # variable lengths (pack_padded semantics)

    out = jax.jit(lstm_w2v_forward)(text, text_len, params)
    out = jax.block_until_ready(out)
    assert out.shape == (B, 1) and out.dtype == jnp.float32
    print("KERNEL_OK")
</pallas_src>

<mosaic_0001>
module attributes {stable_mosaic.version = 11 : i64} {
  func.func @kernel(%arg0: i32, %arg1: memref<8x1xi32, #tpu.memory_space<vmem>>, %arg2: memref<8x8x512xf32, #tpu.memory_space<vmem>>, %arg3: memref<128x512xbf16, #tpu.memory_space<vmem>>, %arg4: memref<128x512xbf16, #tpu.memory_space<vmem>>, %arg5: memref<128x512xbf16, #tpu.memory_space<vmem>>, %arg6: memref<1x512xf32, #tpu.memory_space<vmem>>, %arg7: memref<8x128xf32, #tpu.memory_space<vmem>>, %arg8: memref<64x128xf32, #tpu.memory_space<vmem>>, %arg9: memref<64x512xf32, #tpu.memory_space<vmem>>) attributes {dimension_semantics = [#tpu.dimension_semantics<parallel>], iteration_bounds = array<i64: 1>, scalar_prefetch = 0 : i64, scratch_operands = 2 : i64, tpu.core_type = #tpu.core_type<tc>, window_params = [{transform_indices = @transform_0, window_bounds = array<i64: 8, 1>}, {transform_indices = @transform_1, window_bounds = array<i64: 8, 8, 512>}, {pipeline_mode = #tpu.pipeline_mode<synchronous>, transform_indices = @transform_2, window_bounds = array<i64: 128, 512>}, {pipeline_mode = #tpu.pipeline_mode<synchronous>, transform_indices = @transform_3, window_bounds = array<i64: 128, 512>}, {pipeline_mode = #tpu.pipeline_mode<synchronous>, transform_indices = @transform_4, window_bounds = array<i64: 128, 512>}, {pipeline_mode = #tpu.pipeline_mode<synchronous>, transform_indices = @transform_5, window_bounds = array<i64: 1, 512>}, {transform_indices = @transform_6, window_bounds = array<i64: 8, 128>}]} {
    %c0 = arith.constant 0 : index
    %c0_0 = arith.constant 0 : index
    %0 = vector.load %arg1[%c0, %c0_0] : memref<8x1xi32, #tpu.memory_space<vmem>>, vector<8x1xi32>
    %c0_1 = arith.constant 0 : index
    %c0_2 = arith.constant 0 : index
    %1 = vector.load %arg3[%c0_1, %c0_2] : memref<128x512xbf16, #tpu.memory_space<vmem>>, vector<128x512xbf16>
    %c0_3 = arith.constant 0 : index
    %c0_4 = arith.constant 0 : index
    %2 = vector.load %arg5[%c0_3, %c0_4] : memref<128x512xbf16, #tpu.memory_space<vmem>>, vector<128x512xbf16>
    %cst = arith.constant 0.000000e+00 : f32
    %3 = vector.broadcast %cst : f32 to vector<8x128xf32>
    %c0_i32 = arith.constant 0 : i32
    %4 = arith.index_cast %c0_i32 : i32 to index
    %c0_5 = arith.constant 0 : index
    %c0_6 = arith.constant 0 : index
    %5 = vector.load %arg2[%4, %c0_5, %c0_6] : memref<8x8x512xf32, #tpu.memory_space<vmem>>, vector<1x8x512xf32>
    %6 = vector.shape_cast %5 : vector<1x8x512xf32> to vector<8x512xf32>
    %7 = arith.truncf %3 : vector<8x128xf32> to vector<8x128xbf16>
    %cst_7 = arith.constant dense<0.000000e+00> : vector<8x512xf32>
    %8 = tpu.matmul %7, %1, %cst_7 {dimension_numbers = #tpu.dot_dimension_numbers<[1], [0], [0], [1], [0, 0, 1, 1], [], []>} : vector<8x128xbf16>, vector<128x512xbf16>, vector<8x512xf32> -> vector<8x512xf32>
    %9 = arith.addf %6, %8 : vector<8x512xf32>
    %10 = vector.extract_strided_slice %9 {offsets = [0, 0], sizes = [8, 128], strides = [1, 1]} : vector<8x512xf32> to vector<8x128xf32>
    %11 = arith.negf %10 : vector<8x128xf32>
    %12 = math.exp %11 : vector<8x128xf32>
    %cst_8 = arith.constant 1.000000e+00 : f32
    %13 = vector.broadcast %cst_8 : f32 to vector<8x128xf32>
    %14 = arith.addf %13, %12 : vector<8x128xf32>
    %15 = arith.divf %13, %14 : vector<8x128xf32>
    %16 = vector.extract_strided_slice %9 {offsets = [0, 128], sizes = [8, 128], strides = [1, 1]} : vector<8x512xf32> to vector<8x128xf32>
    %17 = arith.negf %16 : vector<8x128xf32>
    %18 = math.exp %17 : vector<8x128xf32>
    %cst_9 = arith.constant 1.000000e+00 : f32
    %19 = vector.broadcast %cst_9 : f32 to vector<8x128xf32>
    %20 = arith.addf %19, %18 : vector<8x128xf32>
    %21 = arith.divf %19, %20 : vector<8x128xf32>
    %22 = vector.extract_strided_slice %9 {offsets = [0, 256], sizes = [8, 128], strides = [1, 1]} : vector<8x512xf32> to vector<8x128xf32>
    %23 = math.tanh %22 : vector<8x128xf32>
    %24 = vector.extract_strided_slice %9 {offsets = [0, 384], sizes = [8, 128], strides = [1, 1]} : vector<8x512xf32> to vector<8x128xf32>
    %25 = arith.negf %24 : vector<8x128xf32>
    %26 = math.exp %25 : vector<8x128xf32>
    %cst_10 = arith.constant 1.000000e+00 : f32
    %27 = vector.broadcast %cst_10 : f32 to vector<8x128xf32>
    %28 = arith.addf %27, %26 : vector<8x128xf32>
    %29 = arith.divf %27, %28 : vector<8x128xf32>
    %30 = arith.mulf %21, %3 : vector<8x128xf32>
    %31 = arith.mulf %15, %23 : vector<8x128xf32>
    %32 = arith.addf %30, %31 : vector<8x128xf32>
    %33 = math.tanh %32 : vector<8x128xf32>
    %34 = arith.mulf %29, %33 : vector<8x128xf32>
    %35 = vector.broadcast %c0_i32 : i32 to vector<8x1xi32>
    %36 = arith.cmpi slt, %35, %0 : vector<8x1xi32>
    %37 = vector.shape_cast %36 : vector<8x1xi1> to vector<8x1xi1>
    %38 = vector.broadcast %37 : vector<8x1xi1> to vector<8x128xi1>
    %39 = arith.select %38, %34, %3 : vector<8x128xi1>, vector<8x128xf32>
    %40 = vector.shape_cast %36 : vector<8x1xi1> to vector<8x1xi1>
    %41 = vector.broadcast %40 : vector<8x1xi1> to vector<8x128xi1>
    %42 = arith.select %41, %32, %3 : vector<8x128xi1>, vector<8x128xf32>
    %c8_i32 = arith.constant 8 : i32
    %43 = arith.muli %c0_i32, %c8_i32 : i32
    %44 = tpu.assume_multiple %43, 8 : i32
    %45 = arith.index_cast %44 : i32 to index
    %c0_11 = arith.constant 0 : index
    %46 = vector.load %arg8[%45, %c0_11] : memref<64x128xf32, #tpu.memory_space<vmem>>, vector<8x128xf32>
    tpu.vector_store %arg8[%45, %c0_11], %39 {strides = array<i32>} : memref<64x128xf32, #tpu.memory_space<vmem>>, vector<8x128xf32>,
    %c1_i32 = arith.constant 1 : i32
    %47 = arith.index_cast %c1_i32 : i32 to index
    %c0_12 = arith.constant 0 : index
    %c0_13 = arith.constant 0 : index
    %48 = vector.load %arg2[%47, %c0_12, %c0_13] : memref<8x8x512xf32, #tpu.memory_space<vmem>>, vector<1x8x512xf32>
    %49 = vector.shape_cast %48 : vector<1x8x512xf32> to vector<8x512xf32>
    %50 = arith.truncf %39 : vector<8x128xf32> to vector<8x128xbf16>
    %cst_14 = arith.constant dense<0.000000e+00> : vector<8x512xf32>
    %51 = tpu.matmul %50, %1, %cst_14 {dimension_numbers = #tpu.dot_dimension_numbers<[1], [0], [0], [1], [0, 0, 1, 1], [], []>} : vector<8x128xbf16>, vector<128x512xbf16>, vector<8x512xf32> -> vector<8x512xf32>
    %52 = arith.addf %49, %51 : vector<8x512xf32>
    %53 = vector.extract_strided_slice %52 {offsets = [0, 0], sizes = [8, 128], strides = [1, 1]} : vector<8x512xf32> to vector<8x128xf32>
    %54 = arith.negf %53 : vector<8x128xf32>
    %55 = math.exp %54 : vector<8x128xf32>
    %cst_15 = arith.constant 1.000000e+00 : f32
    %56 = vector.broadcast %cst_15 : f32 to vector<8x128xf32>
    %57 = arith.addf %56, %55 : vector<8x128xf32>
    %58 = arith.divf %56, %57 : vector<8x128xf32>
    %59 = vector.extract_strided_slice %52 {offsets = [0, 128], sizes = [8, 128], strides = [1, 1]} : vector<8x512xf32> to vector<8x128xf32>
    %60 = arith.negf %59 : vector<8x128xf32>
    %61 = math.exp %60 : vector<8x128xf32>
    %cst_16 = arith.constant 1.000000e+00 : f32
    %62 = vector.broadcast %cst_16 : f32 to vector<8x128xf32>
    %63 = arith.addf %62, %61 : vector<8x128xf32>
    %64 = arith.divf %62, %63 : vector<8x128xf32>
    %65 = vector.extract_strided_slice %52 {offsets = [0, 256], sizes = [8, 128], strides = [1, 1]} : vector<8x512xf32> to vector<8x128xf32>
    %66 = math.tanh %65 : vector<8x128xf32>
    %67 = vector.extract_strided_slice %52 {offsets = [0, 384], sizes = [8, 128], strides = [1, 1]} : vector<8x512xf32> to vector<8x128xf32>
    %68 = arith.negf %67 : vector<8x128xf32>
    %69 = math.exp %68 : vector<8x128xf32>
    %cst_17 = arith.constant 1.000000e+00 : f32
    %70 = vector.broadcast %cst_17 : f32 to vector<8x128xf32>
    %71 = arith.addf %70, %69 : vector<8x128xf32>
    %72 = arith.divf %70, %71 : vector<8x128xf32>
    %73 = arith.mulf %64, %42 : vector<8x128xf32>
    %74 = arith.mulf %58, %66 : vector<8x128xf32>
    %75 = arith.addf %73, %74 : vector<8x128xf32>
    %76 = math.tanh %75 : vector<8x128xf32>
    %77 = arith.mulf %72, %76 : vector<8x128xf32>
    %78 = vector.broadcast %c1_i32 : i32 to vector<8x1xi32>
    %79 = arith.cmpi slt, %78, %0 : vector<8x1xi32>
    %80 = vector.shape_cast %79 : vector<8x1xi1> to vector<8x1xi1>
    %81 = vector.broadcast %80 : vector<8x1xi1> to vector<8x128xi1>
    %82 = arith.select %81, %77, %39 : vector<8x128xi1>, vector<8x128xf32>
    %83 = vector.shape_cast %79 : vector<8x1xi1> to vector<8x1xi1>
    %84 = vector.broadcast %83 : vector<8x1xi1> to vector<8x128xi1>
    %85 = arith.select %84, %75, %42 : vector<8x128xi1>, vector<8x128xf32>
    %c8_i32_18 = arith.constant 8 : i32
    %86 = arith.muli %c1_i32, %c8_i32_18 : i32
    %87 = tpu.assume_multiple %86, 8 : i32
    %88 = arith.index_cast %87 : i32 to index
    %c0_19 = arith.constant 0 : index
    %89 = vector.load %arg8[%88, %c0_19] : memref<64x128xf32, #tpu.memory_space<vmem>>, vector<8x128xf32>
    tpu.vector_store %arg8[%88, %c0_19], %82 {strides = array<i32>} : memref<64x128xf32, #tpu.memory_space<vmem>>, vector<8x128xf32>,
    %c2_i32 = arith.constant 2 : i32
    %90 = arith.index_cast %c2_i32 : i32 to index
    %c0_20 = arith.constant 0 : index
    %c0_21 = arith.constant 0 : index
    %91 = vector.load %arg2[%90, %c0_20, %c0_21] : memref<8x8x512xf32, #tpu.memory_space<vmem>>, vector<1x8x512xf32>
    %92 = vector.shape_cast %91 : vector<1x8x512xf32> to vector<8x512xf32>
    %93 = arith.truncf %82 : vector<8x128xf32> to vector<8x128xbf16>
    %cst_22 = arith.constant dense<0.000000e+00> : vector<8x512xf32>
    %94 = tpu.matmul %93, %1, %cst_22 {dimension_numbers = #tpu.dot_dimension_numbers<[1], [0], [0], [1], [0, 0, 1, 1], [], []>} : vector<8x128xbf16>, vector<128x512xbf16>, vector<8x512xf32> -> vector<8x512xf32>
    %95 = arith.addf %92, %94 : vector<8x512xf32>
    %96 = vector.extract_strided_slice %95 {offsets = [0, 0], sizes = [8, 128], strides = [1, 1]} : vector<8x512xf32> to vector<8x128xf32>
    %97 = arith.negf %96 : vector<8x128xf32>
    %98 = math.exp %97 : vector<8x128xf32>
    %cst_23 = arith.constant 1.000000e+00 : f32
    %99 = vector.broadcast %cst_23 : f32 to vector<8x128xf32>
    %100 = arith.addf %99, %98 : vector<8x128xf32>
    %101 = arith.divf %99, %100 : vector<8x128xf32>
    %102 = vector.extract_strided_slice %95 {offsets = [0, 128], sizes = [8, 128], strides = [1, 1]} : vector<8x512xf32> to vector<8x128xf32>
    %103 = arith.negf %102 : vector<8x128xf32>
    %104 = math.exp %103 : vector<8x128xf32>
    %cst_24 = arith.constant 1.000000e+00 : f32
    %105 = vector.broadcast %cst_24 : f32 to vector<8x128xf32>
    %106 = arith.addf %105, %104 : vector<8x128xf32>
    %107 = arith.divf %105, %106 : vector<8x128xf32>
    %108 = vector.extract_strided_slice %95 {offsets = [0, 256], sizes = [8, 128], strides = [1, 1]} : vector<8x512xf32> to vector<8x128xf32>
    %109 = math.tanh %108 : vector<8x128xf32>
    %110 = vector.extract_strided_slice %95 {offsets = [0, 384], sizes = [8, 128], strides = [1, 1]} : vector<8x512xf32> to vector<8x128xf32>
    %111 = arith.negf %110 : vector<8x128xf32>
    %112 = math.exp %111 : vector<8x128xf32>
    %cst_25 = arith.constant 1.000000e+00 : f32
    %113 = vector.broadcast %cst_25 : f32 to vector<8x128xf32>
    %114 = arith.addf %113, %112 : vector<8x128xf32>
    %115 = arith.divf %113, %114 : vector<8x128xf32>
    %116 = arith.mulf %107, %85 : vector<8x128xf32>
    %117 = arith.mulf %101, %109 : vector<8x128xf32>
    %118 = arith.addf %116, %117 : vector<8x128xf32>
    %119 = math.tanh %118 : vector<8x128xf32>
    %120 = arith.mulf %115, %119 : vector<8x128xf32>
    %121 = vector.broadcast %c2_i32 : i32 to vector<8x1xi32>
    %122 = arith.cmpi slt, %121, %0 : vector<8x1xi32>
    %123 = vector.shape_cast %122 : vector<8x1xi1> to vector<8x1xi1>
    %124 = vector.broadcast %123 : vector<8x1xi1> to vector<8x128xi1>
    %125 = arith.select %124, %120, %82 : vector<8x128xi1>, vector<8x128xf32>
    %126 = vector.shape_cast %122 : vector<8x1xi1> to vector<8x1xi1>
    %127 = vector.broadcast %126 : vector<8x1xi1> to vector<8x128xi1>
    %128 = arith.select %127, %118, %85 : vector<8x128xi1>, vector<8x128xf32>
    %c8_i32_26 = arith.constant 8 : i32
    %129 = arith.muli %c2_i32, %c8_i32_26 : i32
    %130 = tpu.assume_multiple %129, 8 : i32
    %131 = arith.index_cast %130 : i32 to index
    %c0_27 = arith.constant 0 : index
    %132 = vector.load %arg8[%131, %c0_27] : memref<64x128xf32, #tpu.memory_space<vmem>>, vector<8x128xf32>
    tpu.vector_store %arg8[%131, %c0_27], %125 {strides = array<i32>} : memref<64x128xf32, #tpu.memory_space<vmem>>, vector<8x128xf32>,
    %c3_i32 = arith.constant 3 : i32
    %133 = arith.index_cast %c3_i32 : i32 to index
    %c0_28 = arith.constant 0 : index
    %c0_29 = arith.constant 0 : index
    %134 = vector.load %arg2[%133, %c0_28, %c0_29] : memref<8x8x512xf32, #tpu.memory_space<vmem>>, vector<1x8x512xf32>
    %135 = vector.shape_cast %134 : vector<1x8x512xf32> to vector<8x512xf32>
    %136 = arith.truncf %125 : vector<8x128xf32> to vector<8x128xbf16>
    %cst_30 = arith.constant dense<0.000000e+00> : vector<8x512xf32>
    %137 = tpu.matmul %136, %1, %cst_30 {dimension_numbers = #tpu.dot_dimension_numbers<[1], [0], [0], [1], [0, 0, 1, 1], [], []>} : vector<8x128xbf16>, vector<128x512xbf16>, vector<8x512xf32> -> vector<8x512xf32>
    %138 = arith.addf %135, %137 : vector<8x512xf32>
    %139 = vector.extract_strided_slice %138 {offsets = [0, 0], sizes = [8, 128], strides = [1, 1]} : vector<8x512xf32> to vector<8x128xf32>
    %140 = arith.negf %139 : vector<8x128xf32>
    %141 = math.exp %140 : vector<8x128xf32>
    %cst_31 = arith.constant 1.000000e+00 : f32
    %142 = vector.broadcast %cst_31 : f32 to vector<8x128xf32>
    %143 = arith.addf %142, %141 : vector<8x128xf32>
    %144 = arith.divf %142, %143 : vector<8x128xf32>
    %145 = vector.extract_strided_slice %138 {offsets = [0, 128], sizes = [8, 128], strides = [1, 1]} : vector<8x512xf32> to vector<8x128xf32>
    %146 = arith.negf %145 : vector<8x128xf32>
    %147 = math.exp %146 : vector<8x128xf32>
    %cst_32 = arith.constant 1.000000e+00 : f32
    %148 = vector.broadcast %cst_32 : f32 to vector<8x128xf32>
    %149 = arith.addf %148, %147 : vector<8x128xf32>
    %150 = arith.divf %148, %149 : vector<8x128xf32>
    %151 = vector.extract_strided_slice %138 {offsets = [0, 256], sizes = [8, 128], strides = [1, 1]} : vector<8x512xf32> to vector<8x128xf32>
    %152 = math.tanh %151 : vector<8x128xf32>
    %153 = vector.extract_strided_slice %138 {offsets = [0, 384], sizes = [8, 128], strides = [1, 1]} : vector<8x512xf32> to vector<8x128xf32>
    %154 = arith.negf %153 : vector<8x128xf32>
    %155 = math.exp %154 : vector<8x128xf32>
    %cst_33 = arith.constant 1.000000e+00 : f32
    %156 = vector.broadcast %cst_33 : f32 to vector<8x128xf32>
    %157 = arith.addf %156, %155 : vector<8x128xf32>
    %158 = arith.divf %156, %157 : vector<8x128xf32>
    %159 = arith.mulf %150, %128 : vector<8x128xf32>
    %160 = arith.mulf %144, %152 : vector<8x128xf32>
    %161 = arith.addf %159, %160 : vector<8x128xf32>
    %162 = math.tanh %161 : vector<8x128xf32>
    %163 = arith.mulf %158, %162 : vector<8x128xf32>
    %164 = vector.broadcast %c3_i32 : i32 to vector<8x1xi32>
    %165 = arith.cmpi slt, %164, %0 : vector<8x1xi32>
    %166 = vector.shape_cast %165 : vector<8x1xi1> to vector<8x1xi1>
    %167 = vector.broadcast %166 : vector<8x1xi1> to vector<8x128xi1>
    %168 = arith.select %167, %163, %125 : vector<8x128xi1>, vector<8x128xf32>
    %169 = vector.shape_cast %165 : vector<8x1xi1> to vector<8x1xi1>
    %170 = vector.broadcast %169 : vector<8x1xi1> to vector<8x128xi1>
    %171 = arith.select %170, %161, %128 : vector<8x128xi1>, vector<8x128xf32>
    %c8_i32_34 = arith.constant 8 : i32
    %172 = arith.muli %c3_i32, %c8_i32_34 : i32
    %173 = tpu.assume_multiple %172, 8 : i32
    %174 = arith.index_cast %173 : i32 to index
    %c0_35 = arith.constant 0 : index
    %175 = vector.load %arg8[%174, %c0_35] : memref<64x128xf32, #tpu.memory_space<vmem>>, vector<8x128xf32>
    tpu.vector_store %arg8[%174, %c0_35], %168 {strides = array<i32>} : memref<64x128xf32, #tpu.memory_space<vmem>>, vector<8x128xf32>,
    %c4_i32 = arith.constant 4 : i32
    %176 = arith.index_cast %c4_i32 : i32 to index
    %c0_36 = arith.constant 0 : index
    %c0_37 = arith.constant 0 : index
    %177 = vector.load %arg2[%176, %c0_36, %c0_37] : memref<8x8x512xf32, #tpu.memory_space<vmem>>, vector<1x8x512xf32>
    %178 = vector.shape_cast %177 : vector<1x8x512xf32> to vector<8x512xf32>
    %179 = arith.truncf %168 : vector<8x128xf32> to vector<8x128xbf16>
    %cst_38 = arith.constant dense<0.000000e+00> : vector<8x512xf32>
    %180 = tpu.matmul %179, %1, %cst_38 {dimension_numbers = #tpu.dot_dimension_numbers<[1], [0], [0], [1], [0, 0, 1, 1], [], []>} : vector<8x128xbf16>, vector<128x512xbf16>, vector<8x512xf32> -> vector<8x512xf32>
    %181 = arith.addf %178, %180 : vector<8x512xf32>
    %182 = vector.extract_strided_slice %181 {offsets = [0, 0], sizes = [8, 128], strides = [1, 1]} : vector<8x512xf32> to vector<8x128xf32>
    %183 = arith.negf %182 : vector<8x128xf32>
    %184 = math.exp %183 : vector<8x128xf32>
    %cst_39 = arith.constant 1.000000e+00 : f32
    %185 = vector.broadcast %cst_39 : f32 to vector<8x128xf32>
    %186 = arith.addf %185, %184 : vector<8x128xf32>
    %187 = arith.divf %185, %186 : vector<8x128xf32>
    %188 = vector.extract_strided_slice %181 {offsets = [0, 128], sizes = [8, 128], strides = [1, 1]} : vector<8x512xf32> to vector<8x128xf32>
    %189 = arith.negf %188 : vector<8x128xf32>
    %190 = math.exp %189 : vector<8x128xf32>
    %cst_40 = arith.constant 1.000000e+00 : f32
    %191 = vector.broadcast %cst_40 : f32 to vector<8x128xf32>
    %192 = arith.addf %191, %190 : vector<8x128xf32>
    %193 = arith.divf %191, %192 : vector<8x128xf32>
    %194 = vector.extract_strided_slice %181 {offsets = [0, 256], sizes = [8, 128], strides = [1, 1]} : vector<8x512xf32> to vector<8x128xf32>
    %195 = math.tanh %194 : vector<8x128xf32>
    %196 = vector.extract_strided_slice %181 {offsets = [0, 384], sizes = [8, 128], strides = [1, 1]} : vector<8x512xf32> to vector<8x128xf32>
    %197 = arith.negf %196 : vector<8x128xf32>
    %198 = math.exp %197 : vector<8x128xf32>
    %cst_41 = arith.constant 1.000000e+00 : f32
    %199 = vector.broadcast %cst_41 : f32 to vector<8x128xf32>
    %200 = arith.addf %199, %198 : vector<8x128xf32>
    %201 = arith.divf %199, %200 : vector<8x128xf32>
    %202 = arith.mulf %193, %171 : vector<8x128xf32>
    %203 = arith.mulf %187, %195 : vector<8x128xf32>
    %204 = arith.addf %202, %203 : vector<8x128xf32>
    %205 = math.tanh %204 : vector<8x128xf32>
    %206 = arith.mulf %201, %205 : vector<8x128xf32>
    %207 = vector.broadcast %c4_i32 : i32 to vector<8x1xi32>
    %208 = arith.cmpi slt, %207, %0 : vector<8x1xi32>
    %209 = vector.shape_cast %208 : vector<8x1xi1> to vector<8x1xi1>
    %210 = vector.broadcast %209 : vector<8x1xi1> to vector<8x128xi1>
    %211 = arith.select %210, %206, %168 : vector<8x128xi1>, vector<8x128xf32>
    %212 = vector.shape_cast %208 : vector<8x1xi1> to vector<8x1xi1>
    %213 = vector.broadcast %212 : vector<8x1xi1> to vector<8x128xi1>
    %214 = arith.select %213, %204, %171 : vector<8x128xi1>, vector<8x128xf32>
    %c8_i32_42 = arith.constant 8 : i32
    %215 = arith.muli %c4_i32, %c8_i32_42 : i32
    %216 = tpu.assume_multiple %215, 8 : i32
    %217 = arith.index_cast %216 : i32 to index
    %c0_43 = arith.constant 0 : index
    %218 = vector.load %arg8[%217, %c0_43] : memref<64x128xf32, #tpu.memory_space<vmem>>, vector<8x128xf32>
    tpu.vector_store %arg8[%217, %c0_43], %211 {strides = array<i32>} : memref<64x128xf32, #tpu.memory_space<vmem>>, vector<8x128xf32>,
    %c5_i32 = arith.constant 5 : i32
    %219 = arith.index_cast %c5_i32 : i32 to index
    %c0_44 = arith.constant 0 : index
    %c0_45 = arith.constant 0 : index
    %220 = vector.load %arg2[%219, %c0_44, %c0_45] : memref<8x8x512xf32, #tpu.memory_space<vmem>>, vector<1x8x512xf32>
    %221 = vector.shape_cast %220 : vector<1x8x512xf32> to vector<8x512xf32>
    %222 = arith.truncf %211 : vector<8x128xf32> to vector<8x128xbf16>
    %cst_46 = arith.constant dense<0.000000e+00> : vector<8x512xf32>
    %223 = tpu.matmul %222, %1, %cst_46 {dimension_numbers = #tpu.dot_dimension_numbers<[1], [0], [0], [1], [0, 0, 1, 1], [], []>} : vector<8x128xbf16>, vector<128x512xbf16>, vector<8x512xf32> -> vector<8x512xf32>
    %224 = arith.addf %221, %223 : vector<8x512xf32>
    %225 = vector.extract_strided_slice %224 {offsets = [0, 0], sizes = [8, 128], strides = [1, 1]} : vector<8x512xf32> to vector<8x128xf32>
    %226 = arith.negf %225 : vector<8x128xf32>
    %227 = math.exp %226 : vector<8x128xf32>
    %cst_47 = arith.constant 1.000000e+00 : f32
    %228 = vector.broadcast %cst_47 : f32 to vector<8x128xf32>
    %229 = arith.addf %228, %227 : vector<8x128xf32>
    %230 = arith.divf %228, %229 : vector<8x128xf32>
    %231 = vector.extract_strided_slice %224 {offsets = [0, 128], sizes = [8, 128], strides = [1, 1]} : vector<8x512xf32> to vector<8x128xf32>
    %232 = arith.negf %231 : vector<8x128xf32>
    %233 = math.exp %232 : vector<8x128xf32>
    %cst_48 = arith.constant 1.000000e+00 : f32
    %234 = vector.broadcast %cst_48 : f32 to vector<8x128xf32>
    %235 = arith.addf %234, %233 : vector<8x128xf32>
    %236 = arith.divf %234, %235 : vector<8x128xf32>
    %237 = vector.extract_strided_slice %224 {offsets = [0, 256], sizes = [8, 128], strides = [1, 1]} : vector<8x512xf32> to vector<8x128xf32>
    %238 = math.tanh %237 : vector<8x128xf32>
    %239 = vector.extract_strided_slice %224 {offsets = [0, 384], sizes = [8, 128], strides = [1, 1]} : vector<8x512xf32> to vector<8x128xf32>
    %240 = arith.negf %239 : vector<8x128xf32>
    %241 = math.exp %240 : vector<8x128xf32>
    %cst_49 = arith.constant 1.000000e+00 : f32
    %242 = vector.broadcast %cst_49 : f32 to vector<8x128xf32>
    %243 = arith.addf %242, %241 : vector<8x128xf32>
    %244 = arith.divf %242, %243 : vector<8x128xf32>
    %245 = arith.mulf %236, %214 : vector<8x128xf32>
    %246 = arith.mulf %230, %238 : vector<8x128xf32>
    %247 = arith.addf %245, %246 : vector<8x128xf32>
    %248 = math.tanh %247 : vector<8x128xf32>
    %249 = arith.mulf %244, %248 : vector<8x128xf32>
    %250 = vector.broadcast %c5_i32 : i32 to vector<8x1xi32>
    %251 = arith.cmpi slt, %250, %0 : vector<8x1xi32>
    %252 = vector.shape_cast %251 : vector<8x1xi1> to vector<8x1xi1>
    %253 = vector.broadcast %252 : vector<8x1xi1> to vector<8x128xi1>
    %254 = arith.select %253, %249, %211 : vector<8x128xi1>, vector<8x128xf32>
    %255 = vector.shape_cast %251 : vector<8x1xi1> to vector<8x1xi1>
    %256 = vector.broadcast %255 : vector<8x1xi1> to vector<8x128xi1>
    %257 = arith.select %256, %247, %214 : vector<8x128xi1>, vector<8x128xf32>
    %c8_i32_50 = arith.constant 8 : i32
    %258 = arith.muli %c5_i32, %c8_i32_50 : i32
    %259 = tpu.assume_multiple %258, 8 : i32
    %260 = arith.index_cast %259 : i32 to index
    %c0_51 = arith.constant 0 : index
    %261 = vector.load %arg8[%260, %c0_51] : memref<64x128xf32, #tpu.memory_space<vmem>>, vector<8x128xf32>
    tpu.vector_store %arg8[%260, %c0_51], %254 {strides = array<i32>} : memref<64x128xf32, #tpu.memory_space<vmem>>, vector<8x128xf32>,
    %c6_i32 = arith.constant 6 : i32
    %262 = arith.index_cast %c6_i32 : i32 to index
    %c0_52 = arith.constant 0 : index
    %c0_53 = arith.constant 0 : index
    %263 = vector.load %arg2[%262, %c0_52, %c0_53] : memref<8x8x512xf32, #tpu.memory_space<vmem>>, vector<1x8x512xf32>
    %264 = vector.shape_cast %263 : vector<1x8x512xf32> to vector<8x512xf32>
    %265 = arith.truncf %254 : vector<8x128xf32> to vector<8x128xbf16>
    %cst_54 = arith.constant dense<0.000000e+00> : vector<8x512xf32>
    %266 = tpu.matmul %265, %1, %cst_54 {dimension_numbers = #tpu.dot_dimension_numbers<[1], [0], [0], [1], [0, 0, 1, 1], [], []>} : vector<8x128xbf16>, vector<128x512xbf16>, vector<8x512xf32> -> vector<8x512xf32>
    %267 = arith.addf %264, %266 : vector<8x512xf32>
    %268 = vector.extract_strided_slice %267 {offsets = [0, 0], sizes = [8, 128], strides = [1, 1]} : vector<8x512xf32> to vector<8x128xf32>
    %269 = arith.negf %268 : vector<8x128xf32>
    %270 = math.exp %269 : vector<8x128xf32>
    %cst_55 = arith.constant 1.000000e+00 : f32
    %271 = vector.broadcast %cst_55 : f32 to vector<8x128xf32>
    %272 = arith.addf %271, %270 : vector<8x128xf32>
    %273 = arith.divf %271, %272 : vector<8x128xf32>
    %274 = vector.extract_strided_slice %267 {offsets = [0, 128], sizes = [8, 128], strides = [1, 1]} : vector<8x512xf32> to vector<8x128xf32>
    %275 = arith.negf %274 : vector<8x128xf32>
    %276 = math.exp %275 : vector<8x128xf32>
    %cst_56 = arith.constant 1.000000e+00 : f32
    %277 = vector.broadcast %cst_56 : f32 to vector<8x128xf32>
    %278 = arith.addf %277, %276 : vector<8x128xf32>
    %279 = arith.divf %277, %278 : vector<8x128xf32>
    %280 = vector.extract_strided_slice %267 {offsets = [0, 256], sizes = [8, 128], strides = [1, 1]} : vector<8x512xf32> to vector<8x128xf32>
    %281 = math.tanh %280 : vector<8x128xf32>
    %282 = vector.extract_strided_slice %267 {offsets = [0, 384], sizes = [8, 128], strides = [1, 1]} : vector<8x512xf32> to vector<8x128xf32>
    %283 = arith.negf %282 : vector<8x128xf32>
    %284 = math.exp %283 : vector<8x128xf32>
    %cst_57 = arith.constant 1.000000e+00 : f32
    %285 = vector.broadcast %cst_57 : f32 to vector<8x128xf32>
    %286 = arith.addf %285, %284 : vector<8x128xf32>
    %287 = arith.divf %285, %286 : vector<8x128xf32>
    %288 = arith.mulf %279, %257 : vector<8x128xf32>
    %289 = arith.mulf %273, %281 : vector<8x128xf32>
    %290 = arith.addf %288, %289 : vector<8x128xf32>
    %291 = math.tanh %290 : vector<8x128xf32>
    %292 = arith.mulf %287, %291 : vector<8x128xf32>
    %293 = vector.broadcast %c6_i32 : i32 to vector<8x1xi32>
    %294 = arith.cmpi slt, %293, %0 : vector<8x1xi32>
    %295 = vector.shape_cast %294 : vector<8x1xi1> to vector<8x1xi1>
    %296 = vector.broadcast %295 : vector<8x1xi1> to vector<8x128xi1>
    %297 = arith.select %296, %292, %254 : vector<8x128xi1>, vector<8x128xf32>
    %298 = vector.shape_cast %294 : vector<8x1xi1> to vector<8x1xi1>
    %299 = vector.broadcast %298 : vector<8x1xi1> to vector<8x128xi1>
    %300 = arith.select %299, %290, %257 : vector<8x128xi1>, vector<8x128xf32>
    %c8_i32_58 = arith.constant 8 : i32
    %301 = arith.muli %c6_i32, %c8_i32_58 : i32
    %302 = tpu.assume_multiple %301, 8 : i32
    %303 = arith.index_cast %302 : i32 to index
    %c0_59 = arith.constant 0 : index
    %304 = vector.load %arg8[%303, %c0_59] : memref<64x128xf32, #tpu.memory_space<vmem>>, vector<8x128xf32>
    tpu.vector_store %arg8[%303, %c0_59], %297 {strides = array<i32>} : memref<64x128xf32, #tpu.memory_space<vmem>>, vector<8x128xf32>,
    %c7_i32 = arith.constant 7 : i32
    %305 = arith.index_cast %c7_i32 : i32 to index
    %c0_60 = arith.constant 0 : index
    %c0_61 = arith.constant 0 : index
    %306 = vector.load %arg2[%305, %c0_60, %c0_61] : memref<8x8x512xf32, #tpu.memory_space<vmem>>, vector<1x8x512xf32>
    %307 = vector.shape_cast %306 : vector<1x8x512xf32> to vector<8x512xf32>
    %308 = arith.truncf %297 : vector<8x128xf32> to vector<8x128xbf16>
    %cst_62 = arith.constant dense<0.000000e+00> : vector<8x512xf32>
    %309 = tpu.matmul %308, %1, %cst_62 {dimension_numbers = #tpu.dot_dimension_numbers<[1], [0], [0], [1], [0, 0, 1, 1], [], []>} : vector<8x128xbf16>, vector<128x512xbf16>, vector<8x512xf32> -> vector<8x512xf32>
    %310 = arith.addf %307, %309 : vector<8x512xf32>
    %311 = vector.extract_strided_slice %310 {offsets = [0, 0], sizes = [8, 128], strides = [1, 1]} : vector<8x512xf32> to vector<8x128xf32>
    %312 = arith.negf %311 : vector<8x128xf32>
    %313 = math.exp %312 : vector<8x128xf32>
    %cst_63 = arith.constant 1.000000e+00 : f32
    %314 = vector.broadcast %cst_63 : f32 to vector<8x128xf32>
    %315 = arith.addf %314, %313 : vector<8x128xf32>
    %316 = arith.divf %314, %315 : vector<8x128xf32>
    %317 = vector.extract_strided_slice %310 {offsets = [0, 128], sizes = [8, 128], strides = [1, 1]} : vector<8x512xf32> to vector<8x128xf32>
    %318 = arith.negf %317 : vector<8x128xf32>
    %319 = math.exp %318 : vector<8x128xf32>
    %cst_64 = arith.constant 1.000000e+00 : f32
    %320 = vector.broadcast %cst_64 : f32 to vector<8x128xf32>
    %321 = arith.addf %320, %319 : vector<8x128xf32>
    %322 = arith.divf %320, %321 : vector<8x128xf32>
    %323 = vector.extract_strided_slice %310 {offsets = [0, 256], sizes = [8, 128], strides = [1, 1]} : vector<8x512xf32> to vector<8x128xf32>
    %324 = math.tanh %323 : vector<8x128xf32>
    %325 = vector.extract_strided_slice %310 {offsets = [0, 384], sizes = [8, 128], strides = [1, 1]} : vector<8x512xf32> to vector<8x128xf32>
    %326 = arith.negf %325 : vector<8x128xf32>
    %327 = math.exp %326 : vector<8x128xf32>
    %cst_65 = arith.constant 1.000000e+00 : f32
    %328 = vector.broadcast %cst_65 : f32 to vector<8x128xf32>
    %329 = arith.addf %328, %327 : vector<8x128xf32>
    %330 = arith.divf %328, %329 : vector<8x128xf32>
    %331 = arith.mulf %322, %300 : vector<8x128xf32>
    %332 = arith.mulf %316, %324 : vector<8x128xf32>
    %333 = arith.addf %331, %332 : vector<8x128xf32>
    %334 = math.tanh %333 : vector<8x128xf32>
    %335 = arith.mulf %330, %334 : vector<8x128xf32>
    %336 = vector.broadcast %c7_i32 : i32 to vector<8x1xi32>
    %337 = arith.cmpi slt, %336, %0 : vector<8x1xi32>
    %338 = vector.shape_cast %337 : vector<8x1xi1> to vector<8x1xi1>
    %339 = vector.broadcast %338 : vector<8x1xi1> to vector<8x128xi1>
    %340 = arith.select %339, %335, %297 : vector<8x128xi1>, vector<8x128xf32>
    %341 = vector.shape_cast %337 : vector<8x1xi1> to vector<8x1xi1>
    %342 = vector.broadcast %341 : vector<8x1xi1> to vector<8x128xi1>
    %343 = arith.select %342, %333, %300 : vector<8x128xi1>, vector<8x128xf32>
    %c8_i32_66 = arith.constant 8 : i32
    %344 = arith.muli %c7_i32, %c8_i32_66 : i32
    %345 = tpu.assume_multiple %344, 8 : i32
    %346 = arith.index_cast %345 : i32 to index
    %c0_67 = arith.constant 0 : index
    %347 = vector.load %arg8[%346, %c0_67] : memref<64x128xf32, #tpu.memory_space<vmem>>, vector<8x128xf32>
    tpu.vector_store %arg8[%346, %c0_67], %340 {strides = array<i32>} : memref<64x128xf32, #tpu.memory_space<vmem>>, vector<8x128xf32>,
    %c8_i32_68 = arith.constant 8 : i32
    %c0_69 = arith.constant 0 : index
    %c0_70 = arith.constant 0 : index
    %348 = vector.load %arg8[%c0_69, %c0_70] : memref<64x128xf32, #tpu.memory_space<vmem>>, vector<64x128xf32>
    %349 = arith.truncf %348 : vector<64x128xf32> to vector<64x128xbf16>
    %c0_71 = arith.constant 0 : index
    %c0_72 = arith.constant 0 : index
    %350 = vector.load %arg4[%c0_71, %c0_72] : memref<128x512xbf16, #tpu.memory_space<vmem>>, vector<128x512xbf16>
    %cst_73 = arith.constant dense<0.000000e+00> : vector<64x512xf32>
    %351 = tpu.matmul %349, %350, %cst_73 {dimension_numbers = #tpu.dot_dimension_numbers<[1], [0], [0], [1], [0, 0, 1, 1], [], []>} : vector<64x128xbf16>, vector<128x512xbf16>, vector<64x512xf32> -> vector<64x512xf32>
    %c0_74 = arith.constant 0 : index
    %c0_75 = arith.constant 0 : index
    %352 = vector.load %arg6[%c0_74, %c0_75] : memref<1x512xf32, #tpu.memory_space<vmem>>, vector<1x512xf32>
    %353 = vector.broadcast %352 : vector<1x512xf32> to vector<64x512xf32>
    %354 = arith.addf %351, %353 : vector<64x512xf32>
    %c0_76 = arith.constant 0 : index
    %c0_77 = arith.constant 0 : index
    %355 = vector.load %arg9[%c0_76, %c0_77] : memref<64x512xf32, #tpu.memory_space<vmem>>, vector<64x512xf32>
    tpu.vector_store %arg9[%c0_76, %c0_77], %354 {strides = array<i32>} : memref<64x512xf32, #tpu.memory_space<vmem>>, vector<64x512xf32>,
    %c0_i32_78 = arith.constant 0 : i32
    %c8_i32_79 = arith.constant 8 : i32
    %356 = arith.muli %c0_i32_78, %c8_i32_79 : i32
    %357 = tpu.assume_multiple %356, 8 : i32
    %358 = arith.index_cast %357 : i32 to index
    %c0_80 = arith.constant 0 : index
    %359 = vector.load %arg9[%358, %c0_80] : memref<64x512xf32, #tpu.memory_space<vmem>>, vector<8x512xf32>
    %360 = arith.truncf %3 : vector<8x128xf32> to vector<8x128xbf16>
    %cst_81 = arith.constant dense<0.000000e+00> : vector<8x512xf32>
    %361 = tpu.matmul %360, %2, %cst_81 {dimension_numbers = #tpu.dot_dimension_numbers<[1], [0], [0], [1], [0, 0, 1, 1], [], []>} : vector<8x128xbf16>, vector<128x512xbf16>, vector<8x512xf32> -> vector<8x512xf32>
    %362 = arith.addf %359, %361 : vector<8x512xf32>
    %363 = vector.extract_strided_slice %362 {offsets = [0, 0], sizes = [8, 128], strides = [1, 1]} : vector<8x512xf32> to vector<8x128xf32>
    %364 = arith.negf %363 : vector<8x128xf32>
    %365 = math.exp %364 : vector<8x128xf32>
    %cst_82 = arith.constant 1.000000e+00 : f32
    %366 = vector.broadcast %cst_82 : f32 to vector<8x128xf32>
    %367 = arith.addf %366, %365 : vector<8x128xf32>
    %368 = arith.divf %366, %367 : vector<8x128xf32>
    %369 = vector.extract_strided_slice %362 {offsets = [0, 128], sizes = [8, 128], strides = [1, 1]} : vector<8x512xf32> to vector<8x128xf32>
    %370 = arith.negf %369 : vector<8x128xf32>
    %371 = math.exp %370 : vector<8x128xf32>
    %cst_83 = arith.constant 1.000000e+00 : f32
    %372 = vector.broadcast %cst_83 : f32 to vector<8x128xf32>
    %373 = arith.addf %372, %371 : vector<8x128xf32>
    %374 = arith.divf %372, %373 : vector<8x128xf32>
    %375 = vector.extract_strided_slice %362 {offsets = [0, 256], sizes = [8, 128], strides = [1, 1]} : vector<8x512xf32> to vector<8x128xf32>
    %376 = math.tanh %375 : vector<8x128xf32>
    %377 = vector.extract_strided_slice %362 {offsets = [0, 384], sizes = [8, 128], strides = [1, 1]} : vector<8x512xf32> to vector<8x128xf32>
    %378 = arith.negf %377 : vector<8x128xf32>
    %379 = math.exp %378 : vector<8x128xf32>
    %cst_84 = arith.constant 1.000000e+00 : f32
    %380 = vector.broadcast %cst_84 : f32 to vector<8x128xf32>
    %381 = arith.addf %380, %379 : vector<8x128xf32>
    %382 = arith.divf %380, %381 : vector<8x128xf32>
    %383 = arith.mulf %374, %3 : vector<8x128xf32>
    %384 = arith.mulf %368, %376 : vector<8x128xf32>
    %385 = arith.addf %383, %384 : vector<8x128xf32>
    %386 = math.tanh %385 : vector<8x128xf32>
    %387 = arith.mulf %382, %386 : vector<8x128xf32>
    %388 = vector.broadcast %c0_i32_78 : i32 to vector<8x1xi32>
    %389 = arith.cmpi slt, %388, %0 : vector<8x1xi32>
    %390 = vector.shape_cast %389 : vector<8x1xi1> to vector<8x1xi1>
    %391 = vector.broadcast %390 : vector<8x1xi1> to vector<8x128xi1>
    %392 = arith.select %391, %387, %3 : vector<8x128xi1>, vector<8x128xf32>
    %393 = vector.shape_cast %389 : vector<8x1xi1> to vector<8x1xi1>
    %394 = vector.broadcast %393 : vector<8x1xi1> to vector<8x128xi1>
    %395 = arith.select %394, %385, %3 : vector<8x128xi1>, vector<8x128xf32>
    %c1_i32_85 = arith.constant 1 : i32
    %c8_i32_86 = arith.constant 8 : i32
    %396 = arith.muli %c1_i32_85, %c8_i32_86 : i32
    %397 = tpu.assume_multiple %396, 8 : i32
    %398 = arith.index_cast %397 : i32 to index
    %c0_87 = arith.constant 0 : index
    %399 = vector.load %arg9[%398, %c0_87] : memref<64x512xf32, #tpu.memory_space<vmem>>, vector<8x512xf32>
    %400 = arith.truncf %392 : vector<8x128xf32> to vector<8x128xbf16>
    %cst_88 = arith.constant dense<0.000000e+00> : vector<8x512xf32>
    %401 = tpu.matmul %400, %2, %cst_88 {dimension_numbers = #tpu.dot_dimension_numbers<[1], [0], [0], [1], [0, 0, 1, 1], [], []>} : vector<8x128xbf16>, vector<128x512xbf16>, vector<8x512xf32> -> vector<8x512xf32>
    %402 = arith.addf %399, %401 : vector<8x512xf32>
    %403 = vector.extract_strided_slice %402 {offsets = [0, 0], sizes = [8, 128], strides = [1, 1]} : vector<8x512xf32> to vector<8x128xf32>
    %404 = arith.negf %403 : vector<8x128xf32>
    %405 = math.exp %404 : vector<8x128xf32>
    %cst_89 = arith.constant 1.000000e+00 : f32
    %406 = vector.broadcast %cst_89 : f32 to vector<8x128xf32>
    %407 = arith.addf %406, %405 : vector<8x128xf32>
    %408 = arith.divf %406, %407 : vector<8x128xf32>
    %409 = vector.extract_strided_slice %402 {offsets = [0, 128], sizes = [8, 128], strides = [1, 1]} : vector<8x512xf32> to vector<8x128xf32>
    %410 = arith.negf %409 : vector<8x128xf32>
    %411 = math.exp %410 : vector<8x128xf32>
    %cst_90 = arith.constant 1.000000e+00 : f32
    %412 = vector.broadcast %cst_90 : f32 to vector<8x128xf32>
    %413 = arith.addf %412, %411 : vector<8x128xf32>
    %414 = arith.divf %412, %413 : vector<8x128xf32>
    %415 = vector.extract_strided_slice %402 {offsets = [0, 256], sizes = [8, 128], strides = [1, 1]} : vector<8x512xf32> to vector<8x128xf32>
    %416 = math.tanh %415 : vector<8x128xf32>
    %417 = vector.extract_strided_slice %402 {offsets = [0, 384], sizes = [8, 128], strides = [1, 1]} : vector<8x512xf32> to vector<8x128xf32>
    %418 = arith.negf %417 : vector<8x128xf32>
    %419 = math.exp %418 : vector<8x128xf32>
    %cst_91 = arith.constant 1.000000e+00 : f32
    %420 = vector.broadcast %cst_91 : f32 to vector<8x128xf32>
    %421 = arith.addf %420, %419 : vector<8x128xf32>
    %422 = arith.divf %420, %421 : vector<8x128xf32>
    %423 = arith.mulf %414, %395 : vector<8x128xf32>
    %424 = arith.mulf %408, %416 : vector<8x128xf32>
    %425 = arith.addf %423, %424 : vector<8x128xf32>
    %426 = math.tanh %425 : vector<8x128xf32>
    %427 = arith.mulf %422, %426 : vector<8x128xf32>
    %428 = vector.broadcast %c1_i32_85 : i32 to vector<8x1xi32>
    %429 = arith.cmpi slt, %428, %0 : vector<8x1xi32>
    %430 = vector.shape_cast %429 : vector<8x1xi1> to vector<8x1xi1>
    %431 = vector.broadcast %430 : vector<8x1xi1> to vector<8x128xi1>
    %432 = arith.select %431, %427, %392 : vector<8x128xi1>, vector<8x128xf32>
    %433 = vector.shape_cast %429 : vector<8x1xi1> to vector<8x1xi1>
    %434 = vector.broadcast %433 : vector<8x1xi1> to vector<8x128xi1>
    %435 = arith.select %434, %425, %395 : vector<8x128xi1>, vector<8x128xf32>
    %c2_i32_92 = arith.constant 2 : i32
    %c8_i32_93 = arith.constant 8 : i32
    %436 = arith.muli %c2_i32_92, %c8_i32_93 : i32
    %437 = tpu.assume_multiple %436, 8 : i32
    %438 = arith.index_cast %437 : i32 to index
    %c0_94 = arith.constant 0 : index
    %439 = vector.load %arg9[%438, %c0_94] : memref<64x512xf32, #tpu.memory_space<vmem>>, vector<8x512xf32>
    %440 = arith.truncf %432 : vector<8x128xf32> to vector<8x128xbf16>
    %cst_95 = arith.constant dense<0.000000e+00> : vector<8x512xf32>
    %441 = tpu.matmul %440, %2, %cst_95 {dimension_numbers = #tpu.dot_dimension_numbers<[1], [0], [0], [1], [0, 0, 1, 1], [], []>} : vector<8x128xbf16>, vector<128x512xbf16>, vector<8x512xf32> -> vector<8x512xf32>
    %442 = arith.addf %439, %441 : vector<8x512xf32>
    %443 = vector.extract_strided_slice %442 {offsets = [0, 0], sizes = [8, 128], strides = [1, 1]} : vector<8x512xf32> to vector<8x128xf32>
    %444 = arith.negf %443 : vector<8x128xf32>
    %445 = math.exp %444 : vector<8x128xf32>
    %cst_96 = arith.constant 1.000000e+00 : f32
    %446 = vector.broadcast %cst_96 : f32 to vector<8x128xf32>
    %447 = arith.addf %446, %445 : vector<8x128xf32>
    %448 = arith.divf %446, %447 : vector<8x128xf32>
    %449 = vector.extract_strided_slice %442 {offsets = [0, 128], sizes = [8, 128], strides = [1, 1]} : vector<8x512xf32> to vector<8x128xf32>
    %450 = arith.negf %449 : vector<8x128xf32>
    %451 = math.exp %450 : vector<8x128xf32>
    %cst_97 = arith.constant 1.000000e+00 : f32
    %452 = vector.broadcast %cst_97 : f32 to vector<8x128xf32>
    %453 = arith.addf %452, %451 : vector<8x128xf32>
    %454 = arith.divf %452, %453 : vector<8x128xf32>
    %455 = vector.extract_strided_slice %442 {offsets = [0, 256], sizes = [8, 128], strides = [1, 1]} : vector<8x512xf32> to vector<8x128xf32>
    %456 = math.tanh %455 : vector<8x128xf32>
    %457 = vector.extract_strided_slice %442 {offsets = [0, 384], sizes = [8, 128], strides = [1, 1]} : vector<8x512xf32> to vector<8x128xf32>
    %458 = arith.negf %457 : vector<8x128xf32>
    %459 = math.exp %458 : vector<8x128xf32>
    %cst_98 = arith.constant 1.000000e+00 : f32
    %460 = vector.broadcast %cst_98 : f32 to vector<8x128xf32>
    %461 = arith.addf %460, %459 : vector<8x128xf32>
    %462 = arith.divf %460, %461 : vector<8x128xf32>
    %463 = arith.mulf %454, %435 : vector<8x128xf32>
    %464 = arith.mulf %448, %456 : vector<8x128xf32>
    %465 = arith.addf %463, %464 : vector<8x128xf32>
    %466 = math.tanh %465 : vector<8x128xf32>
    %467 = arith.mulf %462, %466 : vector<8x128xf32>
    %468 = vector.broadcast %c2_i32_92 : i32 to vector<8x1xi32>
    %469 = arith.cmpi slt, %468, %0 : vector<8x1xi32>
    %470 = vector.shape_cast %469 : vector<8x1xi1> to vector<8x1xi1>
    %471 = vector.broadcast %470 : vector<8x1xi1> to vector<8x128xi1>
    %472 = arith.select %471, %467, %432 : vector<8x128xi1>, vector<8x128xf32>
    %473 = vector.shape_cast %469 : vector<8x1xi1> to vector<8x1xi1>
    %474 = vector.broadcast %473 : vector<8x1xi1> to vector<8x128xi1>
    %475 = arith.select %474, %465, %435 : vector<8x128xi1>, vector<8x128xf32>
    %c3_i32_99 = arith.constant 3 : i32
    %c8_i32_100 = arith.constant 8 : i32
    %476 = arith.muli %c3_i32_99, %c8_i32_100 : i32
    %477 = tpu.assume_multiple %476, 8 : i32
    %478 = arith.index_cast %477 : i32 to index
    %c0_101 = arith.constant 0 : index
    %479 = vector.load %arg9[%478, %c0_101] : memref<64x512xf32, #tpu.memory_space<vmem>>, vector<8x512xf32>
    %480 = arith.truncf %472 : vector<8x128xf32> to vector<8x128xbf16>
    %cst_102 = arith.constant dense<0.000000e+00> : vector<8x512xf32>
    %481 = tpu.matmul %480, %2, %cst_102 {dimension_numbers = #tpu.dot_dimension_numbers<[1], [0], [0], [1], [0, 0, 1, 1], [], []>} : vector<8x128xbf16>, vector<128x512xbf16>, vector<8x512xf32> -> vector<8x512xf32>
    %482 = arith.addf %479, %481 : vector<8x512xf32>
    %483 = vector.extract_strided_slice %482 {offsets = [0, 0], sizes = [8, 128], strides = [1, 1]} : vector<8x512xf32> to vector<8x128xf32>
    %484 = arith.negf %483 : vector<8x128xf32>
    %485 = math.exp %484 : vector<8x128xf32>
    %cst_103 = arith.constant 1.000000e+00 : f32
    %486 = vector.broadcast %cst_103 : f32 to vector<8x128xf32>
    %487 = arith.addf %486, %485 : vector<8x128xf32>
    %488 = arith.divf %486, %487 : vector<8x128xf32>
    %489 = vector.extract_strided_slice %482 {offsets = [0, 128], sizes = [8, 128], strides = [1, 1]} : vector<8x512xf32> to vector<8x128xf32>
    %490 = arith.negf %489 : vector<8x128xf32>
    %491 = math.exp %490 : vector<8x128xf32>
    %cst_104 = arith.constant 1.000000e+00 : f32
    %492 = vector.broadcast %cst_104 : f32 to vector<8x128xf32>
    %493 = arith.addf %492, %491 : vector<8x128xf32>
    %494 = arith.divf %492, %493 : vector<8x128xf32>
    %495 = vector.extract_strided_slice %482 {offsets = [0, 256], sizes = [8, 128], strides = [1, 1]} : vector<8x512xf32> to vector<8x128xf32>
    %496 = math.tanh %495 : vector<8x128xf32>
    %497 = vector.extract_strided_slice %482 {offsets = [0, 384], sizes = [8, 128], strides = [1, 1]} : vector<8x512xf32> to vector<8x128xf32>
    %498 = arith.negf %497 : vector<8x128xf32>
    %499 = math.exp %498 : vector<8x128xf32>
    %cst_105 = arith.constant 1.000000e+00 : f32
    %500 = vector.broadcast %cst_105 : f32 to vector<8x128xf32>
    %501 = arith.addf %500, %499 : vector<8x128xf32>
    %502 = arith.divf %500, %501 : vector<8x128xf32>
    %503 = arith.mulf %494, %475 : vector<8x128xf32>
    %504 = arith.mulf %488, %496 : vector<8x128xf32>
    %505 = arith.addf %503, %504 : vector<8x128xf32>
    %506 = math.tanh %505 : vector<8x128xf32>
    %507 = arith.mulf %502, %506 : vector<8x128xf32>
    %508 = vector.broadcast %c3_i32_99 : i32 to vector<8x1xi32>
    %509 = arith.cmpi slt, %508, %0 : vector<8x1xi32>
    %510 = vector.shape_cast %509 : vector<8x1xi1> to vector<8x1xi1>
    %511 = vector.broadcast %510 : vector<8x1xi1> to vector<8x128xi1>
    %512 = arith.select %511, %507, %472 : vector<8x128xi1>, vector<8x128xf32>
    %513 = vector.shape_cast %509 : vector<8x1xi1> to vector<8x1xi1>
    %514 = vector.broadcast %513 : vector<8x1xi1> to vector<8x128xi1>
    %515 = arith.select %514, %505, %475 : vector<8x128xi1>, vector<8x128xf32>
    %c4_i32_106 = arith.constant 4 : i32
    %c8_i32_107 = arith.constant 8 : i32
    %516 = arith.muli %c4_i32_106, %c8_i32_107 : i32
    %517 = tpu.assume_multiple %516, 8 : i32
    %518 = arith.index_cast %517 : i32 to index
    %c0_108 = arith.constant 0 : index
    %519 = vector.load %arg9[%518, %c0_108] : memref<64x512xf32, #tpu.memory_space<vmem>>, vector<8x512xf32>
    %520 = arith.truncf %512 : vector<8x128xf32> to vector<8x128xbf16>
    %cst_109 = arith.constant dense<0.000000e+00> : vector<8x512xf32>
    %521 = tpu.matmul %520, %2, %cst_109 {dimension_numbers = #tpu.dot_dimension_numbers<[1], [0], [0], [1], [0, 0, 1, 1], [], []>} : vector<8x128xbf16>, vector<128x512xbf16>, vector<8x512xf32> -> vector<8x512xf32>
    %522 = arith.addf %519, %521 : vector<8x512xf32>
    %523 = vector.extract_strided_slice %522 {offsets = [0, 0], sizes = [8, 128], strides = [1, 1]} : vector<8x512xf32> to vector<8x128xf32>
    %524 = arith.negf %523 : vector<8x128xf32>
    %525 = math.exp %524 : vector<8x128xf32>
    %cst_110 = arith.constant 1.000000e+00 : f32
    %526 = vector.broadcast %cst_110 : f32 to vector<8x128xf32>
    %527 = arith.addf %526, %525 : vector<8x128xf32>
    %528 = arith.divf %526, %527 : vector<8x128xf32>
    %529 = vector.extract_strided_slice %522 {offsets = [0, 128], sizes = [8, 128], strides = [1, 1]} : vector<8x512xf32> to vector<8x128xf32>
    %530 = arith.negf %529 : vector<8x128xf32>
    %531 = math.exp %530 : vector<8x128xf32>
    %cst_111 = arith.constant 1.000000e+00 : f32
    %532 = vector.broadcast %cst_111 : f32 to vector<8x128xf32>
    %533 = arith.addf %532, %531 : vector<8x128xf32>
    %534 = arith.divf %532, %533 : vector<8x128xf32>
    %535 = vector.extract_strided_slice %522 {offsets = [0, 256], sizes = [8, 128], strides = [1, 1]} : vector<8x512xf32> to vector<8x128xf32>
    %536 = math.tanh %535 : vector<8x128xf32>
    %537 = vector.extract_strided_slice %522 {offsets = [0, 384], sizes = [8, 128], strides = [1, 1]} : vector<8x512xf32> to vector<8x128xf32>
    %538 = arith.negf %537 : vector<8x128xf32>
    %539 = math.exp %538 : vector<8x128xf32>
    %cst_112 = arith.constant 1.000000e+00 : f32
    %540 = vector.broadcast %cst_112 : f32 to vector<8x128xf32>
    %541 = arith.addf %540, %539 : vector<8x128xf32>
    %542 = arith.divf %540, %541 : vector<8x128xf32>
    %543 = arith.mulf %534, %515 : vector<8x128xf32>
    %544 = arith.mulf %528, %536 : vector<8x128xf32>
    %545 = arith.addf %543, %544 : vector<8x128xf32>
    %546 = math.tanh %545 : vector<8x128xf32>
    %547 = arith.mulf %542, %546 : vector<8x128xf32>
    %548 = vector.broadcast %c4_i32_106 : i32 to vector<8x1xi32>
    %549 = arith.cmpi slt, %548, %0 : vector<8x1xi32>
    %550 = vector.shape_cast %549 : vector<8x1xi1> to vector<8x1xi1>
    %551 = vector.broadcast %550 : vector<8x1xi1> to vector<8x128xi1>
    %552 = arith.select %551, %547, %512 : vector<8x128xi1>, vector<8x128xf32>
    %553 = vector.shape_cast %549 : vector<8x1xi1> to vector<8x1xi1>
    %554 = vector.broadcast %553 : vector<8x1xi1> to vector<8x128xi1>
    %555 = arith.select %554, %545, %515 : vector<8x128xi1>, vector<8x128xf32>
    %c5_i32_113 = arith.constant 5 : i32
    %c8_i32_114 = arith.constant 8 : i32
    %556 = arith.muli %c5_i32_113, %c8_i32_114 : i32
    %557 = tpu.assume_multiple %556, 8 : i32
    %558 = arith.index_cast %557 : i32 to index
    %c0_115 = arith.constant 0 : index
    %559 = vector.load %arg9[%558, %c0_115] : memref<64x512xf32, #tpu.memory_space<vmem>>, vector<8x512xf32>
    %560 = arith.truncf %552 : vector<8x128xf32> to vector<8x128xbf16>
    %cst_116 = arith.constant dense<0.000000e+00> : vector<8x512xf32>
    %561 = tpu.matmul %560, %2, %cst_116 {dimension_numbers = #tpu.dot_dimension_numbers<[1], [0], [0], [1], [0, 0, 1, 1], [], []>} : vector<8x128xbf16>, vector<128x512xbf16>, vector<8x512xf32> -> vector<8x512xf32>
    %562 = arith.addf %559, %561 : vector<8x512xf32>
    %563 = vector.extract_strided_slice %562 {offsets = [0, 0], sizes = [8, 128], strides = [1, 1]} : vector<8x512xf32> to vector<8x128xf32>
    %564 = arith.negf %563 : vector<8x128xf32>
    %565 = math.exp %564 : vector<8x128xf32>
    %cst_117 = arith.constant 1.000000e+00 : f32
    %566 = vector.broadcast %cst_117 : f32 to vector<8x128xf32>
    %567 = arith.addf %566, %565 : vector<8x128xf32>
    %568 = arith.divf %566, %567 : vector<8x128xf32>
    %569 = vector.extract_strided_slice %562 {offsets = [0, 128], sizes = [8, 128], strides = [1, 1]} : vector<8x512xf32> to vector<8x128xf32>
    %570 = arith.negf %569 : vector<8x128xf32>
    %571 = math.exp %570 : vector<8x128xf32>
    %cst_118 = arith.constant 1.000000e+00 : f32
    %572 = vector.broadcast %cst_118 : f32 to vector<8x128xf32>
    %573 = arith.addf %572, %571 : vector<8x128xf32>
    %574 = arith.divf %572, %573 : vector<8x128xf32>
    %575 = vector.extract_strided_slice %562 {offsets = [0, 256], sizes = [8, 128], strides = [1, 1]} : vector<8x512xf32> to vector<8x128xf32>
    %576 = math.tanh %575 : vector<8x128xf32>
    %577 = vector.extract_strided_slice %562 {offsets = [0, 384], sizes = [8, 128], strides = [1, 1]} : vector<8x512xf32> to vector<8x128xf32>
    %578 = arith.negf %577 : vector<8x128xf32>
    %579 = math.exp %578 : vector<8x128xf32>
    %cst_119 = arith.constant 1.000000e+00 : f32
    %580 = vector.broadcast %cst_119 : f32 to vector<8x128xf32>
    %581 = arith.addf %580, %579 : vector<8x128xf32>
    %582 = arith.divf %580, %581 : vector<8x128xf32>
    %583 = arith.mulf %574, %555 : vector<8x128xf32>
    %584 = arith.mulf %568, %576 : vector<8x128xf32>
    %585 = arith.addf %583, %584 : vector<8x128xf32>
    %586 = math.tanh %585 : vector<8x128xf32>
    %587 = arith.mulf %582, %586 : vector<8x128xf32>
    %588 = vector.broadcast %c5_i32_113 : i32 to vector<8x1xi32>
    %589 = arith.cmpi slt, %588, %0 : vector<8x1xi32>
    %590 = vector.shape_cast %589 : vector<8x1xi1> to vector<8x1xi1>
    %591 = vector.broadcast %590 : vector<8x1xi1> to vector<8x128xi1>
    %592 = arith.select %591, %587, %552 : vector<8x128xi1>, vector<8x128xf32>
    %593 = vector.shape_cast %589 : vector<8x1xi1> to vector<8x1xi1>
    %594 = vector.broadcast %593 : vector<8x1xi1> to vector<8x128xi1>
    %595 = arith.select %594, %585, %555 : vector<8x128xi1>, vector<8x128xf32>
    %c6_i32_120 = arith.constant 6 : i32
    %c8_i32_121 = arith.constant 8 : i32
    %596 = arith.muli %c6_i32_120, %c8_i32_121 : i32
    %597 = tpu.assume_multiple %596, 8 : i32
    %598 = arith.index_cast %597 : i32 to index
    %c0_122 = arith.constant 0 : index
    %599 = vector.load %arg9[%598, %c0_122] : memref<64x512xf32, #tpu.memory_space<vmem>>, vector<8x512xf32>
    %600 = arith.truncf %592 : vector<8x128xf32> to vector<8x128xbf16>
    %cst_123 = arith.constant dense<0.000000e+00> : vector<8x512xf32>
    %601 = tpu.matmul %600, %2, %cst_123 {dimension_numbers = #tpu.dot_dimension_numbers<[1], [0], [0], [1], [0, 0, 1, 1], [], []>} : vector<8x128xbf16>, vector<128x512xbf16>, vector<8x512xf32> -> vector<8x512xf32>
    %602 = arith.addf %599, %601 : vector<8x512xf32>
    %603 = vector.extract_strided_slice %602 {offsets = [0, 0], sizes = [8, 128], strides = [1, 1]} : vector<8x512xf32> to vector<8x128xf32>
    %604 = arith.negf %603 : vector<8x128xf32>
    %605 = math.exp %604 : vector<8x128xf32>
    %cst_124 = arith.constant 1.000000e+00 : f32
    %606 = vector.broadcast %cst_124 : f32 to vector<8x128xf32>
    %607 = arith.addf %606, %605 : vector<8x128xf32>
    %608 = arith.divf %606, %607 : vector<8x128xf32>
    %609 = vector.extract_strided_slice %602 {offsets = [0, 128], sizes = [8, 128], strides = [1, 1]} : vector<8x512xf32> to vector<8x128xf32>
    %610 = arith.negf %609 : vector<8x128xf32>
    %611 = math.exp %610 : vector<8x128xf32>
    %cst_125 = arith.constant 1.000000e+00 : f32
    %612 = vector.broadcast %cst_125 : f32 to vector<8x128xf32>
    %613 = arith.addf %612, %611 : vector<8x128xf32>
    %614 = arith.divf %612, %613 : vector<8x128xf32>
    %615 = vector.extract_strided_slice %602 {offsets = [0, 256], sizes = [8, 128], strides = [1, 1]} : vector<8x512xf32> to vector<8x128xf32>
    %616 = math.tanh %615 : vector<8x128xf32>
    %617 = vector.extract_strided_slice %602 {offsets = [0, 384], sizes = [8, 128], strides = [1, 1]} : vector<8x512xf32> to vector<8x128xf32>
    %618 = arith.negf %617 : vector<8x128xf32>
    %619 = math.exp %618 : vector<8x128xf32>
    %cst_126 = arith.constant 1.000000e+00 : f32
    %620 = vector.broadcast %cst_126 : f32 to vector<8x128xf32>
    %621 = arith.addf %620, %619 : vector<8x128xf32>
    %622 = arith.divf %620, %621 : vector<8x128xf32>
    %623 = arith.mulf %614, %595 : vector<8x128xf32>
    %624 = arith.mulf %608, %616 : vector<8x128xf32>
    %625 = arith.addf %623, %624 : vector<8x128xf32>
    %626 = math.tanh %625 : vector<8x128xf32>
    %627 = arith.mulf %622, %626 : vector<8x128xf32>
    %628 = vector.broadcast %c6_i32_120 : i32 to vector<8x1xi32>
    %629 = arith.cmpi slt, %628, %0 : vector<8x1xi32>
    %630 = vector.shape_cast %629 : vector<8x1xi1> to vector<8x1xi1>
    %631 = vector.broadcast %630 : vector<8x1xi1> to vector<8x128xi1>
    %632 = arith.select %631, %627, %592 : vector<8x128xi1>, vector<8x128xf32>
    %633 = vector.shape_cast %629 : vector<8x1xi1> to vector<8x1xi1>
    %634 = vector.broadcast %633 : vector<8x1xi1> to vector<8x128xi1>
    %635 = arith.select %634, %625, %595 : vector<8x128xi1>, vector<8x128xf32>
    %c7_i32_127 = arith.constant 7 : i32
    %c8_i32_128 = arith.constant 8 : i32
    %636 = arith.muli %c7_i32_127, %c8_i32_128 : i32
    %637 = tpu.assume_multiple %636, 8 : i32
    %638 = arith.index_cast %637 : i32 to index
    %c0_129 = arith.constant 0 : index
    %639 = vector.load %arg9[%638, %c0_129] : memref<64x512xf32, #tpu.memory_space<vmem>>, vector<8x512xf32>
    %640 = arith.truncf %632 : vector<8x128xf32> to vector<8x128xbf16>
    %cst_130 = arith.constant dense<0.000000e+00> : vector<8x512xf32>
    %641 = tpu.matmul %640, %2, %cst_130 {dimension_numbers = #tpu.dot_dimension_numbers<[1], [0], [0], [1], [0, 0, 1, 1], [], []>} : vector<8x128xbf16>, vector<128x512xbf16>, vector<8x512xf32> -> vector<8x512xf32>
    %642 = arith.addf %639, %641 : vector<8x512xf32>
    %643 = vector.extract_strided_slice %642 {offsets = [0, 0], sizes = [8, 128], strides = [1, 1]} : vector<8x512xf32> to vector<8x128xf32>
    %644 = arith.negf %643 : vector<8x128xf32>
    %645 = math.exp %644 : vector<8x128xf32>
    %cst_131 = arith.constant 1.000000e+00 : f32
    %646 = vector.broadcast %cst_131 : f32 to vector<8x128xf32>
    %647 = arith.addf %646, %645 : vector<8x128xf32>
    %648 = arith.divf %646, %647 : vector<8x128xf32>
    %649 = vector.extract_strided_slice %642 {offsets = [0, 128], sizes = [8, 128], strides = [1, 1]} : vector<8x512xf32> to vector<8x128xf32>
    %650 = arith.negf %649 : vector<8x128xf32>
    %651 = math.exp %650 : vector<8x128xf32>
    %cst_132 = arith.constant 1.000000e+00 : f32
    %652 = vector.broadcast %cst_132 : f32 to vector<8x128xf32>
    %653 = arith.addf %652, %651 : vector<8x128xf32>
    %654 = arith.divf %652, %653 : vector<8x128xf32>
    %655 = vector.extract_strided_slice %642 {offsets = [0, 256], sizes = [8, 128], strides = [1, 1]} : vector<8x512xf32> to vector<8x128xf32>
    %656 = math.tanh %655 : vector<8x128xf32>
    %657 = vector.extract_strided_slice %642 {offsets = [0, 384], sizes = [8, 128], strides = [1, 1]} : vector<8x512xf32> to vector<8x128xf32>
    %658 = arith.negf %657 : vector<8x128xf32>
    %659 = math.exp %658 : vector<8x128xf32>
    %cst_133 = arith.constant 1.000000e+00 : f32
    %660 = vector.broadcast %cst_133 : f32 to vector<8x128xf32>
    %661 = arith.addf %660, %659 : vector<8x128xf32>
    %662 = arith.divf %660, %661 : vector<8x128xf32>
    %663 = arith.mulf %654, %635 : vector<8x128xf32>
    %664 = arith.mulf %648, %656 : vector<8x128xf32>
    %665 = arith.addf %663, %664 : vector<8x128xf32>
    %666 = math.tanh %665 : vector<8x128xf32>
    %667 = arith.mulf %662, %666 : vector<8x128xf32>
    %668 = vector.broadcast %c7_i32_127 : i32 to vector<8x1xi32>
    %669 = arith.cmpi slt, %668, %0 : vector<8x1xi32>
    %670 = vector.shape_cast %669 : vector<8x1xi1> to vector<8x1xi1>
    %671 = vector.broadcast %670 : vector<8x1xi1> to vector<8x128xi1>
    %672 = arith.select %671, %667, %632 : vector<8x128xi1>, vector<8x128xf32>
    %673 = vector.shape_cast %669 : vector<8x1xi1> to vector<8x1xi1>
    %674 = vector.broadcast %673 : vector<8x1xi1> to vector<8x128xi1>
    %675 = arith.select %674, %665, %635 : vector<8x128xi1>, vector<8x128xf32>
    %c8_i32_134 = arith.constant 8 : i32
    %c0_135 = arith.constant 0 : index
    %c0_136 = arith.constant 0 : index
    %676 = vector.load %arg7[%c0_135, %c0_136] : memref<8x128xf32, #tpu.memory_space<vmem>>, vector<8x128xf32>
    tpu.vector_store %arg7[%c0_135, %c0_136], %672 {strides = array<i32>} : memref<8x128xf32, #tpu.memory_space<vmem>>, vector<8x128xf32>,
    return
  }
  func.func @transform_0(%arg0: i32) -> (i32, i32) {
    %c0_i32 = arith.constant 0 : i32
    %c0_i32_0 = arith.constant 0 : i32
    return %arg0, %c0_i32 : i32, i32
  }
  func.func @transform_1(%arg0: i32) -> (i32, i32, i32) {
    %c0_i32 = arith.constant 0 : i32
    %c0_i32_0 = arith.constant 0 : i32
    %c0_i32_1 = arith.constant 0 : i32
    return %c0_i32, %arg0, %c0_i32_0 : i32, i32, i32
  }
  func.func @transform_2(%arg0: i32) -> (i32, i32) {
    %c0_i32 = arith.constant 0 : i32
    %c0_i32_0 = arith.constant 0 : i32
    %c0_i32_1 = arith.constant 0 : i32
    return %c0_i32, %c0_i32_0 : i32, i32
  }
  func.func @transform_3(%arg0: i32) -> (i32, i32) {
    %c0_i32 = arith.constant 0 : i32
    %c0_i32_0 = arith.constant 0 : i32
    %c0_i32_1 = arith.constant 0 : i32
    return %c0_i32, %c0_i32_0 : i32, i32
  }
  func.func @transform_4(%arg0: i32) -> (i32, i32) {
    %c0_i32 = arith.constant 0 : i32
    %c0_i32_0 = arith.constant 0 : i32
    %c0_i32_1 = arith.constant 0 : i32
    return %c0_i32, %c0_i32_0 : i32, i32
  }
  func.func @transform_5(%arg0: i32) -> (i32, i32) {
    %c0_i32 = arith.constant 0 : i32
    %c0_i32_0 = arith.constant 0 : i32
    %c0_i32_1 = arith.constant 0 : i32
    return %c0_i32, %c0_i32_0 : i32, i32
  }
  func.func @transform_6(%arg0: i32) -> (i32, i32) {
    %c0_i32 = arith.constant 0 : i32
    %c0_i32_0 = arith.constant 0 : i32
    return %arg0, %c0_i32 : i32, i32
  }
}

</mosaic_0001>

<bundles_post_ra>
// kernel: lstm_w2v_forward.1
= control target key start
LH: loop header
LB: loop body
LE: loop exit
PB: predicated region body
PF: predicated region fallthrough
CT: control target
= control target key end

     0   :  { %v5206_v1 = vmov 0   ;;  %s5199_s2 = inlined_call_operand.vmem [shape: bf16[128,512], index: 2, kind: input, shape index: {}]   ;;  %s5200_s0 = inlined_call_operand.vmem [shape: s32[8,1], index: 0, kind: input, shape index: {}]   ;;  %s5201_s1 = inlined_call_operand.vmem [shape: f32[8,8,512], index: 1, kind: input, shape index: {}]   ;;  %s5202_s3 = inlined_call_operand.vmem [shape: bf16[128,512], index: 3, kind: input, shape index: {}]   ;;  %s5203_s4 = inlined_call_operand.vmem [shape: bf16[128,512], index: 4, kind: input, shape index: {}]   ;;  %s5204_s5 = inlined_call_operand.vmem [shape: f32[1,512], index: 5, kind: input, shape index: {}]   ;;  %s5205_s6 = inlined_call_operand.vmem [shape: f32[8,128], index: 6, kind: output, shape index: {}]  }
   0x1   :  { %v3485_v0 = vld [vmem:[%s5199_s2 + $0x4] ss:$16 sps:$4 sm:$0xff]   ;;  %285 = vmatprep.mubr.bf16.mxu0 %v5206_v1  ;;  %326 = vmatprep.mubr.bf16.mxu1 %v5206_v1  ;;  %v3492_v2 = vld [vmem:[%s5199_s2] ss:$16 sps:$4 sm:$0xff]   ;;  %v3517_v6 = vld [vmem:[%s5199_s2 + $0xc] ss:$16 sps:$4 sm:$0xff]  }
   0x2   :  { %2979 = vset.pattern.permute.xlu0 %v5206_v1  ;;  %2980 = vset.pattern.permute.xlu1 %v5206_v1  ;;  %v3500_v3 = vld [vmem:[%s5199_s2 + $0x24] ss:$16 sps:$4 sm:$0xff]   ;;  %v3506_v4 = vld [vmem:[%s5199_s2 + $0x20] ss:$16 sps:$4 sm:$0xff]   ;;  %v3522_v7 = vld [vmem:[%s5199_s2 + $0x8] ss:$16 sps:$4 sm:$0xff]  }
   0x3   :  { %253 = vmatprep.subr.bf16.mxu0 %v3485_v0  ;;  %v3512_v5 = vld [vmem:[%s5199_s2 + $0x44] ss:$16 sps:$4 sm:$0xff]   ;;  %v3528_v8 = vld [vmem:[%s5199_s2 + $0x40] ss:$16 sps:$4 sm:$0xff]   ;;  %294 = vmatprep.subr.bf16.mxu1 %v3517_v6  ;;  %v3541_v10 = vld [vmem:[%s5199_s2 + $0x2c] ss:$16 sps:$4 sm:$0xff]  }
   0x4   :  { %254 = vmatpush1.bf16.msra.mxu0 %v3492_v2  ;;  %v3535_v9 = vld [vmem:[%s5199_s2 + $0x64] ss:$16 sps:$4 sm:$0xff]   ;;  %295 = vmatpush1.bf16.msra.mxu1 %v3522_v7  ;;  %v3546_v11 = vld [vmem:[%s5199_s2 + $0x28] ss:$16 sps:$4 sm:$0xff]   ;;  %v3553_v12 = vld [vmem:[%s5199_s2 + $0x60] ss:$16 sps:$4 sm:$0xff]  }
   0x5   :  { %255 = vmatprep.subr.bf16.mxu0 %v3500_v3  ;;  %296 = vmatprep.subr.bf16.mxu1 %v3541_v10  ;;  %v3558_v13 = vld [vmem:[%s5199_s2 + $0x84] ss:$16 sps:$4 sm:$0xff]   ;;  %v3563_v14 = vld [vmem:[%s5199_s2 + $0x4c] ss:$16 sps:$4 sm:$0xff]   ;;  %v3570_v15 = vld [vmem:[%s5199_s2 + $0x48] ss:$16 sps:$4 sm:$0xff]  }
   0x6   :  { %v3576_v16 = vld [vmem:[%s5199_s2 + $0x6c] ss:$16 sps:$4 sm:$0xff]   ;;  %v3582_v17 = vld [vmem:[%s5199_s2 + $0x80] ss:$16 sps:$4 sm:$0xff]   ;;  %v3588_v18 = vld [vmem:[%s5199_s2 + $0xa4] ss:$16 sps:$4 sm:$0xff]  }
   0x7   :  { %v3594_v19 = vld [vmem:[%s5199_s2 + $0x68] ss:$16 sps:$4 sm:$0xff]   ;;  %v3600_v20 = vld [vmem:[%s5199_s2 + $0x8c] ss:$16 sps:$4 sm:$0xff]   ;;  %v3606_v21 = vld [vmem:[%s5199_s2 + $0xa0] ss:$16 sps:$4 sm:$0xff]  }
   0x8   :  { %256 = vmatpush1.bf16.msra.mxu0 %v3506_v4  ;;  %297 = vmatpush1.bf16.msra.mxu1 %v3546_v11  ;;  %v3611_v22 = vld [vmem:[%s5199_s2 + $0xc4] ss:$16 sps:$4 sm:$0xff]   ;;  %v3618_v23 = vld [vmem:[%s5199_s2 + $0x88] ss:$16 sps:$4 sm:$0xff]   ;;  %v3624_v24 = vld [vmem:[%s5199_s2 + $0xac] ss:$16 sps:$4 sm:$0xff]  }
   0x9   :  { %257 = vmatprep.subr.bf16.mxu0 %v3512_v5  ;;  %298 = vmatprep.subr.bf16.mxu1 %v3563_v14  ;;  %v3629_v25 = vld [vmem:[%s5200_s0] sm:$0xff]  ;;  %v3650_v29 = vld [vmem:[%s5199_s2 + $0xa8] ss:$16 sps:$4 sm:$0xff]   ;;  %v3656_v30 = vld [vmem:[%s5199_s2 + $0xcc] ss:$16 sps:$4 sm:$0xff]  }
   0xa   :  { %vm363_vm0 = vcmp.gt.s32.totalorder %v3629_v25, 0  ;;  %v3636_v26 = vld [vmem:[%s5199_s2 + $0xc0] ss:$16 sps:$4 sm:$0xff]   ;;  %vm488_vm1 = vcmp.gt.s32.totalorder %v3629_v25, 1  ;;  %v3644_v28 = vld [vmem:[%s5199_s2 + $0xe4] ss:$16 sps:$4 sm:$0xff]  }
   0xb   :  { %v364_v27 = vsel %vm363_vm0, 1, %v5206_v1  ;;  %v489_v31 = vsel %vm488_vm1, 1, %v5206_v1  ;;  %v3663_v32 = vld [vmem:[%s5199_s2 + $0xe0] ss:$16 sps:$4 sm:$0xff]   ;;  %vm866_vm2 = vcmp.gt.s32.totalorder %v3629_v25, 4  ;;  %vm1118_vm3 = vcmp.gt.s32.totalorder %v3629_v25, 6 }
   0xc   :  { %258 = vmatpush1.bf16.msra.mxu0 %v3528_v8  ;;  %299 = vmatpush1.bf16.msra.mxu1 %v3570_v15  ;;  %v3671_v33 = vld [vmem:[%s5199_s2 + $0xc8] ss:$16 sps:$4 sm:$0xff]   ;;  %v3677_v34 = vld [vmem:[%s5199_s2 + $0xec] ss:$16 sps:$4 sm:$0xff]   ;;  %v867_v35 = vsel %vm866_vm2, 1, %v5206_v1  ;;  %v1119_v37 = vsel %vm1118_vm3, 1, %v5206_v1 }
   0xd   :  { %259 = vmatprep.subr.bf16.mxu0 %v3535_v9  ;;  %300 = vmatprep.subr.bf16.mxu1 %v3576_v16  ;;  %v3686_v36 = vld [vmem:[%s5199_s2 + $0xe8] ss:$16 sps:$4 sm:$0xff]   ;;  %v89_v38 = vld [vmem:[%s5201_s1] sm:$0xff]  ;;  %v91_v54 = vld [vmem:[%s5201_s1 + $0x10] sm:$0xff]  ;;  %vm614_vm6 = vcmp.gt.s32.totalorder %v3629_v25, 2  ;;  %vm740_vm7 = vcmp.gt.s32.totalorder %v3629_v25, 3 }
   0xe   :  { %366 = vperm.xlu0 %2979, %v364_v27   ;;  %v90_v39 = vld [vmem:[%s5201_s1 + $0x8] sm:$0xff]  ;;  %v92_v48 = vld [vmem:[%s5201_s1 + $0x18] sm:$0xff]  ;;  %vm992_vm8 = vcmp.gt.s32.totalorder %v3629_v25, 5  ;;  %vm1244_vm9 = vcmp.gt.s32.totalorder %v3629_v25, 7  ;;  %vm3446_vm0 = vmmov 1  }
  0x10   :  { %260 = vmatpush1.bf16.msra.mxu0 %v3553_v12  ;;  %301 = vmatpush1.bf16.msra.mxu1 %v3594_v19 }
  0x11   :  { %261 = vmatprep.subr.bf16.mxu0 %v3558_v13  ;;  %302 = vmatprep.subr.bf16.mxu1 %v3600_v20 }
  0x12   :  { %491 = vperm.xlu0 %2979, %v489_v31  }
  0x14   :  { %262 = vmatpush1.bf16.msra.mxu0 %v3582_v17  ;;  %303 = vmatpush1.bf16.msra.mxu1 %v3618_v23 }
  0x15   :  { %263 = vmatprep.subr.bf16.mxu0 %v3588_v18  ;;  %304 = vmatprep.subr.bf16.mxu1 %v3624_v24 }
  0x16   :  { %869 = vperm.xlu0 %2979, %v867_v35  }
  0x18   :  { %264 = vmatpush1.bf16.msra.mxu0 %v3606_v21  ;;  %305 = vmatpush1.bf16.msra.mxu1 %v3650_v29 }
  0x19   :  { %265 = vmatprep.subr.bf16.mxu0 %v3611_v22  ;;  %306 = vmatprep.subr.bf16.mxu1 %v3656_v30 }
  0x1a   :  { %1121 = vperm.xlu0 %2979, %v1119_v37  }
  0x1c   :  { %266 = vmatpush1.bf16.msra.mxu0 %v3636_v26  ;;  %307 = vmatpush1.bf16.msra.mxu1 %v3671_v33 }
  0x1d   :  { %267 = vmatprep.subr.bf16.mxu0 %v3644_v28  ;;  %308 = vmatprep.subr.bf16.mxu1 %v3677_v34 }
  0x20   :  { %268 = vmatpush1.bf16.msra.mxu0 %v3663_v32  ;;  %309 = vmatpush1.bf16.msra.mxu1 %v3686_v36 }
  0x21   :  { %378 = vmatprep.subr.bf16.mxu0 %v3485_v0  ;;  %419 = vmatprep.subr.bf16.mxu1 %v3517_v6 }
  0x23   :  { %286 = vmatmul.mubr.bf16.vlgmr.msra.gmra.mrb[0].mxu0 %v5206_v1  ;;  %327 = vmatmul.mubr.bf16.vlgmr.msra.gmra.mrb[0].mxu1 %v5206_v1 }
  0x24   :  { %379 = vmatpush1.bf16.msra.mxu0 %v3492_v2  ;;  %410 = vmatprep.mubr.bf16.mxu0 %v5206_v1 }
  0x25   :  { %380 = vmatprep.subr.bf16.mxu0 %v3500_v3  ;;  %420 = vmatpush1.bf16.msra.mxu1 %v3522_v7 }
  0x26   :  { %421 = vmatprep.subr.bf16.mxu1 %v3541_v10  ;;  %451 = vmatprep.mubr.bf16.mxu1 %v5206_v1 }
  0x28   :  { %381 = vmatpush1.bf16.msra.mxu0 %v3506_v4 }
  0x29   :  { %382 = vmatprep.subr.bf16.mxu0 %v3512_v5  ;;  %422 = vmatpush1.bf16.msra.mxu1 %v3546_v11 }
  0x2a   :  { %423 = vmatprep.subr.bf16.mxu1 %v3563_v14 }
  0x2c   :  { %383 = vmatpush1.bf16.msra.mxu0 %v3528_v8 }
  0x2d   :  { %384 = vmatprep.subr.bf16.mxu0 %v3535_v9  ;;  %424 = vmatpush1.bf16.msra.mxu1 %v3570_v15 }
  0x2e   :  { %425 = vmatprep.subr.bf16.mxu1 %v3576_v16 }
  0x30   :  { %385 = vmatpush1.bf16.msra.mxu0 %v3553_v12 }
  0x31   :  { %386 = vmatprep.subr.bf16.mxu0 %v3558_v13  ;;  %426 = vmatpush1.bf16.msra.mxu1 %v3594_v19 }
  0x32   :  { %427 = vmatprep.subr.bf16.mxu1 %v3600_v20 }
  0x34   :  { %387 = vmatpush1.bf16.msra.mxu0 %v3582_v17 }
  0x35   :  { %388 = vmatprep.subr.bf16.mxu0 %v3588_v18  ;;  %428 = vmatpush1.bf16.msra.mxu1 %v3618_v23 }
  0x36   :  { %429 = vmatprep.subr.bf16.mxu1 %v3624_v24 }
  0x38   :  { %389 = vmatpush1.bf16.msra.mxu0 %v3606_v21 }
  0x39   :  { %390 = vmatprep.subr.bf16.mxu0 %v3611_v22  ;;  %430 = vmatpush1.bf16.msra.mxu1 %v3650_v29 }
  0x3a   :  { %431 = vmatprep.subr.bf16.mxu1 %v3656_v30 }
  0x3c   :  { %391 = vmatpush1.bf16.msra.mxu0 %v3636_v26 }
  0x3d   :  { %392 = vmatprep.subr.bf16.mxu0 %v3644_v28  ;;  %432 = vmatpush1.bf16.msra.mxu1 %v3671_v33 }
  0x3e   :  { %433 = vmatprep.subr.bf16.mxu1 %v3677_v34 }
  0x40   :  { %393 = vmatpush1.bf16.msra.mxu0 %v3663_v32 }
  0x41   :  { %504 = vmatprep.subr.bf16.mxu0 %v3485_v0  ;;  %434 = vmatpush1.bf16.msra.mxu1 %v3686_v36 }
  0x42   :  { %545 = vmatprep.subr.bf16.mxu1 %v3517_v6 }
  0xf6   :  { %v287_v40 = vpop.f32.mrb[0].mxu0  ;;  %v328_v49 = vpop.f32.mrb[0].mxu1 }
  0xf7   :  { %v335_v41 = vadd.f32 %v287_v40, %v89_v38  ;;  %v289_v42 = vpop.f32.mrb[1].mxu0  ;;  %v330_v50 = vpop.f32.mrb[1].mxu1  ;;  %v337_v56 = vadd.f32 %v328_v49, %v91_v54  ;;  %v2822_v49 = vld [vmem:[%s5201_s1 + $0x20] sm:$0xff] }
  0xf8   :  { %v336_v43 = vadd.f32 %v289_v42, %v90_v39  ;;  %v291_v44 = vpop.f32.mrb[2].mxu0  ;;  %v338_v51 = vadd.f32 %v330_v50, %v92_v48  ;;  %v332_v52 = vpop.f32.mrb[2].mxu1  ;;  %v1245_v48 = vsel %vm1244_vm9, 1, %v5206_v1  ;;  %v2823_v50 = vld [vmem:[%s5201_s1 + $0x28] sm:$0xff] }
  0xf9   :  { %v2819_v45 = vmul.f32 -1.442695, %v335_v41  ;;  %v292_v46 = vpop.f32.mrb[3].mxu0  ;;  %v333_v53 = vpop.f32.mrb[3].mxu1 }
  0xfa   :  { %v2820_v47 = vmul.f32 -1.442695, %v336_v43  ;;  %v2821_v55 = vmul.f32 -1.442695, %v338_v51  ;;  %v3744_v40 = vpop.permute.xlu0 %366  ;;  %v741_v46 = vsel %vm740_vm7, 1, %v5206_v1 }
  0xfb   :  { %3125 = vpow2.f32 %v2819_v45  ;;  %5223 = vst [vmem:[#allocation4_spill] sm:$0xff] %v3744_v40  ;;  %vm368_vm4 = vcmp.eq.s32.totalorder %v3744_v40, 1  ;;  %v615_v45 = vsel %vm614_vm6, 1, %v5206_v1 }
  0xfc   :  { %3127 = vpow2.f32 %v2820_v47  ;;  %vm3752_vm5 = vmpackc.low %vm368_vm4, %vm368_vm4  ;;  %617 = vperm.xlu1 %2980, %v615_v45   ;;  %v993_v47 = vsel %vm992_vm8, 1, %v5206_v1 }
  0xfd   :  { %3129 = vpow2.f32 %v2821_v55  ;;  %vm2971_vm1 = vmpackc.low %vm3446_vm0, %vm368_vm4 }
  0xfe   :  { %3131 = vtanh.f32 %v337_v56 }
 0x100   :  { %743 = vperm.xlu1 %2980, %v741_v46  }
 0x104   :  { %995 = vperm.xlu1 %2980, %v993_v47  }
 0x105   :  { %v3126_v57 = vpop.eup %3125 }
 0x106   :  { %v3128_v58 = vpop.eup %3127  ;;  %v342_v59 = vadd.f32 1.0, %v3126_v57 }
 0x107   :  { %v348_v60 = vadd.f32 1.0, %v3128_v58  ;;  %v3130_v61 = vpop.eup %3129 }
 0x108   :  { %3133 = vrcp.f32 %v342_v59  ;;  %v3132_v62 = vpop.eup %3131  ;;  %v355_v27 = vadd.f32 1.0, %v3130_v61  ;;  %1247 = vperm.xlu1 %2980, %v1245_v48  }
 0x109   :  { %3135 = vrcp.f32 %v348_v60 }
 0x10a   :  { %3137 = vrcp.f32 %v355_v27  ;;  %v2824_v27 = vld [vmem:[%s5201_s1 + $0x30] sm:$0xff] }
 0x112   :  { %v3134_v63 = vpop.eup %3133 }
 0x113   :  { %v3136_v31 = vpop.eup %3135  ;;  %v359_v35 = vmul.f32 %v3134_v63, %v3132_v62  ;;  %v2825_v62 = vld [vmem:[%s5201_s1 + $0x38] sm:$0xff] }
 0x114   :  { %v358_v37 = vmul.f32 0.0, %v3136_v31  ;;  %v3138_v39 = vpop.eup %3137 }
 0x116   :  { %v3741_v38 = vadd.f32 %v359_v35, %v358_v37 }
 0x118   :  { %3139 = vtanh.f32 %v3741_v38 }
 0x122   :  { %v3140_v41 = vpop.eup %3139 }
 0x123   :  { %v3746_v42 = vmul.f32 %v3140_v41, %v3138_v39 }
 0x125   :  { %v2827_v44 = vpack.c.bf16 %v3746_v42, %v3746_v42 }
 0x127   :  { %2828 = vmatmul.mubr.msk.bf16.vlgmr.msra.gmra.mrb[4].mxu0 %vm3752_vm5, %v2827_v44  ;;  %2831 = vmatmul.mubr.msk.bf16.vlgmr.msra.gmra.mrb[4].mxu1 %vm3752_vm5, %v2827_v44 }
 0x128   :  { %505 = vmatpush1.bf16.msra.mxu0 %v3492_v2  ;;  %546 = vmatpush1.bf16.msra.mxu1 %v3522_v7 }
 0x129   :  { %506 = vmatprep.subr.bf16.mxu0 %v3500_v3  ;;  %547 = vmatprep.subr.bf16.mxu1 %v3541_v10 }
 0x12a   :  { %536 = vmatprep.mubr.bf16.mxu0 %v5206_v1  ;;  %577 = vmatprep.mubr.bf16.mxu1 %v5206_v1 }
 0x12c   :  { %507 = vmatpush1.bf16.msra.mxu0 %v3506_v4  ;;  %548 = vmatpush1.bf16.msra.mxu1 %v3546_v11 }
 0x12d   :  { %508 = vmatprep.subr.bf16.mxu0 %v3512_v5  ;;  %549 = vmatprep.subr.bf16.mxu1 %v3563_v14 }
 0x130   :  { %509 = vmatpush1.bf16.msra.mxu0 %v3528_v8  ;;  %550 = vmatpush1.bf16.msra.mxu1 %v3570_v15 }
 0x131   :  { %510 = vmatprep.subr.bf16.mxu0 %v3535_v9  ;;  %551 = vmatprep.subr.bf16.mxu1 %v3576_v16 }
 0x134   :  { %511 = vmatpush1.bf16.msra.mxu0 %v3553_v12  ;;  %552 = vmatpush1.bf16.msra.mxu1 %v3594_v19 }
 0x135   :  { %512 = vmatprep.subr.bf16.mxu0 %v3558_v13  ;;  %553 = vmatprep.subr.bf16.mxu1 %v3600_v20 }
 0x138   :  { %513 = vmatpush1.bf16.msra.mxu0 %v3582_v17  ;;  %554 = vmatpush1.bf16.msra.mxu1 %v3618_v23 }
 0x139   :  { %514 = vmatprep.subr.bf16.mxu0 %v3588_v18  ;;  %555 = vmatprep.subr.bf16.mxu1 %v3624_v24 }
 0x13c   :  { %515 = vmatpush1.bf16.msra.mxu0 %v3606_v21  ;;  %556 = vmatpush1.bf16.msra.mxu1 %v3650_v29 }
 0x13d   :  { %516 = vmatprep.subr.bf16.mxu0 %v3611_v22  ;;  %557 = vmatprep.subr.bf16.mxu1 %v3656_v30 }
 0x140   :  { %517 = vmatpush1.bf16.msra.mxu0 %v3636_v26  ;;  %558 = vmatpush1.bf16.msra.mxu1 %v3671_v33 }
 0x141   :  { %518 = vmatprep.subr.bf16.mxu0 %v3644_v28  ;;  %559 = vmatprep.subr.bf16.mxu1 %v3677_v34 }
 0x144   :  { %519 = vmatpush1.bf16.msra.mxu0 %v3663_v32  ;;  %560 = vmatpush1.bf16.msra.mxu1 %v3686_v36 }
 0x145   :  { %630 = vmatprep.subr.bf16.mxu0 %v3485_v0  ;;  %671 = vmatprep.subr.bf16.mxu1 %v3517_v6 }
 0x1fa   :  { %v412_v51 = vpop.f32.mrb[4].mxu0  ;;  %v453_v52 = vpop.f32.mrb[4].mxu1 }
 0x1fb   :  { %v460_v53 = vadd.f32 %v2822_v49, %v412_v51  ;;  %v414_v54 = vpop.f32.mrb[5].mxu0  ;;  %v455_v55 = vpop.f32.mrb[5].mxu1  ;;  %v462_v35 = vadd.f32 %v2824_v27, %v453_v52  ;;  %v370_v49 = vsel %vm368_vm4, %v3741_v38, 0.0  ;;  %v369_v38 = vsel %vm368_vm4, %v3746_v42, 0.0 }
 0x1fc   :  { %v461_v56 = vadd.f32 %v2823_v50, %v414_v54  ;;  %v416_v57 = vpop.f32.mrb[6].mxu0  ;;  %v457_v25 = vpop.f32.mrb[6].mxu1  ;;  %v463_v63 = vadd.f32 %v2825_v62, %v455_v55 }
 0x1fd   :  { %v2832_v58 = vmul.f32 -1.442695, %v460_v53  ;;  %v417_v59 = vpop.f32.mrb[7].mxu0  ;;  %v458_v60 = vpop.f32.mrb[7].mxu1 }
 0x1fe   :  { %v2833_v61 = vmul.f32 -1.442695, %v461_v56  ;;  %v2834_v31 = vmul.f32 -1.442695, %v463_v63  ;;  %v3819_v52 = vpop.permute.xlu0 %491  ;;  %v2835_v60 = vld [vmem:[%s5201_s1 + $0x40] sm:$0xff] }
 0x1ff   :  { %3141 = vpow2.f32 %v2832_v58  ;;  %5226 = vst [vmem:[#allocation5_spill] sm:$0xff] %v3819_v52  ;;  %vm493_vm10 = vcmp.eq.s32.totalorder %v3819_v52, 1 }
 0x200   :  { %3143 = vpow2.f32 %v2833_v61  ;;  %v2836_v61 = vld [vmem:[%s5201_s1 + $0x48] sm:$0xff] }
 0x201   :  { %3145 = vpow2.f32 %v2834_v31 }
 0x202   :  { %3147 = vtanh.f32 %v462_v35 }
 0x209   :  { %v3142_v37 = vpop.eup %3141 }
 0x20a   :  { %v3144_v39 = vpop.eup %3143  ;;  %v467_v41 = vadd.f32 1.0, %v3142_v37 }
 0x20b   :  { %v473_v44 = vadd.f32 1.0, %v3144_v39  ;;  %v3146_v45 = vpop.eup %3145 }
 0x20c   :  { %3149 = vrcp.f32 %v467_v41  ;;  %v3148_v46 = vpop.eup %3147  ;;  %v480_v51 = vadd.f32 1.0, %v3146_v45 }
 0x20d   :  { %3151 = vrcp.f32 %v473_v44 }
 0x20e   :  { %3153 = vrcp.f32 %v480_v51 }
 0x216   :  { %v3150_v47 = vpop.eup %3149 }
 0x217   :  { %v3152_v48 = vpop.eup %3151  ;;  %v484_v50 = vmul.f32 %v3150_v47, %v3148_v46 }
 0x218   :  { %v483_v53 = vmul.f32 %v3152_v48, %v370_v49  ;;  %v3154_v56 = vpop.eup %3153  ;;  %v2838_v48 = vld [vmem:[%s5201_s1 + $0x58] sm:$0xff] }
 0x21a   :  { %v485_v54 = vadd.f32 %v484_v50, %v483_v53  ;;  %v2837_v50 = vld [vmem:[%s5201_s1 + $0x50] sm:$0xff] }
 0x21c   :  { %3155 = vtanh.f32 %v485_v54  ;;  %v3824_v55 = vsel %vm493_vm10, %v485_v54, %v370_v49 }
 0x226   :  { %v3156_v57 = vpop.eup %3155 }
 0x227   :  { %v487_v25 = vmul.f32 %v3156_v57, %v3154_v56 }
 0x229   :  { %v3831_v58 = vsel %vm493_vm10, %v487_v25, %v369_v38 }
 0x22a   :  { %v503_v59 = vpack.c.bf16 %v3831_v58, %v3831_v58 }
 0x22c   :  { %537 = vmatmul.mubr.bf16.vlgmr.msra.gmra.mrb[8].mxu0 %v503_v59  ;;  %578 = vmatmul.mubr.bf16.vlgmr.msra.gmra.mrb[8].mxu1 %v503_v59 }
 0x22d   :  { %631 = vmatpush1.bf16.msra.mxu0 %v3492_v2  ;;  %672 = vmatpush1.bf16.msra.mxu1 %v3522_v7 }
 0x22e   :  { %632 = vmatprep.subr.bf16.mxu0 %v3500_v3  ;;  %673 = vmatprep.subr.bf16.mxu1 %v3541_v10 }
 0x22f   :  { %662 = vmatprep.mubr.bf16.mxu0 %v5206_v1  ;;  %703 = vmatprep.mubr.bf16.mxu1 %v5206_v1 }
 0x231   :  { %633 = vmatpush1.bf16.msra.mxu0 %v3506_v4  ;;  %674 = vmatpush1.bf16.msra.mxu1 %v3546_v11 }
 0x232   :  { %634 = vmatprep.subr.bf16.mxu0 %v3512_v5  ;;  %675 = vmatprep.subr.bf16.mxu1 %v3563_v14 }
 0x235   :  { %635 = vmatpush1.bf16.msra.mxu0 %v3528_v8  ;;  %676 = vmatpush1.bf16.msra.mxu1 %v3570_v15 }
 0x236   :  { %636 = vmatprep.subr.bf16.mxu0 %v3535_v9  ;;  %677 = vmatprep.subr.bf16.mxu1 %v3576_v16 }
 0x239   :  { %637 = vmatpush1.bf16.msra.mxu0 %v3553_v12  ;;  %678 = vmatpush1.bf16.msra.mxu1 %v3594_v19 }
 0x23a   :  { %638 = vmatprep.subr.bf16.mxu0 %v3558_v13  ;;  %679 = vmatprep.subr.bf16.mxu1 %v3600_v20 }
 0x23d   :  { %639 = vmatpush1.bf16.msra.mxu0 %v3582_v17  ;;  %680 = vmatpush1.bf16.msra.mxu1 %v3618_v23 }
 0x23e   :  { %640 = vmatprep.subr.bf16.mxu0 %v3588_v18  ;;  %681 = vmatprep.subr.bf16.mxu1 %v3624_v24 }
 0x241   :  { %641 = vmatpush1.bf16.msra.mxu0 %v3606_v21  ;;  %682 = vmatpush1.bf16.msra.mxu1 %v3650_v29 }
 0x242   :  { %642 = vmatprep.subr.bf16.mxu0 %v3611_v22  ;;  %683 = vmatprep.subr.bf16.mxu1 %v3656_v30 }
 0x245   :  { %643 = vmatpush1.bf16.msra.mxu0 %v3636_v26  ;;  %684 = vmatpush1.bf16.msra.mxu1 %v3671_v33 }
 0x246   :  { %644 = vmatprep.subr.bf16.mxu0 %v3644_v28  ;;  %685 = vmatprep.subr.bf16.mxu1 %v3677_v34 }
 0x249   :  { %645 = vmatpush1.bf16.msra.mxu0 %v3663_v32  ;;  %686 = vmatpush1.bf16.msra.mxu1 %v3686_v36 }
 0x24a   :  { %756 = vmatprep.subr.bf16.mxu0 %v3485_v0  ;;  %797 = vmatprep.subr.bf16.mxu1 %v3517_v6 }
 0x2ff   :  { %v538_v62 = vpop.f32.mrb[8].mxu0  ;;  %v579_v63 = vpop.f32.mrb[8].mxu1 }
 0x300   :  { %v586_v27 = vadd.f32 %v2835_v60, %v538_v62  ;;  %v540_v31 = vpop.f32.mrb[9].mxu0  ;;  %v581_v35 = vpop.f32.mrb[9].mxu1  ;;  %v588_v53 = vadd.f32 %v2837_v50, %v579_v63 }
 0x301   :  { %v587_v37 = vadd.f32 %v2836_v61, %v540_v31  ;;  %v542_v39 = vpop.f32.mrb[10].mxu0  ;;  %v583_v41 = vpop.f32.mrb[10].mxu1  ;;  %v589_v49 = vadd.f32 %v2838_v48, %v581_v35 }
 0x302   :  { %v2839_v44 = vmul.f32 -1.442695, %v586_v27  ;;  %v543_v45 = vpop.f32.mrb[11].mxu0  ;;  %v584_v46 = vpop.f32.mrb[11].mxu1 }
 0x303   :  { %v2840_v47 = vmul.f32 -1.442695, %v587_v37  ;;  %v2841_v51 = vmul.f32 -1.442695, %v589_v49  ;;  %v3881_v61 = vpop.permute.xlu1 %617 }
 0x304   :  { %3157 = vpow2.f32 %v2839_v44  ;;  %5227 = vst [vmem:[#allocation6_spill] sm:$0xff] %v3881_v61  ;;  %vm619_vm11 = vcmp.eq.s32.totalorder %v3881_v61, 1 }
 0x305   :  { %3159 = vpow2.f32 %v2840_v47  ;;  %v2843_v47 = vld [vmem:[%s5201_s1 + $0x68] sm:$0xff] }
 0x306   :  { %3161 = vpow2.f32 %v2841_v51 }
 0x307   :  { %3163 = vtanh.f32 %v588_v53 }
 0x30e   :  { %v3158_v54 = vpop.eup %3157 }
 0x30f   :  { %v3160_v56 = vpop.eup %3159  ;;  %v593_v57 = vadd.f32 1.0, %v3158_v54 }
 0x310   :  { %v599_v25 = vadd.f32 1.0, %v3160_v56  ;;  %v3162_v38 = vpop.eup %3161 }
 0x311   :  { %3165 = vrcp.f32 %v593_v57  ;;  %v3164_v59 = vpop.eup %3163  ;;  %v606_v27 = vadd.f32 1.0, %v3162_v38 }
 0x312   :  { %3167 = vrcp.f32 %v599_v25 }
 0x313   :  { %3169 = vrcp.f32 %v606_v27 }
 0x31b   :  { %v3166_v60 = vpop.eup %3165 }
 0x31c   :  { %v3168_v62 = vpop.eup %3167  ;;  %v610_v31 = vmul.f32 %v3166_v60, %v3164_v59 }
 0x31d   :  { %v609_v35 = vmul.f32 %v3168_v62, %v3824_v55  ;;  %v3170_v39 = vpop.eup %3169  ;;  %v2845_v62 = vld [vmem:[%s5201_s1 + $0x78] sm:$0xff] }
 0x31f   :  { %v611_v63 = vadd.f32 %v610_v31, %v609_v35  ;;  %v2844_v31 = vld [vmem:[%s5201_s1 + $0x70] sm:$0xff] }
 0x321   :  { %3171 = vtanh.f32 %v611_v63  ;;  %v3888_v37 = vsel %vm619_vm11, %v611_v63, %v3824_v55  ;;  %v2842_v55 = vld [vmem:[%s5201_s1 + $0x60] sm:$0xff] }
 0x32b   :  { %v3172_v41 = vpop.eup %3171 }
 0x32c   :  { %v613_v44 = vmul.f32 %v3172_v41, %v3170_v39 }
 0x32e   :  { %v3893_v45 = vsel %vm619_vm11, %v613_v44, %v3831_v58 }
 0x32f   :  { %v629_v46 = vpack.c.bf16 %v3893_v45, %v3893_v45 }
 0x331   :  { %663 = vmatmul.mubr.bf16.vlgmr.msra.gmra.mrb[12].mxu0 %v629_v46  ;;  %704 = vmatmul.mubr.bf16.vlgmr.msra.gmra.mrb[12].mxu1 %v629_v46 }
 0x332   :  { %757 = vmatpush1.bf16.msra.mxu0 %v3492_v2  ;;  %798 = vmatpush1.bf16.msra.mxu1 %v3522_v7 }
 0x333   :  { %758 = vmatprep.subr.bf16.mxu0 %v3500_v3  ;;  %799 = vmatprep.subr.bf16.mxu1 %v3541_v10 }
 0x334   :  { %788 = vmatprep.mubr.bf16.mxu0 %v5206_v1  ;;  %829 = vmatprep.mubr.bf16.mxu1 %v5206_v1 }
 0x336   :  { %759 = vmatpush1.bf16.msra.mxu0 %v3506_v4  ;;  %800 = vmatpush1.bf16.msra.mxu1 %v3546_v11 }
 0x337   :  { %760 = vmatprep.subr.bf16.mxu0 %v3512_v5  ;;  %801 = vmatprep.subr.bf16.mxu1 %v3563_v14 }
 0x33a   :  { %761 = vmatpush1.bf16.msra.mxu0 %v3528_v8  ;;  %802 = vmatpush1.bf16.msra.mxu1 %v3570_v15 }
 0x33b   :  { %762 = vmatprep.subr.bf16.mxu0 %v3535_v9  ;;  %803 = vmatprep.subr.bf16.mxu1 %v3576_v16 }
 0x33e   :  { %763 = vmatpush1.bf16.msra.mxu0 %v3553_v12  ;;  %804 = vmatpush1.bf16.msra.mxu1 %v3594_v19 }
 0x33f   :  { %764 = vmatprep.subr.bf16.mxu0 %v3558_v13  ;;  %805 = vmatprep.subr.bf16.mxu1 %v3600_v20 }
 0x342   :  { %765 = vmatpush1.bf16.msra.mxu0 %v3582_v17  ;;  %806 = vmatpush1.bf16.msra.mxu1 %v3618_v23 }
 0x343   :  { %766 = vmatprep.subr.bf16.mxu0 %v3588_v18  ;;  %807 = vmatprep.subr.bf16.mxu1 %v3624_v24 }
 0x346   :  { %767 = vmatpush1.bf16.msra.mxu0 %v3606_v21  ;;  %808 = vmatpush1.bf16.msra.mxu1 %v3650_v29 }
 0x347   :  { %768 = vmatprep.subr.bf16.mxu0 %v3611_v22  ;;  %809 = vmatprep.subr.bf16.mxu1 %v3656_v30 }
 0x34a   :  { %769 = vmatpush1.bf16.msra.mxu0 %v3636_v26  ;;  %810 = vmatpush1.bf16.msra.mxu1 %v3671_v33 }
 0x34b   :  { %770 = vmatprep.subr.bf16.mxu0 %v3644_v28  ;;  %811 = vmatprep.subr.bf16.mxu1 %v3677_v34 }
 0x34e   :  { %771 = vmatpush1.bf16.msra.mxu0 %v3663_v32  ;;  %812 = vmatpush1.bf16.msra.mxu1 %v3686_v36 }
 0x34f   :  { %882 = vmatprep.subr.bf16.mxu0 %v3485_v0  ;;  %923 = vmatprep.subr.bf16.mxu1 %v3517_v6 }
 0x404   :  { %v664_v48 = vpop.f32.mrb[12].mxu0  ;;  %v705_v49 = vpop.f32.mrb[12].mxu1 }
 0x405   :  { %v712_v50 = vadd.f32 %v2842_v55, %v664_v48  ;;  %v666_v51 = vpop.f32.mrb[13].mxu0  ;;  %v707_v53 = vpop.f32.mrb[13].mxu1  ;;  %v714_v63 = vadd.f32 %v2844_v31, %v705_v49  ;;  %v2851_v31 = vld [vmem:[%s5201_s1 + $0x90] sm:$0xff] }
 0x406   :  { %v713_v54 = vadd.f32 %v2843_v47, %v666_v51  ;;  %v668_v56 = vpop.f32.mrb[14].mxu0  ;;  %v709_v57 = vpop.f32.mrb[14].mxu1  ;;  %v715_v27 = vadd.f32 %v2845_v62, %v707_v53 }
 0x407   :  { %v2846_v25 = vmul.f32 -1.442695, %v712_v50  ;;  %v669_v38 = vpop.f32.mrb[15].mxu0  ;;  %v710_v59 = vpop.f32.mrb[15].mxu1 }
 0x408   :  { %v2847_v60 = vmul.f32 -1.442695, %v713_v54  ;;  %v2848_v35 = vmul.f32 -1.442695, %v715_v27  ;;  %v3944_v56 = vpop.permute.xlu1 %743 }
 0x409   :  { %3173 = vpow2.f32 %v2846_v25  ;;  %5228 = vst [vmem:[#allocation7_spill] sm:$0xff] %v3944_v56  ;;  %vm745_vm12 = vcmp.eq.s32.totalorder %v3944_v56, 1 }
 0x40a   :  { %3175 = vpow2.f32 %v2847_v60 }
 0x40b   :  { %3177 = vpow2.f32 %v2848_v35 }
 0x40c   :  { %3179 = vtanh.f32 %v714_v63 }
 0x413   :  { %v3174_v39 = vpop.eup %3173 }
 0x414   :  { %v3176_v41 = vpop.eup %3175  ;;  %v719_v44 = vadd.f32 1.0, %v3174_v39 }
 0x415   :  { %v725_v46 = vadd.f32 1.0, %v3176_v41  ;;  %v3178_v55 = vpop.eup %3177 }
 0x416   :  { %3181 = vrcp.f32 %v719_v44  ;;  %v3180_v47 = vpop.eup %3179  ;;  %v732_v53 = vadd.f32 1.0, %v3178_v55 }
 0x417   :  { %3183 = vrcp.f32 %v725_v46 }
 0x418   :  { %3185 = vrcp.f32 %v732_v53 }
 0x420   :  { %v3182_v48 = vpop.eup %3181 }
 0x421   :  { %v3184_v50 = vpop.eup %3183  ;;  %v736_v51 = vmul.f32 %v3182_v48, %v3180_v47 }
 0x422   :  { %v735_v54 = vmul.f32 %v3184_v50, %v3888_v37  ;;  %v3186_v25 = vpop.eup %3185 }
 0x424   :  { %v737_v57 = vadd.f32 %v736_v51, %v735_v54 }
 0x426   :  { %3187 = vtanh.f32 %v737_v57  ;;  %v3950_v49 = vsel %vm745_vm12, %v737_v57, %v3888_v37  ;;  %v2852_v37 = vld [vmem:[%s5201_s1 + $0x98] sm:$0xff]  ;;  %v4006_v57 = vpop.permute.xlu0 %869 }
 0x427   :  { %5229 = vst [vmem:[#allocation8_spill] sm:$0xff] %v4006_v57  ;;  %vm871_vm13 = vcmp.eq.s32.totalorder %v4006_v57, 1 }
 0x430   :  { %v3188_v38 = vpop.eup %3187 }
 0x431   :  { %v739_v59 = vmul.f32 %v3188_v38, %v3186_v25 }
 0x433   :  { %v3955_v60 = vsel %vm745_vm12, %v739_v59, %v3893_v45 }
 0x434   :  { %v755_v62 = vpack.c.bf16 %v3955_v60, %v3955_v60 }
 0x436   :  { %789 = vmatmul.mubr.bf16.vlgmr.msra.gmra.mrb[16].mxu0 %v755_v62  ;;  %830 = vmatmul.mubr.bf16.vlgmr.msra.gmra.mrb[16].mxu1 %v755_v62 }
 0x437   :  { %883 = vmatpush1.bf16.msra.mxu0 %v3492_v2  ;;  %924 = vmatpush1.bf16.msra.mxu1 %v3522_v7  ;;  %v2849_v2 = vld [vmem:[%s5201_s1 + $0x80] sm:$0xff] }
 0x438   :  { %884 = vmatprep.subr.bf16.mxu0 %v3500_v3  ;;  %925 = vmatprep.subr.bf16.mxu1 %v3541_v10  ;;  %v2850_v3 = vld [vmem:[%s5201_s1 + $0x88] sm:$0xff] }
 0x439   :  { %914 = vmatprep.mubr.bf16.mxu0 %v5206_v1  ;;  %955 = vmatprep.mubr.bf16.mxu1 %v5206_v1 }
 0x43b   :  { %885 = vmatpush1.bf16.msra.mxu0 %v3506_v4  ;;  %926 = vmatpush1.bf16.msra.mxu1 %v3546_v11 }
 0x43c   :  { %886 = vmatprep.subr.bf16.mxu0 %v3512_v5  ;;  %927 = vmatprep.subr.bf16.mxu1 %v3563_v14 }
 0x43f   :  { %887 = vmatpush1.bf16.msra.mxu0 %v3528_v8  ;;  %928 = vmatpush1.bf16.msra.mxu1 %v3570_v15 }
 0x440   :  { %888 = vmatprep.subr.bf16.mxu0 %v3535_v9  ;;  %929 = vmatprep.subr.bf16.mxu1 %v3576_v16 }
 0x443   :  { %889 = vmatpush1.bf16.msra.mxu0 %v3553_v12  ;;  %930 = vmatpush1.bf16.msra.mxu1 %v3594_v19 }
 0x444   :  { %890 = vmatprep.subr.bf16.mxu0 %v3558_v13  ;;  %931 = vmatprep.subr.bf16.mxu1 %v3600_v20 }
 0x447   :  { %891 = vmatpush1.bf16.msra.mxu0 %v3582_v17  ;;  %932 = vmatpush1.bf16.msra.mxu1 %v3618_v23 }
 0x448   :  { %892 = vmatprep.subr.bf16.mxu0 %v3588_v18  ;;  %933 = vmatprep.subr.bf16.mxu1 %v3624_v24 }
 0x44b   :  { %893 = vmatpush1.bf16.msra.mxu0 %v3606_v21  ;;  %934 = vmatpush1.bf16.msra.mxu1 %v3650_v29 }
 0x44c   :  { %894 = vmatprep.subr.bf16.mxu0 %v3611_v22  ;;  %935 = vmatprep.subr.bf16.mxu1 %v3656_v30 }
 0x44f   :  { %895 = vmatpush1.bf16.msra.mxu0 %v3636_v26  ;;  %936 = vmatpush1.bf16.msra.mxu1 %v3671_v33 }
 0x450   :  { %896 = vmatprep.subr.bf16.mxu0 %v3644_v28  ;;  %937 = vmatprep.subr.bf16.mxu1 %v3677_v34 }
 0x453   :  { %897 = vmatpush1.bf16.msra.mxu0 %v3663_v32  ;;  %938 = vmatpush1.bf16.msra.mxu1 %v3686_v36 }
 0x454   :  { %1008 = vmatprep.subr.bf16.mxu0 %v3485_v0  ;;  %1049 = vmatprep.subr.bf16.mxu1 %v3517_v6 }
 0x509   :  { %v790_v4 = vpop.f32.mrb[16].mxu0  ;;  %v831_v5 = vpop.f32.mrb[16].mxu1 }
 0x50a   :  { %v838_v7 = vadd.f32 %v2849_v2, %v790_v4  ;;  %v792_v8 = vpop.f32.mrb[17].mxu0  ;;  %v833_v9 = vpop.f32.mrb[17].mxu1  ;;  %v840_v63 = vadd.f32 %v2851_v31, %v831_v5  ;;  %v4024_v5 = vld [vmem:[%s5199_s2] ss:$16 sps:$4 sm:$0xff]  }
 0x50b   :  { %v839_v10 = vadd.f32 %v2850_v3, %v792_v8  ;;  %v794_v11 = vpop.f32.mrb[18].mxu0  ;;  %v835_v12 = vpop.f32.mrb[18].mxu1  ;;  %v841_v27 = vadd.f32 %v2852_v37, %v833_v9  ;;  %v4042_v8 = vld [vmem:[%s5199_s2 + $0x2c] ss:$16 sps:$4 sm:$0xff]   ;;  %v4050_v9 = vld [vmem:[%s5199_s2 + $0x20] ss:$16 sps:$4 sm:$0xff]  }
 0x50c   :  { %v2853_v13 = vmul.f32 -1.442695, %v838_v7  ;;  %v795_v0 = vpop.f32.mrb[19].mxu0  ;;  %v836_v14 = vpop.f32.mrb[19].mxu1  ;;  %v4036_v7 = vld [vmem:[%s5199_s2 + $0x24] ss:$16 sps:$4 sm:$0xff]  }
 0x50d   :  { %v2854_v6 = vmul.f32 -1.442695, %v839_v10  ;;  %v2855_v35 = vmul.f32 -1.442695, %v841_v27  ;;  %v4056_v10 = vld [vmem:[%s5199_s2 + $0x28] ss:$16 sps:$4 sm:$0xff]  }
 0x50e   :  { %3189 = vpow2.f32 %v2853_v13  ;;  %v4062_v11 = vld [vmem:[%s5199_s2 + $0x44] ss:$16 sps:$4 sm:$0xff]   ;;  %v4068_v12 = vld [vmem:[%s5199_s2 + $0x4c] ss:$16 sps:$4 sm:$0xff]   ;;  %v4074_v13 = vld [vmem:[%s5199_s2 + $0x40] ss:$16 sps:$4 sm:$0xff]  }
 0x50f   :  { %3191 = vpow2.f32 %v2854_v6  ;;  %v4081_v0 = vld [vmem:[%s5199_s2 + $0x64] ss:$16 sps:$4 sm:$0xff]   ;;  %v4088_v14 = vld [vmem:[%s5199_s2 + $0x60] ss:$16 sps:$4 sm:$0xff]  }
 0x510   :  { %3193 = vpow2.f32 %v2855_v35  ;;  %v2858_v37 = vld [vmem:[%s5201_s1 + $0xb0] sm:$0xff] }
 0x511   :  { %3195 = vtanh.f32 %v840_v63 }
 0x518   :  { %v3190_v39 = vpop.eup %3189 }
 0x519   :  { %v3192_v41 = vpop.eup %3191  ;;  %v845_v44 = vadd.f32 1.0, %v3190_v39 }
 0x51a   :  { %v851_v46 = vadd.f32 1.0, %v3192_v41  ;;  %v3194_v55 = vpop.eup %3193 }
 0x51b   :  { %3197 = vrcp.f32 %v845_v44  ;;  %v3196_v47 = vpop.eup %3195  ;;  %v858_v53 = vadd.f32 1.0, %v3194_v55 }
 0x51c   :  { %3199 = vrcp.f32 %v851_v46 }
 0x51d   :  { %3201 = vrcp.f32 %v858_v53  ;;  %v4132_v53 = vpop.permute.xlu1 %995 }
 0x51e   :  { %5230 = vst [vmem:[#allocation9_spill] sm:$0xff] %v4132_v53  ;;  %vm997_vm14 = vcmp.eq.s32.totalorder %v4132_v53, 1 }
 0x525   :  { %v3198_v48 = vpop.eup %3197 }
 0x526   :  { %v3200_v50 = vpop.eup %3199  ;;  %v862_v51 = vmul.f32 %v3198_v48, %v3196_v47 }
 0x527   :  { %v861_v54 = vmul.f32 %v3200_v50, %v3950_v49  ;;  %v3202_v59 = vpop.eup %3201 }
 0x529   :  { %v863_v25 = vadd.f32 %v862_v51, %v861_v54 }
 0x52b   :  { %3203 = vtanh.f32 %v863_v25  ;;  %v4012_v38 = vsel %vm871_vm13, %v863_v25, %v3950_v49  ;;  %v4030_v49 = vld [vmem:[%s5199_s2 + $0x8] ss:$16 sps:$4 sm:$0xff]  }
 0x535   :  { %v3204_v62 = vpop.eup %3203 }
 0x536   :  { %v865_v2 = vmul.f32 %v3204_v62, %v3202_v59 }
 0x538   :  { %v4017_v3 = vsel %vm871_vm13, %v865_v2, %v3955_v60 }
 0x539   :  { %v881_v4 = vpack.c.bf16 %v4017_v3, %v4017_v3 }
 0x53b   :  { %915 = vmatmul.mubr.bf16.vlgmr.msra.gmra.mrb[20].mxu0 %v881_v4  ;;  %956 = vmatmul.mubr.bf16.vlgmr.msra.gmra.mrb[20].mxu1 %v881_v4 }
 0x53c   :  { %1009 = vmatpush1.bf16.msra.mxu0 %v4024_v5  ;;  %1050 = vmatpush1.bf16.msra.mxu1 %v4030_v49 }
 0x53d   :  { %1010 = vmatprep.subr.bf16.mxu0 %v4036_v7  ;;  %1051 = vmatprep.subr.bf16.mxu1 %v4042_v8 }
 0x53e   :  { %1040 = vmatprep.mubr.bf16.mxu0 %v5206_v1  ;;  %1081 = vmatprep.mubr.bf16.mxu1 %v5206_v1 }
 0x540   :  { %1011 = vmatpush1.bf16.msra.mxu0 %v4050_v9  ;;  %1052 = vmatpush1.bf16.msra.mxu1 %v4056_v10 }
 0x541   :  { %1012 = vmatprep.subr.bf16.mxu0 %v4062_v11  ;;  %1053 = vmatprep.subr.bf16.mxu1 %v4068_v12 }
 0x544   :  { %1013 = vmatpush1.bf16.msra.mxu0 %v4074_v13  ;;  %1054 = vmatpush1.bf16.msra.mxu1 %v3570_v15  ;;  %v4095_v15 = vld [vmem:[%s5199_s2 + $0x84] ss:$16 sps:$4 sm:$0xff]  }
 0x545   :  { %1014 = vmatprep.subr.bf16.mxu0 %v4081_v0  ;;  %1055 = vmatprep.subr.bf16.mxu1 %v3576_v16  ;;  %v3393_v16 = vld [vmem:[%s5199_s2 + $0x4] ss:$16 sps:$4 sm:$0xff]  }
 0x548   :  { %1015 = vmatpush1.bf16.msra.mxu0 %v4088_v14  ;;  %1056 = vmatpush1.bf16.msra.mxu1 %v3594_v19  ;;  %v2857_v19 = vld [vmem:[%s5201_s1 + $0xa8] sm:$0xff] }
 0x549   :  { %1016 = vmatprep.subr.bf16.mxu0 %v4095_v15  ;;  %1057 = vmatprep.subr.bf16.mxu1 %v3600_v20 }
 0x54c   :  { %1017 = vmatpush1.bf16.msra.mxu0 %v3582_v17  ;;  %1058 = vmatpush1.bf16.msra.mxu1 %v3618_v23  ;;  %v3394_v17 = vld [vmem:[%s5199_s2 + $0xc] ss:$16 sps:$4 sm:$0xff]  }
 0x54d   :  { %1018 = vmatprep.subr.bf16.mxu0 %v3588_v18  ;;  %1059 = vmatprep.subr.bf16.mxu1 %v3624_v24  ;;  %v2856_v18 = vld [vmem:[%s5201_s1 + $0xa0] sm:$0xff] }
 0x550   :  { %1019 = vmatpush1.bf16.msra.mxu0 %v3606_v21  ;;  %1060 = vmatpush1.bf16.msra.mxu1 %v3650_v29 }
 0x551   :  { %1020 = vmatprep.subr.bf16.mxu0 %v3611_v22  ;;  %1061 = vmatprep.subr.bf16.mxu1 %v3656_v30 }
 0x554   :  { %1021 = vmatpush1.bf16.msra.mxu0 %v3636_v26  ;;  %1062 = vmatpush1.bf16.msra.mxu1 %v3671_v33 }
 0x555   :  { %1022 = vmatprep.subr.bf16.mxu0 %v3644_v28  ;;  %1063 = vmatprep.subr.bf16.mxu1 %v3677_v34 }
 0x558   :  { %1023 = vmatpush1.bf16.msra.mxu0 %v3663_v32  ;;  %1064 = vmatpush1.bf16.msra.mxu1 %v3686_v36  ;;  %v2859_v36 = vld [vmem:[%s5201_s1 + $0xb8] sm:$0xff] }
 0x559   :  { %1134 = vmatprep.subr.bf16.mxu0 %v3393_v16  ;;  %1175 = vmatprep.subr.bf16.mxu1 %v3394_v17  ;;  %v3408_v17 = vld [vmem:[%s5199_s2 + $0xc8] ss:$16 sps:$4 sm:$0xff]  }
 0x60e   :  { %v916_v20 = vpop.f32.mrb[20].mxu0  ;;  %v957_v21 = vpop.f32.mrb[20].mxu1 }
 0x60f   :  { %v964_v22 = vadd.f32 %v2856_v18, %v916_v20  ;;  %v918_v23 = vpop.f32.mrb[21].mxu0  ;;  %v959_v24 = vpop.f32.mrb[21].mxu1  ;;  %v966_v31 = vadd.f32 %v2858_v37, %v957_v21  ;;  %v3409_v18 = vld [vmem:[%s5199_s2 + $0xe4] ss:$16 sps:$4 sm:$0xff]   ;;  %v3411_v20 = vld [vmem:[%s5199_s2 + $0xe0] ss:$16 sps:$4 sm:$0xff]  }
 0x610   :  { %v965_v26 = vadd.f32 %v2857_v19, %v918_v23  ;;  %v920_v28 = vpop.f32.mrb[22].mxu0  ;;  %v961_v29 = vpop.f32.mrb[22].mxu1  ;;  %v967_v6 = vadd.f32 %v2859_v36, %v959_v24  ;;  %v3410_v19 = vld [vmem:[%s5199_s2 + $0xec] ss:$16 sps:$4 sm:$0xff]   ;;  %v3412_v21 = vld [vmem:[%s5199_s2 + $0xe8] ss:$16 sps:$4 sm:$0xff]  }
 0x611   :  { %v2860_v30 = vmul.f32 -1.442695, %v964_v22  ;;  %v921_v32 = vpop.f32.mrb[23].mxu0  ;;  %v962_v33 = vpop.f32.mrb[23].mxu1  ;;  %v3031_v22 = vld [vmem:[%s5202_s3 + $0x4] ss:$16 sps:$4 sm:$0xff]  }
 0x612   :  { %v2861_v34 = vmul.f32 -1.442695, %v965_v26  ;;  %v2862_v27 = vmul.f32 -1.442695, %v967_v6  ;;  %v3034_v23 = vld [vmem:[%s5202_s3 + $0xc] ss:$16 sps:$4 sm:$0xff]  }
 0x613   :  { %3205 = vpow2.f32 %v2860_v30  ;;  %v2863_v24 = vld [vmem:[%s5201_s1 + $0xc0] sm:$0xff]  ;;  %v2864_v26 = vld [vmem:[%s5201_s1 + $0xc8] sm:$0xff] }
 0x614   :  { %3207 = vpow2.f32 %v2861_v34 }
 0x615   :  { %3209 = vpow2.f32 %v2862_v27 }
 0x616   :  { %3211 = vtanh.f32 %v966_v31 }
 0x61d   :  { %v3206_v35 = vpop.eup %3205 }
 0x61e   :  { %v3208_v63 = vpop.eup %3207  ;;  %v971_v39 = vadd.f32 1.0, %v3206_v35 }
 0x61f   :  { %v977_v41 = vadd.f32 1.0, %v3208_v63  ;;  %v3210_v44 = vpop.eup %3209  ;;  %v2866_v63 = vld [vmem:[%s5201_s1 + $0xd8] sm:$0xff] }
 0x620   :  { %3213 = vrcp.f32 %v971_v39  ;;  %v3212_v46 = vpop.eup %3211  ;;  %v984_v50 = vadd.f32 1.0, %v3210_v44 }
 0x621   :  { %3215 = vrcp.f32 %v977_v41  ;;  %v2865_v41 = vld [vmem:[%s5201_s1 + $0xd0] sm:$0xff] }
 0x622   :  { %3217 = vrcp.f32 %v984_v50 }
 0x62a   :  { %v3214_v55 = vpop.eup %3213 }
 0x62b   :  { %v3216_v47 = vpop.eup %3215  ;;  %v988_v48 = vmul.f32 %v3214_v55, %v3212_v46 }
 0x62c   :  { %v987_v51 = vmul.f32 %v3216_v47, %v4012_v38  ;;  %v3218_v59 = vpop.eup %3217 }
 0x62e   :  { %v989_v54 = vadd.f32 %v988_v48, %v987_v51 }
 0x630   :  { %3219 = vtanh.f32 %v989_v54  ;;  %v4138_v25 = vsel %vm997_vm14, %v989_v54, %v4012_v38  ;;  %v3395_v38 = vld [vmem:[%s5199_s2 + $0x48] ss:$16 sps:$4 sm:$0xff]  }
 0x63a   :  { %v3220_v62 = vpop.eup %3219 }
 0x63b   :  { %v991_v2 = vmul.f32 %v3220_v62, %v3218_v59 }
 0x63d   :  { %v4143_v4 = vsel %vm997_vm14, %v991_v2, %v4017_v3 }
 0x63e   :  { %v1007_v16 = vpack.c.bf16 %v4143_v4, %v4143_v4 }
 0x640   :  { %1041 = vmatmul.mubr.bf16.vlgmr.msra.gmra.mrb[24].mxu0 %v1007_v16  ;;  %1082 = vmatmul.mubr.bf16.vlgmr.msra.gmra.mrb[24].mxu1 %v1007_v16 }
 0x641   :  { %1135 = vmatpush1.bf16.msra.mxu0 %v4024_v5  ;;  %1176 = vmatpush1.bf16.msra.mxu1 %v4030_v49  ;;  %v3396_v5 = vld [vmem:[%s5199_s2 + $0x6c] ss:$16 sps:$4 sm:$0xff]   ;;  %v3397_v49 = vld [vmem:[%s5199_s2 + $0x68] ss:$16 sps:$4 sm:$0xff]  }
 0x642   :  { %1136 = vmatprep.subr.bf16.mxu0 %v4036_v7  ;;  %1177 = vmatprep.subr.bf16.mxu1 %v4042_v8  ;;  %v3398_v7 = vld [vmem:[%s5199_s2 + $0x8c] ss:$16 sps:$4 sm:$0xff]   ;;  %v3399_v8 = vld [vmem:[%s5199_s2 + $0x80] ss:$16 sps:$4 sm:$0xff]  }
 0x643   :  { %1166 = vmatprep.mubr.bf16.mxu0 %v5206_v1  ;;  %1207 = vmatprep.mubr.bf16.mxu1 %v5206_v1 }
 0x645   :  { %1137 = vmatpush1.bf16.msra.mxu0 %v4050_v9  ;;  %1178 = vmatpush1.bf16.msra.mxu1 %v4056_v10  ;;  %v3400_v9 = vld [vmem:[%s5199_s2 + $0x88] ss:$16 sps:$4 sm:$0xff]   ;;  %v3401_v10 = vld [vmem:[%s5199_s2 + $0xa4] ss:$16 sps:$4 sm:$0xff]  }
 0x646   :  { %1138 = vmatprep.subr.bf16.mxu0 %v4062_v11  ;;  %1179 = vmatprep.subr.bf16.mxu1 %v4068_v12  ;;  %v3402_v11 = vld [vmem:[%s5199_s2 + $0xac] ss:$16 sps:$4 sm:$0xff]   ;;  %v3403_v12 = vld [vmem:[%s5199_s2 + $0xa0] ss:$16 sps:$4 sm:$0xff]  }
 0x649   :  { %1139 = vmatpush1.bf16.msra.mxu0 %v4074_v13  ;;  %1180 = vmatpush1.bf16.msra.mxu1 %v3395_v38  ;;  %v3404_v13 = vld [vmem:[%s5199_s2 + $0xa8] ss:$16 sps:$4 sm:$0xff]   ;;  %v4233_v38 = vpop.permute.xlu0 %1121 }
 0x64a   :  { %1140 = vmatprep.subr.bf16.mxu0 %v4081_v0  ;;  %1181 = vmatprep.subr.bf16.mxu1 %v3396_v5  ;;  %v3405_v0 = vld [vmem:[%s5199_s2 + $0xc4] ss:$16 sps:$4 sm:$0xff]   ;;  %5231 = vst [vmem:[#allocation10_spill] sm:$0xff] %v4233_v38  ;;  %vm1123_vm15 = vcmp.eq.s32.totalorder %v4233_v38, 1 }
 0x64d   :  { %1141 = vmatpush1.bf16.msra.mxu0 %v4088_v14  ;;  %1182 = vmatpush1.bf16.msra.mxu1 %v3397_v49  ;;  %v3406_v14 = vld [vmem:[%s5199_s2 + $0xcc] ss:$16 sps:$4 sm:$0xff]  }
 0x64e   :  { %1142 = vmatprep.subr.bf16.mxu0 %v4095_v15  ;;  %1183 = vmatprep.subr.bf16.mxu1 %v3398_v7  ;;  %v3407_v15 = vld [vmem:[%s5199_s2 + $0xc0] ss:$16 sps:$4 sm:$0xff]  }
 0x651   :  { %1143 = vmatpush1.bf16.msra.mxu0 %v3399_v8  ;;  %1184 = vmatpush1.bf16.msra.mxu1 %v3400_v9 }
 0x652   :  { %1144 = vmatprep.subr.bf16.mxu0 %v3401_v10  ;;  %1185 = vmatprep.subr.bf16.mxu1 %v3402_v11  ;;  %v3029_v11 = vld [vmem:[%s5202_s3] ss:$16 sps:$4 sm:$0xff]  }
 0x655   :  { %1145 = vmatpush1.bf16.msra.mxu0 %v3403_v12  ;;  %1186 = vmatpush1.bf16.msra.mxu1 %v3404_v13  ;;  %v3032_v12 = vld [vmem:[%s5202_s3 + $0x8] ss:$16 sps:$4 sm:$0xff]  }
 0x656   :  { %1146 = vmatprep.subr.bf16.mxu0 %v3405_v0  ;;  %1187 = vmatprep.subr.bf16.mxu1 %v3406_v14  ;;  %v3037_v0 = vld [vmem:[%s5202_s3 + $0x24] ss:$16 sps:$4 sm:$0xff]   ;;  %v3040_v14 = vld [vmem:[%s5202_s3 + $0x2c] ss:$16 sps:$4 sm:$0xff]  }
 0x659   :  { %1147 = vmatpush1.bf16.msra.mxu0 %v3407_v15  ;;  %1188 = vmatpush1.bf16.msra.mxu1 %v3408_v17  ;;  %v3035_v15 = vld [vmem:[%s5202_s3 + $0x20] ss:$16 sps:$4 sm:$0xff]   ;;  %v3038_v17 = vld [vmem:[%s5202_s3 + $0x28] ss:$16 sps:$4 sm:$0xff]  }
 0x65a   :  { %1148 = vmatprep.subr.bf16.mxu0 %v3409_v18  ;;  %1189 = vmatprep.subr.bf16.mxu1 %v3410_v19  ;;  %v3043_v18 = vld [vmem:[%s5202_s3 + $0x44] ss:$16 sps:$4 sm:$0xff]   ;;  %v3046_v19 = vld [vmem:[%s5202_s3 + $0x4c] ss:$16 sps:$4 sm:$0xff]  }
 0x65d   :  { %1149 = vmatpush1.bf16.msra.mxu0 %v3411_v20  ;;  %1190 = vmatpush1.bf16.msra.mxu1 %v3412_v21  ;;  %v3041_v20 = vld [vmem:[%s5202_s3 + $0x40] ss:$16 sps:$4 sm:$0xff]   ;;  %v3044_v21 = vld [vmem:[%s5202_s3 + $0x48] ss:$16 sps:$4 sm:$0xff]  }
 0x65e   :  { %1479 = vmatprep.subr.bf16.mxu0 %v3031_v22  ;;  %1552 = vmatprep.subr.bf16.mxu1 %v3034_v23  ;;  %v3049_v22 = vld [vmem:[%s5202_s3 + $0x64] ss:$16 sps:$4 sm:$0xff]   ;;  %v3052_v23 = vld [vmem:[%s5202_s3 + $0x6c] ss:$16 sps:$4 sm:$0xff]  }
 0x713   :  { %v1042_v28 = vpop.f32.mrb[24].mxu0  ;;  %v1083_v29 = vpop.f32.mrb[24].mxu1 }
 0x714   :  { %v1090_v30 = vadd.f32 %v2863_v24, %v1042_v28  ;;  %v1044_v32 = vpop.f32.mrb[25].mxu0  ;;  %v1085_v33 = vpop.f32.mrb[25].mxu1  ;;  %v1092_v46 = vadd.f32 %v2865_v41, %v1083_v29  ;;  %v3047_v24 = vld [vmem:[%s5202_s3 + $0x60] ss:$16 sps:$4 sm:$0xff]   ;;  %v3055_v28 = vld [vmem:[%s5202_s3 + $0x84] ss:$16 sps:$4 sm:$0xff]  }
 0x715   :  { %v1091_v34 = vadd.f32 %v2864_v26, %v1044_v32  ;;  %v1046_v36 = vpop.f32.mrb[26].mxu0  ;;  %v1087_v6 = vpop.f32.mrb[26].mxu1  ;;  %v1093_v39 = vadd.f32 %v2866_v63, %v1085_v33  ;;  %v3050_v26 = vld [vmem:[%s5202_s3 + $0x68] ss:$16 sps:$4 sm:$0xff]   ;;  %v3058_v29 = vld [vmem:[%s5202_s3 + $0x8c] ss:$16 sps:$4 sm:$0xff]  }
 0x716   :  { %v2867_v37 = vmul.f32 -1.442695, %v1090_v30  ;;  %v1047_v27 = vpop.f32.mrb[27].mxu0  ;;  %v1088_v31 = vpop.f32.mrb[27].mxu1  ;;  %v3053_v30 = vld [vmem:[%s5202_s3 + $0x80] ss:$16 sps:$4 sm:$0xff]  }
 0x717   :  { %v2868_v35 = vmul.f32 -1.442695, %v1091_v34  ;;  %v2869_v44 = vmul.f32 -1.442695, %v1093_v39  ;;  %v3056_v32 = vld [vmem:[%s5202_s3 + $0x88] ss:$16 sps:$4 sm:$0xff]  }
 0x718   :  { %3221 = vpow2.f32 %v2867_v37  ;;  %v3061_v33 = vld [vmem:[%s5202_s3 + $0xa4] ss:$16 sps:$4 sm:$0xff]   ;;  %v3064_v34 = vld [vmem:[%s5202_s3 + $0xac] ss:$16 sps:$4 sm:$0xff]   ;;  %v3059_v36 = vld [vmem:[%s5202_s3 + $0xa0] ss:$16 sps:$4 sm:$0xff]  }
 0x719   :  { %3223 = vpow2.f32 %v2868_v35  ;;  %v3062_v6 = vld [vmem:[%s5202_s3 + $0xa8] ss:$16 sps:$4 sm:$0xff]   ;;  %v3067_v37 = vld [vmem:[%s5202_s3 + $0xc4] ss:$16 sps:$4 sm:$0xff]   ;;  %v3070_v27 = vld [vmem:[%s5202_s3 + $0xcc] ss:$16 sps:$4 sm:$0xff]  }
 0x71a   :  { %3225 = vpow2.f32 %v2869_v44  ;;  %v3065_v31 = vld [vmem:[%s5202_s3 + $0xc0] ss:$16 sps:$4 sm:$0xff]   ;;  %v3068_v35 = vld [vmem:[%s5202_s3 + $0xc8] ss:$16 sps:$4 sm:$0xff]   ;;  %v3073_v63 = vld [vmem:[%s5202_s3 + $0xe4] ss:$16 sps:$4 sm:$0xff]  }
 0x71b   :  { %3227 = vtanh.f32 %v1092_v46  ;;  %v3076_v39 = vld [vmem:[%s5202_s3 + $0xec] ss:$16 sps:$4 sm:$0xff]   ;;  %v3071_v41 = vld [vmem:[%s5202_s3 + $0xe0] ss:$16 sps:$4 sm:$0xff]   ;;  %v3074_v44 = vld [vmem:[%s5202_s3 + $0xe8] ss:$16 sps:$4 sm:$0xff]   ;;  %v2972_v46 = vpack.c.bf16 %v3831_v58, %v3746_v42  ;;  %v1263_v42 = vpack.c.bf16 %v4143_v4, %v4017_v3 }
 0x71c   :  { %v4358_v58 = vld [vmem:[%s5203_s4 + $0x4] ss:$16 sps:$4 sm:$0xff]   ;;  %v4374_v3 = vld [vmem:[%s5203_s4 + $0x8] ss:$16 sps:$4 sm:$0xff]  }
 0x722   :  { %v3222_v55 = vpop.eup %3221 }
 0x723   :  { %v3224_v47 = vpop.eup %3223  ;;  %v1097_v48 = vadd.f32 1.0, %v3222_v55  ;;  %v1262_v55 = vpack.c.bf16 %v3955_v60, %v3893_v45  ;;  %v4363_v45 = vld [vmem:[%s5203_s4] ss:$16 sps:$4 sm:$0xff]   ;;  %v4369_v60 = vld [vmem:[%s5203_s4 + $0xc] ss:$16 sps:$4 sm:$0xff]  }
 0x724   :  { %v1103_v50 = vadd.f32 1.0, %v3224_v47  ;;  %v3226_v51 = vpop.eup %3225  ;;  %v4386_v47 = vld [vmem:[%s5203_s4 + $0x2c] ss:$16 sps:$4 sm:$0xff]  }
 0x725   :  { %3229 = vrcp.f32 %v1097_v48  ;;  %v3228_v54 = vpop.eup %3227  ;;  %v1110_v16 = vadd.f32 1.0, %v3226_v51  ;;  %v4392_v48 = vld [vmem:[%s5203_s4 + $0x20] ss:$16 sps:$4 sm:$0xff]   ;;  %v4405_v51 = vld [vmem:[%s5203_s4 + $0x44] ss:$16 sps:$4 sm:$0xff]  }
 0x726   :  { %3231 = vrcp.f32 %v1103_v50  ;;  %v4397_v50 = vld [vmem:[%s5203_s4 + $0x28] ss:$16 sps:$4 sm:$0xff]  }
 0x727   :  { %3233 = vrcp.f32 %v1110_v16  ;;  %v4434_v16 = vld [vmem:[%s5203_s4 + $0x60] ss:$16 sps:$4 sm:$0xff]  }
 0x72f   :  { %v3230_v59 = vpop.eup %3229 }
 0x730   :  { %v3232_v62 = vpop.eup %3231  ;;  %v1114_v2 = vmul.f32 %v3230_v59, %v3228_v54  ;;  %v4410_v54 = vld [vmem:[%s5203_s4 + $0x4c] ss:$16 sps:$4 sm:$0xff]   ;;  %v4416_v59 = vld [vmem:[%s5203_s4 + $0x40] ss:$16 sps:$4 sm:$0xff]  }
 0x731   :  { %v1113_v5 = vmul.f32 %v3232_v62, %v4138_v25  ;;  %v3234_v8 = vpop.eup %3233  ;;  %v4421_v62 = vld [vmem:[%s5203_s4 + $0x48] ss:$16 sps:$4 sm:$0xff]  }
 0x733   :  { %v1115_v49 = vadd.f32 %v1114_v2, %v1113_v5  ;;  %v4429_v2 = vld [vmem:[%s5203_s4 + $0x64] ss:$16 sps:$4 sm:$0xff]   ;;  %v4439_v5 = vld [vmem:[%s5203_s4 + $0x6c] ss:$16 sps:$4 sm:$0xff]  }
 0x735   :  { %3235 = vtanh.f32 %v1115_v49  ;;  %v4240_v7 = vsel %vm1123_vm15, %v1115_v49, %v4138_v25  ;;  %v4446_v49 = vld [vmem:[%s5203_s4 + $0x68] ss:$16 sps:$4 sm:$0xff]  }
 0x73f   :  { %v3236_v9 = vpop.eup %3235 }
 0x740   :  { %v1117_v10 = vmul.f32 %v3236_v9, %v3234_v8  ;;  %v4453_v8 = vld [vmem:[%s5203_s4 + $0x84] ss:$16 sps:$4 sm:$0xff]   ;;  %v4458_v9 = vld [vmem:[%s5203_s4 + $0x8c] ss:$16 sps:$4 sm:$0xff]  }
 0x742   :  { %v4251_v13 = vsel %vm1123_vm15, %v1117_v10, %v4143_v4  ;;  %v4381_v4 = vld [vmem:[%s5203_s4 + $0x24] ss:$16 sps:$4 sm:$0xff]   ;;  %v4464_v10 = vld [vmem:[%s5203_s4 + $0x80] ss:$16 sps:$4 sm:$0xff]  }
 0x743   :  { %v1133_v25 = vpack.c.bf16 %v4251_v13, %v4251_v13 }
 0x745   :  { %1167 = vmatmul.mubr.bf16.vlgmr.msra.gmra.mrb[28].mxu0 %v1133_v25  ;;  %1208 = vmatmul.mubr.bf16.vlgmr.msra.gmra.mrb[28].mxu1 %v1133_v25  ;;  %v4482_v25 = vld [vmem:[%s5203_s4 + $0xa0] ss:$16 sps:$4 sm:$0xff]  }
 0x746   :  { %1480 = vmatpush1.bf16.msra.mxu0 %v3029_v11  ;;  %1553 = vmatpush1.bf16.msra.mxu1 %v3032_v12  ;;  %v4469_v11 = vld [vmem:[%s5203_s4 + $0x88] ss:$16 sps:$4 sm:$0xff]   ;;  %v4477_v12 = vld [vmem:[%s5203_s4 + $0xa4] ss:$16 sps:$4 sm:$0xff]  }
 0x747   :  { %1481 = vmatprep.subr.bf16.mxu0 %v3037_v0  ;;  %1554 = vmatprep.subr.bf16.mxu1 %v3040_v14  ;;  %v4487_v0 = vld [vmem:[%s5203_s4 + $0xac] ss:$16 sps:$4 sm:$0xff]   ;;  %v4494_v14 = vld [vmem:[%s5203_s4 + $0xa8] ss:$16 sps:$4 sm:$0xff]  }
 0x748   :  { %1511 = vmatprep.mubr.bf16.mxu0 %v5206_v1  ;;  %1584 = vmatprep.mubr.bf16.mxu1 %v5206_v1 }
 0x74a   :  { %1482 = vmatpush1.bf16.msra.mxu0 %v3035_v15  ;;  %1555 = vmatpush1.bf16.msra.mxu1 %v3038_v17  ;;  %v4501_v15 = vld [vmem:[%s5203_s4 + $0xc4] ss:$16 sps:$4 sm:$0xff]   ;;  %v4506_v17 = vld [vmem:[%s5203_s4 + $0xcc] ss:$16 sps:$4 sm:$0xff]  }
 0x74b   :  { %1483 = vmatprep.subr.bf16.mxu0 %v3043_v18  ;;  %1556 = vmatprep.subr.bf16.mxu1 %v3046_v19  ;;  %v4512_v18 = vld [vmem:[%s5203_s4 + $0xc0] ss:$16 sps:$4 sm:$0xff]   ;;  %v4517_v19 = vld [vmem:[%s5203_s4 + $0xc8] ss:$16 sps:$4 sm:$0xff]  }
 0x74e   :  { %1484 = vmatpush1.bf16.msra.mxu0 %v3041_v20  ;;  %1557 = vmatpush1.bf16.msra.mxu1 %v3044_v21  ;;  %v4525_v20 = vld [vmem:[%s5203_s4 + $0xe4] ss:$16 sps:$4 sm:$0xff]   ;;  %v4530_v21 = vld [vmem:[%s5203_s4 + $0xe0] ss:$16 sps:$4 sm:$0xff]  }
 0x74f   :  { %1485 = vmatprep.subr.bf16.mxu0 %v3049_v22  ;;  %1558 = vmatprep.subr.bf16.mxu1 %v3052_v23  ;;  %v4535_v22 = vld [vmem:[%s5203_s4 + $0xec] ss:$16 sps:$4 sm:$0xff]   ;;  %v4542_v23 = vld [vmem:[%s5203_s4 + $0xe8] ss:$16 sps:$4 sm:$0xff]  }
 0x752   :  { %1486 = vmatpush1.bf16.msra.mxu0 %v3047_v24  ;;  %1559 = vmatpush1.bf16.msra.mxu1 %v3050_v26  ;;  %v2870_v24 = vld [vmem:[%s5201_s1 + $0xe0] sm:$0xff]  ;;  %v2871_v26 = vld [vmem:[%s5201_s1 + $0xe8] sm:$0xff] }
 0x753   :  { %1487 = vmatprep.subr.bf16.mxu0 %v3055_v28  ;;  %1560 = vmatprep.subr.bf16.mxu1 %v3058_v29 }
 0x756   :  { %1488 = vmatpush1.bf16.msra.mxu0 %v3053_v30  ;;  %1561 = vmatpush1.bf16.msra.mxu1 %v3056_v32 }
 0x757   :  { %1489 = vmatprep.subr.bf16.mxu0 %v3061_v33  ;;  %1562 = vmatprep.subr.bf16.mxu1 %v3064_v34 }
 0x75a   :  { %1490 = vmatpush1.bf16.msra.mxu0 %v3059_v36  ;;  %1563 = vmatpush1.bf16.msra.mxu1 %v3062_v6 }
 0x75b   :  { %1491 = vmatprep.subr.bf16.mxu0 %v3067_v37  ;;  %1564 = vmatprep.subr.bf16.mxu1 %v3070_v27 }
 0x75e   :  { %1492 = vmatpush1.bf16.msra.mxu0 %v3065_v31  ;;  %1565 = vmatpush1.bf16.msra.mxu1 %v3068_v35 }
 0x75f   :  { %1493 = vmatprep.subr.bf16.mxu0 %v3073_v63  ;;  %1566 = vmatprep.subr.bf16.mxu1 %v3076_v39  ;;  %v2873_v63 = vld [vmem:[%s5201_s1 + $0xf8] sm:$0xff] }
 0x762   :  { %1494 = vmatpush1.bf16.msra.mxu0 %v3071_v41  ;;  %1567 = vmatpush1.bf16.msra.mxu1 %v3074_v44  ;;  %v2872_v41 = vld [vmem:[%s5201_s1 + $0xf0] sm:$0xff] }
 0x763   :  { %1824 = vmatprep.subr.bf16.mxu0 %v4358_v58  ;;  %1865 = vmatprep.subr.bf16.mxu1 %v4369_v60 }
 0x765   :  { %2973 = vmatmul.mubr.msk.bf16.vlgmr.msra.gmra.mrb[32].mxu0 %vm2971_vm1, %v2972_v46  ;;  %2976 = vmatmul.mubr.msk.bf16.vlgmr.msra.gmra.mrb[32].mxu1 %vm2971_vm1, %v2972_v46 }
 0x766   :  { %1521 = vmatprep.mubr.bf16.mxu0 %v5206_v1  ;;  %1594 = vmatprep.mubr.bf16.mxu1 %v5206_v1 }
 0x767   :  { %1825 = vmatpush1.bf16.msra.mxu0 %v4363_v45  ;;  %1866 = vmatpush1.bf16.msra.mxu1 %v4374_v3 }
 0x768   :  { %1826 = vmatprep.subr.bf16.mxu0 %v4381_v4  ;;  %1867 = vmatprep.subr.bf16.mxu1 %v4386_v47 }
 0x76b   :  { %1827 = vmatpush1.bf16.msra.mxu0 %v4392_v48  ;;  %1868 = vmatpush1.bf16.msra.mxu1 %v4397_v50 }
 0x76c   :  { %1828 = vmatprep.subr.bf16.mxu0 %v4405_v51  ;;  %1869 = vmatprep.subr.bf16.mxu1 %v4410_v54 }
 0x76d   :  { %1522 = vmatmul.mubr.bf16.gmra.mrb[36].mxu0 %v1262_v55  ;;  %1595 = vmatmul.mubr.bf16.gmra.mrb[36].mxu1 %v1262_v55 }
 0x76e   :  { %1531 = vmatprep.mubr.bf16.mxu0 %v5206_v1  ;;  %1604 = vmatprep.mubr.bf16.mxu1 %v5206_v1 }
 0x76f   :  { %1829 = vmatpush1.bf16.msra.mxu0 %v4416_v59  ;;  %1870 = vmatpush1.bf16.msra.mxu1 %v4421_v62 }
 0x770   :  { %1830 = vmatprep.subr.bf16.mxu0 %v4429_v2  ;;  %1871 = vmatprep.subr.bf16.mxu1 %v4439_v5 }
 0x773   :  { %1831 = vmatpush1.bf16.msra.mxu0 %v4434_v16  ;;  %1872 = vmatpush1.bf16.msra.mxu1 %v4446_v49 }
 0x774   :  { %1832 = vmatprep.subr.bf16.mxu0 %v4453_v8  ;;  %1873 = vmatprep.subr.bf16.mxu1 %v4458_v9 }
 0x775   :  { %1532 = vmatmul.mubr.bf16.gmra.mrb[40].mxu0 %v1263_v42  ;;  %1605 = vmatmul.mubr.bf16.gmra.mrb[40].mxu1 %v1263_v42 }
 0x776   :  { %1541 = vmatprep.mubr.bf16.mxu0 %v5206_v1  ;;  %1614 = vmatprep.mubr.bf16.mxu1 %v5206_v1 }
 0x777   :  { %1833 = vmatpush1.bf16.msra.mxu0 %v4464_v10  ;;  %1874 = vmatpush1.bf16.msra.mxu1 %v4469_v11 }
 0x778   :  { %1834 = vmatprep.subr.bf16.mxu0 %v4477_v12  ;;  %1875 = vmatprep.subr.bf16.mxu1 %v4487_v0 }
 0x77b   :  { %1835 = vmatpush1.bf16.msra.mxu0 %v4482_v25  ;;  %1876 = vmatpush1.bf16.msra.mxu1 %v4494_v14 }
 0x77c   :  { %1836 = vmatprep.subr.bf16.mxu0 %v4501_v15  ;;  %1877 = vmatprep.subr.bf16.mxu1 %v4506_v17 }
 0x77f   :  { %1837 = vmatpush1.bf16.msra.mxu0 %v4512_v18  ;;  %1878 = vmatpush1.bf16.msra.mxu1 %v4517_v19 }
 0x780   :  { %1838 = vmatprep.subr.bf16.mxu0 %v4525_v20  ;;  %1879 = vmatprep.subr.bf16.mxu1 %v4535_v22 }
 0x783   :  { %1839 = vmatpush1.bf16.msra.mxu0 %v4530_v21  ;;  %1880 = vmatpush1.bf16.msra.mxu1 %v4542_v23 }
 0x784   :  { %1944 = vmatprep.subr.bf16.mxu0 %v4358_v58  ;;  %1985 = vmatprep.subr.bf16.mxu1 %v4369_v60 }
 0x818   :  { %v1168_v28 = vpop.f32.mrb[28].mxu0  ;;  %v1209_v29 = vpop.f32.mrb[28].mxu1 }
 0x819   :  { %v1216_v30 = vadd.f32 %v2870_v24, %v1168_v28  ;;  %v1170_v32 = vpop.f32.mrb[29].mxu0  ;;  %v1211_v33 = vpop.f32.mrb[29].mxu1  ;;  %v1218_v46 = vadd.f32 %v2872_v41, %v1209_v29 }
 0x81a   :  { %v1217_v34 = vadd.f32 %v2871_v26, %v1170_v32  ;;  %v1172_v36 = vpop.f32.mrb[30].mxu0  ;;  %v1213_v6 = vpop.f32.mrb[30].mxu1  ;;  %v1219_v39 = vadd.f32 %v2873_v63, %v1211_v33 }
 0x81b   :  { %v2874_v37 = vmul.f32 -1.442695, %v1216_v30  ;;  %v1173_v27 = vpop.f32.mrb[31].mxu0  ;;  %v1214_v31 = vpop.f32.mrb[31].mxu1 }
 0x81c   :  { %v2875_v35 = vmul.f32 -1.442695, %v1217_v34  ;;  %v2876_v44 = vmul.f32 -1.442695, %v1219_v39 }
 0x81d   :  { %3237 = vpow2.f32 %v2874_v37 }
 0x81e   :  { %3239 = vpow2.f32 %v2875_v35 }
 0x81f   :  { %3241 = vpow2.f32 %v2876_v44 }
 0x820   :  { %3243 = vtanh.f32 %v1218_v46 }
 0x827   :  { %v3238_v55 = vpop.eup %3237 }
 0x828   :  { %v3240_v42 = vpop.eup %3239  ;;  %v1223_v24 = vadd.f32 1.0, %v3238_v55 }
 0x829   :  { %v1229_v26 = vadd.f32 1.0, %v3240_v42  ;;  %v3242_v28 = vpop.eup %3241 }
 0x82a   :  { %3245 = vrcp.f32 %v1223_v24  ;;  %v3244_v30 = vpop.eup %3243  ;;  %v1236_v33 = vadd.f32 1.0, %v3242_v28 }
 0x82b   :  { %3247 = vrcp.f32 %v1229_v26 }
 0x82c   :  { %3249 = vrcp.f32 %v1236_v33 }
 0x834   :  { %v3246_v32 = vpop.eup %3245 }
 0x835   :  { %v3248_v34 = vpop.eup %3247  ;;  %v1240_v36 = vmul.f32 %v3246_v32, %v3244_v30 }
 0x836   :  { %v1239_v6 = vmul.f32 %v3248_v34, %v4240_v7  ;;  %v4578_v7 = vpop.permute.xlu1 %1247  ;;  %v3250_v30 = vpop.eup %3249 }
 0x837   :  { %5232 = vst [vmem:[#allocation11_spill] sm:$0xff] %v4578_v7  ;;  %vm1249_vm2 = vcmp.eq.s32.totalorder %v4578_v7, 1 }
 0x838   :  { %v1241_v37 = vadd.f32 %v1240_v36, %v1239_v6  ;;  %v4562_v27 = vpop.f32.mrb[32].mxu0  ;;  %v4564_v29 = vpop.f32.mrb[32].mxu1 }
 0x839   :  { %v4566_v31 = vpop.f32.mrb[33].mxu0  ;;  %v4568_v35 = vpop.f32.mrb[33].mxu1 }
 0x83a   :  { %3251 = vtanh.f32 %v1241_v37  ;;  %v4570_v63 = vpop.f32.mrb[34].mxu0  ;;  %v4572_v39 = vpop.f32.mrb[34].mxu1 }
 0x83b   :  { %v4574_v41 = vpop.f32.mrb[35].mxu0  ;;  %v4576_v44 = vpop.f32.mrb[35].mxu1 }
 0x840   :  { %v4580_v46 = vpop.f32.mrb[36].mxu0  ;;  %v4582_v55 = vpop.f32.mrb[36].mxu1 }
 0x841   :  { %5233 = vst [vmem:[#allocation12_spill] sm:$0xff] %v4580_v46  ;;  %5234 = vst [vmem:[#allocation13_spill] sm:$0xff] %v4582_v55  ;;  %v4584_v42 = vpop.f32.mrb[37].mxu0  ;;  %v4586_v24 = vpop.f32.mrb[37].mxu1 }
 0x842   :  { %5235 = vst [vmem:[#allocation14_spill] sm:$0xff] %v4584_v42  ;;  %5236 = vst [vmem:[#allocation15_spill] sm:$0xff] %v4586_v24  ;;  %v4588_v26 = vpop.f32.mrb[38].mxu0  ;;  %v4590_v28 = vpop.f32.mrb[38].mxu1 }
 0x843   :  { %5237 = vst [vmem:[#allocation16_spill] sm:$0xff] %v4588_v26  ;;  %5238 = vst [vmem:[#allocation17_spill] sm:$0xff] %v4590_v28  ;;  %v4592_v32 = vpop.f32.mrb[39].mxu0  ;;  %v4594_v34 = vpop.f32.mrb[39].mxu1 }
 0x844   :  { %5239 = vst [vmem:[#allocation18_spill] sm:$0xff] %v4592_v32  ;;  %5240 = vst [vmem:[#allocation19_spill] sm:$0xff] %v4594_v34  ;;  %v3252_v36 = vpop.eup %3251 }
 0x845   :  { %v1243_v33 = vmul.f32 %v3252_v36, %v3250_v30 }
 0x847   :  { %v1250_v6 = vsel %vm1249_vm2, %v1243_v33, %v4251_v13  ;;  %v5249_v33 = vmov 0  }
 0x848   :  { %v4600_v37 = vpop.f32.mrb[40].mxu0  ;;  %v4602_v1 = vpop.f32.mrb[40].mxu1  ;;  %v1264_v38 = vpack.c.bf16 %v1250_v6, %v4251_v13 }
 0x849   :  { %5241 = vst [vmem:[#allocation20_spill] sm:$0xff] %v4600_v37  ;;  %5242 = vst [vmem:[#allocation21_spill] sm:$0xff] %v4602_v1  ;;  %v4605_v53 = vpop.f32.mrb[41].mxu0  ;;  %v4607_v57 = vpop.f32.mrb[41].mxu1 }
 0x84a   :  { %5243 = vst [vmem:[#allocation22_spill] sm:$0xff] %v4605_v53  ;;  %5244 = vst [vmem:[#allocation23_spill] sm:$0xff] %v4607_v57  ;;  %v4609_v56 = vpop.f32.mrb[42].mxu0  ;;  %v4611_v34 = vpop.f32.mrb[42].mxu1  ;;  %1542 = vmatmul.mubr.bf16.gmra.mrb[44].mxu0 %v1264_v38  ;;  %1615 = vmatmul.mubr.bf16.gmra.mrb[44].mxu1 %v1264_v38  ;;  %v1299_v38 = vlaneseq }
 0x84b   :  { %5245 = vst [vmem:[#allocation24_spill] sm:$0xff] %v4609_v56  ;;  %5246 = vst [vmem:[#allocation25_spill] sm:$0xff] %v4611_v34  ;;  %v4613_v30 = vpop.f32.mrb[43].mxu0  ;;  %v4615_v36 = vpop.f32.mrb[43].mxu1  ;;  %1856 = vmatprep.mubr.bf16.mxu0 %v5249_v33  ;;  %1897 = vmatprep.mubr.bf16.mxu1 %v5249_v33 }
 0x84c   :  { %5247 = vst [vmem:[#allocation26_spill] sm:$0xff] %v4613_v30  ;;  %5248 = vst [vmem:[#allocation27_spill] sm:$0xff] %v4615_v36  ;;  %v1300_v13 = vshrl.u32 %v1299_v38, 7  ;;  %v1297_v36 = vld [vmem:[%s5204_s5] sm:$0xf] }
 0x84e   :  { %v1301_v6 = vsub.s32 0, %v1300_v13  ;;  %v1309_v7 = vsub.s32 2, %v1300_v13  ;;  %v1305_v30 = vsub.s32 1, %v1300_v13  ;;  %v1313_v34 = vsub.s32 3, %v1300_v13 }
 0x850   :  { %v4670_v38 = vrot.slane %v1297_v36, %v1301_v6  ;;  %v4672_v28 = vrot.slane %v1297_v36, %v1309_v7  ;;  %v4678_v13 = vrot.slane %v1297_v36, %v1305_v30 }
 0x852   :  { %1857 = vmatmul.mubr.bf16.vlgmr.msra.gmra.mrb[48].mxu0 %v5249_v33  ;;  %1898 = vmatmul.mubr.bf16.vlgmr.msra.gmra.mrb[48].mxu1 %v5249_v33  ;;  %v1516_v6 = vadd.f32 %v4566_v31, %v4678_v13  ;;  %v1518_v43 = vadd.f32 %v4570_v63, %v4670_v38 }
 0x853   :  { %1945 = vmatpush1.bf16.msra.mxu0 %v4363_v45  ;;  %1986 = vmatpush1.bf16.msra.mxu1 %v4374_v3 }
 0x854   :  { %1946 = vmatprep.subr.bf16.mxu0 %v4381_v4  ;;  %1987 = vmatprep.subr.bf16.mxu1 %v4386_v47 }
 0x855   :  { %1976 = vmatprep.mubr.bf16.mxu0 %v5249_v33  ;;  %2017 = vmatprep.mubr.bf16.mxu1 %v5249_v33 }
 0x857   :  { %1947 = vmatpush1.bf16.msra.mxu0 %v4392_v48  ;;  %1988 = vmatpush1.bf16.msra.mxu1 %v4397_v50 }
 0x858   :  { %1948 = vmatprep.subr.bf16.mxu0 %v4405_v51  ;;  %1989 = vmatprep.subr.bf16.mxu1 %v4410_v54 }
 0x85b   :  { %1949 = vmatpush1.bf16.msra.mxu0 %v4416_v59  ;;  %1990 = vmatpush1.bf16.msra.mxu1 %v4421_v62 }
 0x85c   :  { %1950 = vmatprep.subr.bf16.mxu0 %v4429_v2  ;;  %1991 = vmatprep.subr.bf16.mxu1 %v4439_v5 }
 0x85f   :  { %1951 = vmatpush1.bf16.msra.mxu0 %v4434_v16  ;;  %1992 = vmatpush1.bf16.msra.mxu1 %v4446_v49 }
 0x860   :  { %1952 = vmatprep.subr.bf16.mxu0 %v4453_v8  ;;  %1993 = vmatprep.subr.bf16.mxu1 %v4458_v9 }
 0x863   :  { %1953 = vmatpush1.bf16.msra.mxu0 %v4464_v10  ;;  %1994 = vmatpush1.bf16.msra.mxu1 %v4469_v11 }
 0x864   :  { %1954 = vmatprep.subr.bf16.mxu0 %v4477_v12  ;;  %1995 = vmatprep.subr.bf16.mxu1 %v4487_v0 }
 0x867   :  { %1955 = vmatpush1.bf16.msra.mxu0 %v4482_v25  ;;  %1996 = vmatpush1.bf16.msra.mxu1 %v4494_v14 }
 0x868   :  { %1956 = vmatprep.subr.bf16.mxu0 %v4501_v15  ;;  %1997 = vmatprep.subr.bf16.mxu1 %v4506_v17 }
 0x86b   :  { %1957 = vmatpush1.bf16.msra.mxu0 %v4512_v18  ;;  %1998 = vmatpush1.bf16.msra.mxu1 %v4517_v19 }
 0x86c   :  { %1958 = vmatprep.subr.bf16.mxu0 %v4525_v20  ;;  %1999 = vmatprep.subr.bf16.mxu1 %v4535_v22 }
 0x86f   :  { %1959 = vmatpush1.bf16.msra.mxu0 %v4530_v21  ;;  %2000 = vmatpush1.bf16.msra.mxu1 %v4542_v23 }
 0x870   :  { %2064 = vmatprep.subr.bf16.mxu0 %v4358_v58  ;;  %2105 = vmatprep.subr.bf16.mxu1 %v4369_v60 }
 0x91d   :  { %v4658_v56 = vpop.f32.mrb[44].mxu0  ;;  %v4660_v57 = vpop.f32.mrb[44].mxu1 }
 0x91e   :  { %5250 = vst [vmem:[#allocation28_spill] sm:$0xff] %v4658_v56  ;;  %5251 = vst [vmem:[#allocation29_spill] sm:$0xff] %v4660_v57  ;;  %v4662_v53 = vpop.f32.mrb[45].mxu0  ;;  %v4664_v1 = vpop.f32.mrb[45].mxu1  ;;  %v4680_v56 = vrot.slane %v1297_v36, %v1313_v34 }
 0x91f   :  { %5252 = vst [vmem:[#allocation30_spill] sm:$0xff] %v4662_v53  ;;  %5253 = vst [vmem:[#allocation31_spill] sm:$0xff] %v4664_v1  ;;  %v4666_v37 = vpop.f32.mrb[46].mxu0  ;;  %v4668_v32 = vpop.f32.mrb[46].mxu1  ;;  %v1514_v53 = vadd.f32 %v4562_v27, %v4670_v38 }
 0x920   :  { %5254 = vst [vmem:[#allocation32_spill] sm:$0xff] %v4666_v37  ;;  %5255 = vst [vmem:[#allocation33_spill] sm:$0xff] %v4668_v32  ;;  %v4674_v26 = vpop.f32.mrb[47].mxu0  ;;  %v4676_v61 = vpop.f32.mrb[47].mxu1  ;;  %v1587_v37 = vadd.f32 %v4564_v29, %v4672_v28  ;;  %v1589_v7 = vadd.f32 %v4568_v35, %v4680_v56 }
 0x921   :  { %5256 = vst [vmem:[#allocation34_spill] sm:$0xff] %v4674_v26  ;;  %5257 = vst [vmem:[#allocation35_spill] sm:$0xff] %v4676_v61 }
 0x925   :  { %v1858_v32 = vpop.f32.mrb[48].mxu0  ;;  %v1899_v26 = vpop.f32.mrb[48].mxu1 }
 0x926   :  { %v1906_v1 = vadd.f32 %v1858_v32, %v1514_v53  ;;  %v1908_v61 = vadd.f32 %v1899_v26, %v1587_v37  ;;  %v1860_v30 = vpop.f32.mrb[49].mxu0  ;;  %v1901_v57 = vpop.f32.mrb[49].mxu1 }
 0x927   :  { %v1907_v34 = vadd.f32 %v1860_v30, %v1516_v6  ;;  %v1909_v36 = vadd.f32 %v1901_v57, %v1589_v7  ;;  %v1862_v24 = vpop.f32.mrb[50].mxu0  ;;  %v1903_v42 = vpop.f32.mrb[50].mxu1  ;;  %v1520_v7 = vadd.f32 %v4574_v41, %v4678_v13  ;;  %v1593_v30 = vadd.f32 %v4576_v44, %v4680_v56 }
 0x928   :  { %v2941_v27 = vmul.f32 -1.442695, %v1906_v1  ;;  %v1863_v55 = vpop.f32.mrb[51].mxu0  ;;  %v1904_v46 = vpop.f32.mrb[51].mxu1 }
 0x929   :  { %v2942_v29 = vmul.f32 -1.442695, %v1907_v34  ;;  %v2943_v31 = vmul.f32 -1.442695, %v1909_v36 }
 0x92a   :  { %3253 = vpow2.f32 %v2941_v27 }
 0x92b   :  { %3255 = vpow2.f32 %v2942_v29 }
 0x92c   :  { %3257 = vpow2.f32 %v2943_v31 }
 0x92d   :  { %3259 = vtanh.f32 %v1908_v61  ;;  %v1591_v61 = vadd.f32 %v4572_v39, %v4672_v28 }
 0x934   :  { %v3254_v52 = vpop.eup %3253 }
 0x935   :  { %v3256_v40 = vpop.eup %3255  ;;  %v1913_v35 = vadd.f32 1.0, %v3254_v52 }
 0x936   :  { %v1919_v53 = vadd.f32 1.0, %v3256_v40  ;;  %v3258_v26 = vpop.eup %3257 }
 0x937   :  { %3261 = vrcp.f32 %v1913_v35  ;;  %v3260_v32 = vpop.eup %3259  ;;  %v1926_v1 = vadd.f32 1.0, %v3258_v26 }
 0x938   :  { %3263 = vrcp.f32 %v1919_v53 }
 0x939   :  { %3265 = vrcp.f32 %v1926_v1 }
 0x941   :  { %v3262_v57 = vpop.eup %3261 }
 0x942   :  { %v3264_v24 = vpop.eup %3263  ;;  %v1930_v42 = vmul.f32 %v3262_v57, %v3260_v32 }
 0x943   :  { %v1929_v55 = vmul.f32 0.0, %v3264_v24  ;;  %v3266_v37 = vpop.eup %3265 }
 0x945   :  { %v4690_v46 = vadd.f32 %v1930_v42, %v1929_v55 }
 0x947   :  { %3267 = vtanh.f32 %v4690_v46 }
 0x951   :  { %v3268_v6 = vpop.eup %3267 }
 0x952   :  { %v4693_v52 = vmul.f32 %v3268_v6, %v3266_v37 }
 0x954   :  { %v2945_v40 = vpack.c.bf16 %v4693_v52, %v4693_v52 }
 0x956   :  { %2946 = vmatmul.mubr.msk.bf16.vlgmr.msra.gmra.mrb[52].mxu0 %vm3752_vm5, %v2945_v40  ;;  %2949 = vmatmul.mubr.msk.bf16.vlgmr.msra.gmra.mrb[52].mxu1 %vm3752_vm5, %v2945_v40 }
 0x957   :  { %2065 = vmatpush1.bf16.msra.mxu0 %v4363_v45  ;;  %2106 = vmatpush1.bf16.msra.mxu1 %v4374_v3 }
 0x958   :  { %2066 = vmatprep.subr.bf16.mxu0 %v4381_v4  ;;  %2107 = vmatprep.subr.bf16.mxu1 %v4386_v47 }
 0x959   :  { %2096 = vmatprep.mubr.bf16.mxu0 %v5249_v33  ;;  %2137 = vmatprep.mubr.bf16.mxu1 %v5249_v33 }
 0x95b   :  { %2067 = vmatpush1.bf16.msra.mxu0 %v4392_v48  ;;  %2108 = vmatpush1.bf16.msra.mxu1 %v4397_v50 }
 0x95c   :  { %2068 = vmatprep.subr.bf16.mxu0 %v4405_v51  ;;  %2109 = vmatprep.subr.bf16.mxu1 %v4410_v54 }
 0x95f   :  { %2069 = vmatpush1.bf16.msra.mxu0 %v4416_v59  ;;  %2110 = vmatpush1.bf16.msra.mxu1 %v4421_v62 }
 0x960   :  { %2070 = vmatprep.subr.bf16.mxu0 %v4429_v2  ;;  %2111 = vmatprep.subr.bf16.mxu1 %v4439_v5 }
 0x963   :  { %2071 = vmatpush1.bf16.msra.mxu0 %v4434_v16  ;;  %2112 = vmatpush1.bf16.msra.mxu1 %v4446_v49 }
 0x964   :  { %2072 = vmatprep.subr.bf16.mxu0 %v4453_v8  ;;  %2113 = vmatprep.subr.bf16.mxu1 %v4458_v9 }
 0x967   :  { %2073 = vmatpush1.bf16.msra.mxu0 %v4464_v10  ;;  %2114 = vmatpush1.bf16.msra.mxu1 %v4469_v11 }
 0x968   :  { %2074 = vmatprep.subr.bf16.mxu0 %v4477_v12  ;;  %2115 = vmatprep.subr.bf16.mxu1 %v4487_v0 }
 0x96b   :  { %2075 = vmatpush1.bf16.msra.mxu0 %v4482_v25  ;;  %2116 = vmatpush1.bf16.msra.mxu1 %v4494_v14 }
 0x96c   :  { %2076 = vmatprep.subr.bf16.mxu0 %v4501_v15  ;;  %2117 = vmatprep.subr.bf16.mxu1 %v4506_v17 }
 0x96f   :  { %2077 = vmatpush1.bf16.msra.mxu0 %v4512_v18  ;;  %2118 = vmatpush1.bf16.msra.mxu1 %v4517_v19 }
 0x970   :  { %2078 = vmatprep.subr.bf16.mxu0 %v4525_v20  ;;  %2119 = vmatprep.subr.bf16.mxu1 %v4535_v22 }
 0x973   :  { %2079 = vmatpush1.bf16.msra.mxu0 %v4530_v21  ;;  %2120 = vmatpush1.bf16.msra.mxu1 %v4542_v23 }
 0x974   :  { %2184 = vmatprep.subr.bf16.mxu0 %v4358_v58  ;;  %2225 = vmatprep.subr.bf16.mxu1 %v4369_v60 }
 0xa29   :  { %v1978_v34 = vpop.f32.mrb[52].mxu0  ;;  %v2019_v36 = vpop.f32.mrb[52].mxu1 }
 0xa2a   :  { %v2026_v27 = vadd.f32 %v1978_v34, %v1518_v43  ;;  %v2028_v29 = vadd.f32 %v2019_v36, %v1591_v61  ;;  %v1980_v31 = vpop.f32.mrb[53].mxu0  ;;  %v2021_v35 = vpop.f32.mrb[53].mxu1 }
 0xa2b   :  { %v2027_v53 = vadd.f32 %v1980_v31, %v1520_v7  ;;  %v2029_v26 = vadd.f32 %v2021_v35, %v1593_v30  ;;  %v1982_v32 = vpop.f32.mrb[54].mxu0  ;;  %v2023_v57 = vpop.f32.mrb[54].mxu1  ;;  %v1935_v30 = vsel %vm368_vm4, %v4690_v46, 0.0 }
 0xa2c   :  { %v2950_v63 = vmul.f32 -1.442695, %v2026_v27  ;;  %v1983_v24 = vpop.f32.mrb[55].mxu0  ;;  %v2024_v42 = vpop.f32.mrb[55].mxu1  ;;  %v1934_v57 = vsel %vm368_vm4, %v4693_v52, 0.0  ;;  %v5260_v52 = vld [vmem:[#allocation12_spill] sm:$0xff] }
 0xa2d   :  { %v2951_v39 = vmul.f32 -1.442695, %v2027_v53  ;;  %v2952_v41 = vmul.f32 -1.442695, %v2029_v26  ;;  %v1524_v24 = vadd.f32 %v5260_v52, %v4670_v38  ;;  %v5261_v42 = vld [vmem:[#allocation13_spill] sm:$0xff] }
 0xa2e   :  { %3269 = vpow2.f32 %v2950_v63 }
 0xa2f   :  { %3271 = vpow2.f32 %v2951_v39  ;;  %v1597_v39 = vadd.f32 %v5261_v42, %v4672_v28 }
 0xa30   :  { %3273 = vpow2.f32 %v2952_v41  ;;  %v5262_v41 = vld [vmem:[#allocation14_spill] sm:$0xff] }
 0xa31   :  { %3275 = vtanh.f32 %v2028_v29 }
 0xa38   :  { %v3270_v1 = vpop.eup %3269 }
 0xa39   :  { %v3272_v55 = vpop.eup %3271  ;;  %v2033_v44 = vadd.f32 1.0, %v3270_v1  ;;  %v1526_v1 = vadd.f32 %v5262_v41, %v4678_v13 }
 0xa3a   :  { %v2039_v37 = vadd.f32 1.0, %v3272_v55  ;;  %v3274_v6 = vpop.eup %3273  ;;  %v5263_v55 = vld [vmem:[#allocation15_spill] sm:$0xff] }
 0xa3b   :  { %3277 = vrcp.f32 %v2033_v44  ;;  %v3276_v40 = vpop.eup %3275  ;;  %v2046_v36 = vadd.f32 1.0, %v3274_v6  ;;  %v1599_v44 = vadd.f32 %v5263_v55, %v4680_v56 }
 0xa3c   :  { %3279 = vrcp.f32 %v2039_v37 }
 0xa3d   :  { %3281 = vrcp.f32 %v2046_v36 }
 0xa45   :  { %v3278_v43 = vpop.eup %3277 }
 0xa46   :  { %v3280_v61 = vpop.eup %3279  ;;  %v2050_v34 = vmul.f32 %v3278_v43, %v3276_v40 }
 0xa47   :  { %v2049_v27 = vmul.f32 %v3280_v61, %v1935_v30  ;;  %v3282_v53 = vpop.eup %3281 }
 0xa49   :  { %v2051_v31 = vadd.f32 %v2050_v34, %v2049_v27 }
 0xa4b   :  { %3283 = vtanh.f32 %v2051_v31  ;;  %v4748_v29 = vsel %vm493_vm10, %v2051_v31, %v1935_v30 }
 0xa55   :  { %v3284_v26 = vpop.eup %3283 }
 0xa56   :  { %v2053_v32 = vmul.f32 %v3284_v26, %v3282_v53 }
 0xa58   :  { %v4755_v46 = vsel %vm493_vm10, %v2053_v32, %v1934_v57 }
 0xa59   :  { %v2063_v63 = vpack.c.bf16 %v4755_v46, %v4755_v46 }
 0xa5b   :  { %2097 = vmatmul.mubr.bf16.vlgmr.msra.gmra.mrb[56].mxu0 %v2063_v63  ;;  %2138 = vmatmul.mubr.bf16.vlgmr.msra.gmra.mrb[56].mxu1 %v2063_v63 }
 0xa5c   :  { %2185 = vmatpush1.bf16.msra.mxu0 %v4363_v45  ;;  %2226 = vmatpush1.bf16.msra.mxu1 %v4374_v3 }
 0xa5d   :  { %2186 = vmatprep.subr.bf16.mxu0 %v4381_v4  ;;  %2227 = vmatprep.subr.bf16.mxu1 %v4386_v47 }
 0xa5e   :  { %2216 = vmatprep.mubr.bf16.mxu0 %v5249_v33  ;;  %2257 = vmatprep.mubr.bf16.mxu1 %v5249_v33 }
 0xa60   :  { %2187 = vmatpush1.bf16.msra.mxu0 %v4392_v48  ;;  %2228 = vmatpush1.bf16.msra.mxu1 %v4397_v50 }
 0xa61   :  { %2188 = vmatprep.subr.bf16.mxu0 %v4405_v51  ;;  %2229 = vmatprep.subr.bf16.mxu1 %v4410_v54 }
 0xa64   :  { %2189 = vmatpush1.bf16.msra.mxu0 %v4416_v59  ;;  %2230 = vmatpush1.bf16.msra.mxu1 %v4421_v62 }
 0xa65   :  { %2190 = vmatprep.subr.bf16.mxu0 %v4429_v2  ;;  %2231 = vmatprep.subr.bf16.mxu1 %v4439_v5 }
 0xa68   :  { %2191 = vmatpush1.bf16.msra.mxu0 %v4434_v16  ;;  %2232 = vmatpush1.bf16.msra.mxu1 %v4446_v49 }
 0xa69   :  { %2192 = vmatprep.subr.bf16.mxu0 %v4453_v8  ;;  %2233 = vmatprep.subr.bf16.mxu1 %v4458_v9 }
 0xa6c   :  { %2193 = vmatpush1.bf16.msra.mxu0 %v4464_v10  ;;  %2234 = vmatpush1.bf16.msra.mxu1 %v4469_v11 }
 0xa6d   :  { %2194 = vmatprep.subr.bf16.mxu0 %v4477_v12  ;;  %2235 = vmatprep.subr.bf16.mxu1 %v4487_v0 }
 0xa70   :  { %2195 = vmatpush1.bf16.msra.mxu0 %v4482_v25  ;;  %2236 = vmatpush1.bf16.msra.mxu1 %v4494_v14 }
 0xa71   :  { %2196 = vmatprep.subr.bf16.mxu0 %v4501_v15  ;;  %2237 = vmatprep.subr.bf16.mxu1 %v4506_v17 }
 0xa74   :  { %2197 = vmatpush1.bf16.msra.mxu0 %v4512_v18  ;;  %2238 = vmatpush1.bf16.msra.mxu1 %v4517_v19 }
 0xa75   :  { %2198 = vmatprep.subr.bf16.mxu0 %v4525_v20  ;;  %2239 = vmatprep.subr.bf16.mxu1 %v4535_v22 }
 0xa78   :  { %2199 = vmatpush1.bf16.msra.mxu0 %v4530_v21  ;;  %2240 = vmatpush1.bf16.msra.mxu1 %v4542_v23 }
 0xa79   :  { %2304 = vmatprep.subr.bf16.mxu0 %v4358_v58  ;;  %2345 = vmatprep.subr.bf16.mxu1 %v4369_v60 }
 0xb2e   :  { %v2098_v37 = vpop.f32.mrb[56].mxu0  ;;  %v2139_v6 = vpop.f32.mrb[56].mxu1 }
 0xb2f   :  { %v2146_v40 = vadd.f32 %v2098_v37, %v1524_v24  ;;  %v2148_v43 = vadd.f32 %v2139_v6, %v1597_v39  ;;  %v2100_v61 = vpop.f32.mrb[57].mxu0  ;;  %v2141_v7 = vpop.f32.mrb[57].mxu1 }
 0xb30   :  { %v2147_v30 = vadd.f32 %v2100_v61, %v1526_v1  ;;  %v2149_v34 = vadd.f32 %v2141_v7, %v1599_v44  ;;  %v2102_v36 = vpop.f32.mrb[58].mxu0  ;;  %v2143_v27 = vpop.f32.mrb[58].mxu1 }
 0xb31   :  { %v2953_v31 = vmul.f32 -1.442695, %v2146_v40  ;;  %v2103_v35 = vpop.f32.mrb[59].mxu0  ;;  %v2144_v53 = vpop.f32.mrb[59].mxu1 }
 0xb32   :  { %v2954_v26 = vmul.f32 -1.442695, %v2147_v30  ;;  %v2955_v32 = vmul.f32 -1.442695, %v2149_v34  ;;  %v5268_v53 = vld [vmem:[#allocation19_spill] sm:$0xff] }
 0xb33   :  { %3285 = vpow2.f32 %v2953_v31  ;;  %v5267_v31 = vld [vmem:[#allocation18_spill] sm:$0xff] }
 0xb34   :  { %3287 = vpow2.f32 %v2954_v26  ;;  %v1530_v35 = vadd.f32 %v5267_v31, %v4678_v13  ;;  %v1603_v26 = vadd.f32 %v5268_v53, %v4680_v56 }
 0xb35   :  { %3289 = vpow2.f32 %v2955_v32 }
 0xb36   :  { %3291 = vtanh.f32 %v2148_v43 }
 0xb3d   :  { %v3286_v57 = vpop.eup %3285 }
 0xb3e   :  { %v3288_v63 = vpop.eup %3287  ;;  %v2153_v52 = vadd.f32 1.0, %v3286_v57 }
 0xb3f   :  { %v2159_v24 = vadd.f32 1.0, %v3288_v63  ;;  %v3290_v42 = vpop.eup %3289 }
 0xb40   :  { %3293 = vrcp.f32 %v2153_v52  ;;  %v3292_v39 = vpop.eup %3291  ;;  %v2166_v44 = vadd.f32 1.0, %v3290_v42 }
 0xb41   :  { %3295 = vrcp.f32 %v2159_v24 }
 0xb42   :  { %3297 = vrcp.f32 %v2166_v44 }
 0xb4a   :  { %v3294_v41 = vpop.eup %3293 }
 0xb4b   :  { %v3296_v1 = vpop.eup %3295  ;;  %v2170_v55 = vmul.f32 %v3294_v41, %v3292_v39 }
 0xb4c   :  { %v2169_v37 = vmul.f32 %v3296_v1, %v4748_v29  ;;  %v3298_v43 = vpop.eup %3297 }
 0xb4e   :  { %v2171_v6 = vadd.f32 %v2170_v55, %v2169_v37 }
 0xb50   :  { %3299 = vtanh.f32 %v2171_v6  ;;  %v4805_v61 = vsel %vm619_vm11, %v2171_v6, %v4748_v29 }
 0xb5a   :  { %v3300_v7 = vpop.eup %3299 }
 0xb5b   :  { %v2173_v30 = vmul.f32 %v3300_v7, %v3298_v43 }
 0xb5d   :  { %v4810_v34 = vsel %vm619_vm11, %v2173_v30, %v4755_v46  ;;  %v5266_v46 = vld [vmem:[#allocation17_spill] sm:$0xff] }
 0xb5e   :  { %v2183_v36 = vpack.c.bf16 %v4810_v34, %v4810_v34  ;;  %v1601_v27 = vadd.f32 %v5266_v46, %v4672_v28 }
 0xb60   :  { %2217 = vmatmul.mubr.bf16.vlgmr.msra.gmra.mrb[60].mxu0 %v2183_v36  ;;  %2258 = vmatmul.mubr.bf16.vlgmr.msra.gmra.mrb[60].mxu1 %v2183_v36 }
 0xb61   :  { %2305 = vmatpush1.bf16.msra.mxu0 %v4363_v45  ;;  %2346 = vmatpush1.bf16.msra.mxu1 %v4374_v3  ;;  %v5265_v45 = vld [vmem:[#allocation16_spill] sm:$0xff] }
 0xb62   :  { %2306 = vmatprep.subr.bf16.mxu0 %v4381_v4  ;;  %2347 = vmatprep.subr.bf16.mxu1 %v4386_v47  ;;  %v1528_v29 = vadd.f32 %v5265_v45, %v4670_v38 }
 0xb63   :  { %2336 = vmatprep.mubr.bf16.mxu0 %v5249_v33  ;;  %2377 = vmatprep.mubr.bf16.mxu1 %v5249_v33 }
 0xb65   :  { %2307 = vmatpush1.bf16.msra.mxu0 %v4392_v48  ;;  %2348 = vmatpush1.bf16.msra.mxu1 %v4397_v50 }
 0xb66   :  { %2308 = vmatprep.subr.bf16.mxu0 %v4405_v51  ;;  %2349 = vmatprep.subr.bf16.mxu1 %v4410_v54 }
 0xb69   :  { %2309 = vmatpush1.bf16.msra.mxu0 %v4416_v59  ;;  %2350 = vmatpush1.bf16.msra.mxu1 %v4421_v62 }
 0xb6a   :  { %2310 = vmatprep.subr.bf16.mxu0 %v4429_v2  ;;  %2351 = vmatprep.subr.bf16.mxu1 %v4439_v5 }
 0xb6d   :  { %2311 = vmatpush1.bf16.msra.mxu0 %v4434_v16  ;;  %2352 = vmatpush1.bf16.msra.mxu1 %v4446_v49 }
 0xb6e   :  { %2312 = vmatprep.subr.bf16.mxu0 %v4453_v8  ;;  %2353 = vmatprep.subr.bf16.mxu1 %v4458_v9 }
 0xb71   :  { %2313 = vmatpush1.bf16.msra.mxu0 %v4464_v10  ;;  %2354 = vmatpush1.bf16.msra.mxu1 %v4469_v11 }
 0xb72   :  { %2314 = vmatprep.subr.bf16.mxu0 %v4477_v12  ;;  %2355 = vmatprep.subr.bf16.mxu1 %v4487_v0 }
 0xb75   :  { %2315 = vmatpush1.bf16.msra.mxu0 %v4482_v25  ;;  %2356 = vmatpush1.bf16.msra.mxu1 %v4494_v14 }
 0xb76   :  { %2316 = vmatprep.subr.bf16.mxu0 %v4501_v15  ;;  %2357 = vmatprep.subr.bf16.mxu1 %v4506_v17 }
 0xb79   :  { %2317 = vmatpush1.bf16.msra.mxu0 %v4512_v18  ;;  %2358 = vmatpush1.bf16.msra.mxu1 %v4517_v19 }
 0xb7a   :  { %2318 = vmatprep.subr.bf16.mxu0 %v4525_v20  ;;  %2359 = vmatprep.subr.bf16.mxu1 %v4535_v22 }
 0xb7d   :  { %2319 = vmatpush1.bf16.msra.mxu0 %v4530_v21  ;;  %2360 = vmatpush1.bf16.msra.mxu1 %v4542_v23 }
 0xb7e   :  { %2424 = vmatprep.subr.bf16.mxu0 %v4358_v58  ;;  %2465 = vmatprep.subr.bf16.mxu1 %v4369_v60 }
 0xc33   :  { %v2218_v32 = vpop.f32.mrb[60].mxu0  ;;  %v2259_v57 = vpop.f32.mrb[60].mxu1 }
 0xc34   :  { %v2266_v63 = vadd.f32 %v2218_v32, %v1528_v29  ;;  %v2268_v52 = vadd.f32 %v2259_v57, %v1601_v27  ;;  %v2220_v24 = vpop.f32.mrb[61].mxu0  ;;  %v2261_v58 = vpop.f32.mrb[61].mxu1 }
 0xc35   :  { %v2267_v42 = vadd.f32 %v2220_v24, %v1530_v35  ;;  %v2269_v60 = vadd.f32 %v2261_v58, %v1603_v26  ;;  %v2222_v39 = vpop.f32.mrb[62].mxu0  ;;  %v2263_v41 = vpop.f32.mrb[62].mxu1  ;;  %v4987_v26 = vld [vmem:[%s5203_s4 + $0x40] ss:$16 sps:$4 sm:$0xff]  }
 0xc36   :  { %v2956_v1 = vmul.f32 -1.442695, %v2266_v63  ;;  %v2223_v55 = vpop.f32.mrb[63].mxu0  ;;  %v2264_v44 = vpop.f32.mrb[63].mxu1 }
 0xc37   :  { %v2957_v37 = vmul.f32 -1.442695, %v2267_v42  ;;  %v2958_v6 = vmul.f32 -1.442695, %v2269_v60  ;;  %v4872_v42 = vld [vmem:[%s5203_s4] ss:$16 sps:$4 sm:$0xff]  }
 0xc38   :  { %3301 = vpow2.f32 %v2956_v1 }
 0xc39   :  { %3303 = vpow2.f32 %v2957_v37 }
 0xc3a   :  { %3305 = vpow2.f32 %v2958_v6 }
 0xc3b   :  { %3307 = vtanh.f32 %v2268_v52 }
 0xc42   :  { %v3302_v40 = vpop.eup %3301 }
 0xc43   :  { %v3304_v43 = vpop.eup %3303  ;;  %v2273_v7 = vadd.f32 1.0, %v3302_v40 }
 0xc44   :  { %v2279_v30 = vadd.f32 1.0, %v3304_v43  ;;  %v3306_v36 = vpop.eup %3305 }
 0xc45   :  { %3309 = vrcp.f32 %v2273_v7  ;;  %v3308_v45 = vpop.eup %3307  ;;  %v2286_v31 = vadd.f32 1.0, %v3306_v36 }
 0xc46   :  { %3311 = vrcp.f32 %v2279_v30 }
 0xc47   :  { %3313 = vrcp.f32 %v2286_v31  ;;  %v4969_v31 = vld [vmem:[%s5203_s4 + $0x28] ss:$16 sps:$4 sm:$0xff]  }
 0xc4f   :  { %v3310_v29 = vpop.eup %3309 }
 0xc50   :  { %v3312_v46 = vpop.eup %3311  ;;  %v2290_v27 = vmul.f32 %v3310_v29, %v3308_v45  ;;  %v4943_v45 = vld [vmem:[%s5203_s4 + $0x8] ss:$16 sps:$4 sm:$0xff]   ;;  %v4949_v29 = vld [vmem:[%s5203_s4 + $0x24] ss:$16 sps:$4 sm:$0xff]  }
 0xc51   :  { %v2289_v35 = vmul.f32 %v3312_v46, %v4805_v61  ;;  %v3314_v57 = vpop.eup %3313  ;;  %v4955_v46 = vld [vmem:[%s5203_s4 + $0x2c] ss:$16 sps:$4 sm:$0xff]  }
 0xc53   :  { %v2291_v53 = vadd.f32 %v2290_v27, %v2289_v35  ;;  %v4963_v27 = vld [vmem:[%s5203_s4 + $0x20] ss:$16 sps:$4 sm:$0xff]   ;;  %v4975_v35 = vld [vmem:[%s5203_s4 + $0x44] ss:$16 sps:$4 sm:$0xff]  }
 0xc55   :  { %3315 = vtanh.f32 %v2291_v53  ;;  %v4860_v32 = vsel %vm745_vm12, %v2291_v53, %v4805_v61  ;;  %v4981_v53 = vld [vmem:[%s5203_s4 + $0x4c] ss:$16 sps:$4 sm:$0xff]  }
 0xc5f   :  { %v3316_v63 = vpop.eup %3315 }
 0xc60   :  { %v2293_v52 = vmul.f32 %v3316_v63, %v3314_v57  ;;  %v4999_v57 = vld [vmem:[%s5203_s4 + $0x64] ss:$16 sps:$4 sm:$0xff]   ;;  %v5005_v63 = vld [vmem:[%s5203_s4 + $0x6c] ss:$16 sps:$4 sm:$0xff]  }
 0xc62   :  { %v4865_v24 = vsel %vm745_vm12, %v2293_v52, %v4810_v34  ;;  %v5011_v52 = vld [vmem:[%s5203_s4 + $0x60] ss:$16 sps:$4 sm:$0xff]  }
 0xc63   :  { %v2303_v58 = vpack.c.bf16 %v4865_v24, %v4865_v24 }
 0xc65   :  { %2337 = vmatmul.mubr.bf16.vlgmr.msra.gmra.mrb[64].mxu0 %v2303_v58  ;;  %2378 = vmatmul.mubr.bf16.vlgmr.msra.gmra.mrb[64].mxu1 %v2303_v58  ;;  %v5023_v58 = vld [vmem:[%s5203_s4 + $0x84] ss:$16 sps:$4 sm:$0xff]  }
 0xc66   :  { %2425 = vmatpush1.bf16.msra.mxu0 %v4872_v42  ;;  %2466 = vmatpush1.bf16.msra.mxu1 %v4374_v3  ;;  %v4909_v3 = vld [vmem:[%s5203_s4 + $0x4] ss:$16 sps:$4 sm:$0xff]  }
 0xc67   :  { %2426 = vmatprep.subr.bf16.mxu0 %v4381_v4  ;;  %2467 = vmatprep.subr.bf16.mxu1 %v4386_v47  ;;  %v4915_v4 = vld [vmem:[%s5203_s4 + $0xc] ss:$16 sps:$4 sm:$0xff]   ;;  %v5270_v47 = vld [vmem:[#allocation20_spill] sm:$0xff] }
 0xc68   :  { %2456 = vmatprep.mubr.bf16.mxu0 %v5249_v33  ;;  %2497 = vmatprep.mubr.bf16.mxu1 %v5249_v33 }
 0xc6a   :  { %2427 = vmatpush1.bf16.msra.mxu0 %v4392_v48  ;;  %2468 = vmatpush1.bf16.msra.mxu1 %v4397_v50  ;;  %v1534_v48 = vadd.f32 %v5270_v47, %v4670_v38  ;;  %v5271_v50 = vld [vmem:[#allocation21_spill] sm:$0xff] }
 0xc6b   :  { %2428 = vmatprep.subr.bf16.mxu0 %v4405_v51  ;;  %2469 = vmatprep.subr.bf16.mxu1 %v4410_v54  ;;  %v1607_v51 = vadd.f32 %v5271_v50, %v4672_v28  ;;  %v5272_v54 = vld [vmem:[#allocation22_spill] sm:$0xff]  ;;  %v5029_v47 = vld [vmem:[%s5203_s4 + $0x8c] ss:$16 sps:$4 sm:$0xff]   ;;  %v5041_v50 = vld [vmem:[%s5203_s4 + $0x88] ss:$16 sps:$4 sm:$0xff]  }
 0xc6e   :  { %2429 = vmatpush1.bf16.msra.mxu0 %v4416_v59  ;;  %2470 = vmatpush1.bf16.msra.mxu1 %v4421_v62  ;;  %v1536_v59 = vadd.f32 %v5272_v54, %v4678_v13  ;;  %v5273_v62 = vld [vmem:[#allocation23_spill] sm:$0xff] }
 0xc6f   :  { %2430 = vmatprep.subr.bf16.mxu0 %v4429_v2  ;;  %2471 = vmatprep.subr.bf16.mxu1 %v4439_v5  ;;  %v1609_v2 = vadd.f32 %v5273_v62, %v4680_v56  ;;  %v5053_v54 = vld [vmem:[%s5203_s4 + $0xac] ss:$16 sps:$4 sm:$0xff]   ;;  %v5065_v62 = vld [vmem:[%s5203_s4 + $0xa8] ss:$16 sps:$4 sm:$0xff]  }
 0xc72   :  { %2431 = vmatpush1.bf16.msra.mxu0 %v4434_v16  ;;  %2472 = vmatpush1.bf16.msra.mxu1 %v4446_v49 }
 0xc73   :  { %2432 = vmatprep.subr.bf16.mxu0 %v4453_v8  ;;  %2473 = vmatprep.subr.bf16.mxu1 %v4458_v9 }
 0xc76   :  { %2433 = vmatpush1.bf16.msra.mxu0 %v4464_v10  ;;  %2474 = vmatpush1.bf16.msra.mxu1 %v4469_v11 }
 0xc77   :  { %2434 = vmatprep.subr.bf16.mxu0 %v4477_v12  ;;  %2475 = vmatprep.subr.bf16.mxu1 %v4487_v0 }
 0xc7a   :  { %2435 = vmatpush1.bf16.msra.mxu0 %v4482_v25  ;;  %2476 = vmatpush1.bf16.msra.mxu1 %v4494_v14 }
 0xc7b   :  { %2436 = vmatprep.subr.bf16.mxu0 %v4501_v15  ;;  %2477 = vmatprep.subr.bf16.mxu1 %v4506_v17 }
 0xc7e   :  { %2437 = vmatpush1.bf16.msra.mxu0 %v4512_v18  ;;  %2478 = vmatpush1.bf16.msra.mxu1 %v4517_v19 }
 0xc7f   :  { %2438 = vmatprep.subr.bf16.mxu0 %v4525_v20  ;;  %2479 = vmatprep.subr.bf16.mxu1 %v4535_v22 }
 0xc82   :  { %2439 = vmatpush1.bf16.msra.mxu0 %v4530_v21  ;;  %2480 = vmatpush1.bf16.msra.mxu1 %v4542_v23 }
 0xc83   :  { %2544 = vmatprep.subr.bf16.mxu0 %v4909_v3  ;;  %2585 = vmatprep.subr.bf16.mxu1 %v4915_v4 }
 0xd38   :  { %v2338_v16 = vpop.f32.mrb[64].mxu0  ;;  %v2379_v5 = vpop.f32.mrb[64].mxu1 }
 0xd39   :  { %v2386_v49 = vadd.f32 %v2338_v16, %v1534_v48  ;;  %v2388_v8 = vadd.f32 %v2379_v5, %v1607_v51  ;;  %v2340_v9 = vpop.f32.mrb[65].mxu0  ;;  %v2381_v10 = vpop.f32.mrb[65].mxu1  ;;  %v5035_v48 = vld [vmem:[%s5203_s4 + $0x80] ss:$16 sps:$4 sm:$0xff]   ;;  %v5047_v51 = vld [vmem:[%s5203_s4 + $0xa4] ss:$16 sps:$4 sm:$0xff]  }
 0xd3a   :  { %v2387_v11 = vadd.f32 %v2340_v9, %v1536_v59  ;;  %v2389_v12 = vadd.f32 %v2381_v10, %v1609_v2  ;;  %v2342_v25 = vpop.f32.mrb[66].mxu0  ;;  %v2383_v0 = vpop.f32.mrb[66].mxu1  ;;  %v5059_v59 = vld [vmem:[%s5203_s4 + $0xa0] ss:$16 sps:$4 sm:$0xff]   ;;  %v5071_v2 = vld [vmem:[%s5203_s4 + $0xc4] ss:$16 sps:$4 sm:$0xff]  }
 0xd3b   :  { %v2959_v14 = vmul.f32 -1.442695, %v2386_v49  ;;  %v2343_v15 = vpop.f32.mrb[67].mxu0  ;;  %v2384_v17 = vpop.f32.mrb[67].mxu1  ;;  %v5077_v16 = vld [vmem:[%s5203_s4 + $0xcc] ss:$16 sps:$4 sm:$0xff]  }
 0xd3c   :  { %v2960_v18 = vmul.f32 -1.442695, %v2387_v11  ;;  %v2961_v19 = vmul.f32 -1.442695, %v2389_v12  ;;  %v5083_v5 = vld [vmem:[%s5203_s4 + $0xc0] ss:$16 sps:$4 sm:$0xff]  }
 0xd3d   :  { %3317 = vpow2.f32 %v2959_v14  ;;  %v5089_v49 = vld [vmem:[%s5203_s4 + $0xc8] ss:$16 sps:$4 sm:$0xff]   ;;  %v5101_v9 = vld [vmem:[%s5203_s4 + $0xec] ss:$16 sps:$4 sm:$0xff]   ;;  %v5107_v10 = vld [vmem:[%s5203_s4 + $0xe0] ss:$16 sps:$4 sm:$0xff]  }
 0xd3e   :  { %3319 = vpow2.f32 %v2960_v18  ;;  %v5113_v11 = vld [vmem:[%s5203_s4 + $0xe8] ss:$16 sps:$4 sm:$0xff]   ;;  %v5275_v12 = vld [vmem:[#allocation24_spill] sm:$0xff]  ;;  %v5277_v15 = vld [vmem:[#allocation26_spill] sm:$0xff] }
 0xd3f   :  { %3321 = vpow2.f32 %v2961_v19  ;;  %v1538_v25 = vadd.f32 %v5275_v12, %v4670_v38  ;;  %v5276_v0 = vld [vmem:[#allocation25_spill] sm:$0xff]  ;;  %v1540_v17 = vadd.f32 %v5277_v15, %v4678_v13  ;;  %v5278_v18 = vld [vmem:[#allocation27_spill] sm:$0xff] }
 0xd40   :  { %3323 = vtanh.f32 %v2388_v8  ;;  %v5095_v8 = vld [vmem:[%s5203_s4 + $0xe4] ss:$16 sps:$4 sm:$0xff]   ;;  %v1611_v14 = vadd.f32 %v5276_v0, %v4672_v28  ;;  %v1613_v19 = vadd.f32 %v5278_v18, %v4680_v56 }
 0xd47   :  { %v3318_v20 = vpop.eup %3317 }
 0xd48   :  { %v3320_v21 = vpop.eup %3319  ;;  %v2393_v22 = vadd.f32 1.0, %v3318_v20 }
 0xd49   :  { %v2399_v23 = vadd.f32 1.0, %v3320_v21  ;;  %v3322_v61 = vpop.eup %3321 }
 0xd4a   :  { %3325 = vrcp.f32 %v2393_v22  ;;  %v3324_v34 = vpop.eup %3323  ;;  %v2406_v1 = vadd.f32 1.0, %v3322_v61 }
 0xd4b   :  { %3327 = vrcp.f32 %v2399_v23 }
 0xd4c   :  { %3329 = vrcp.f32 %v2406_v1 }
 0xd54   :  { %v3326_v60 = vpop.eup %3325 }
 0xd55   :  { %v3328_v39 = vpop.eup %3327  ;;  %v2410_v41 = vmul.f32 %v3326_v60, %v3324_v34 }
 0xd56   :  { %v2409_v55 = vmul.f32 %v3328_v39, %v4860_v32  ;;  %v3330_v40 = vpop.eup %3329 }
 0xd58   :  { %v2411_v44 = vadd.f32 %v2410_v41, %v2409_v55 }
 0xd5a   :  { %3331 = vtanh.f32 %v2411_v44  ;;  %v4930_v6 = vsel %vm871_vm13, %v2411_v44, %v4860_v32  ;;  %v4993_v32 = vld [vmem:[%s5203_s4 + $0x48] ss:$16 sps:$4 sm:$0xff]  }
 0xd64   :  { %v3332_v43 = vpop.eup %3331 }
 0xd65   :  { %v2413_v7 = vmul.f32 %v3332_v43, %v3330_v40 }
 0xd67   :  { %v4935_v30 = vsel %vm871_vm13, %v2413_v7, %v4865_v24  ;;  %v5017_v24 = vld [vmem:[%s5203_s4 + $0x68] ss:$16 sps:$4 sm:$0xff]  }
 0xd68   :  { %v2423_v36 = vpack.c.bf16 %v4935_v30, %v4935_v30 }
 0xd6a   :  { %2457 = vmatmul.mubr.bf16.vlgmr.msra.gmra.mrb[68].mxu0 %v2423_v36  ;;  %2498 = vmatmul.mubr.bf16.vlgmr.msra.gmra.mrb[68].mxu1 %v2423_v36 }
 0xd6b   :  { %2545 = vmatpush1.bf16.msra.mxu0 %v4872_v42  ;;  %2586 = vmatpush1.bf16.msra.mxu1 %v4943_v45 }
 0xd6c   :  { %2546 = vmatprep.subr.bf16.mxu0 %v4949_v29  ;;  %2587 = vmatprep.subr.bf16.mxu1 %v4955_v46 }
 0xd6d   :  { %2576 = vmatprep.mubr.bf16.mxu0 %v5249_v33  ;;  %2617 = vmatprep.mubr.bf16.mxu1 %v5249_v33 }
 0xd6f   :  { %2547 = vmatpush1.bf16.msra.mxu0 %v4963_v27  ;;  %2588 = vmatpush1.bf16.msra.mxu1 %v4969_v31 }
 0xd70   :  { %2548 = vmatprep.subr.bf16.mxu0 %v4975_v35  ;;  %2589 = vmatprep.subr.bf16.mxu1 %v4981_v53 }
 0xd73   :  { %2549 = vmatpush1.bf16.msra.mxu0 %v4987_v26  ;;  %2590 = vmatpush1.bf16.msra.mxu1 %v4993_v32 }
 0xd74   :  { %2550 = vmatprep.subr.bf16.mxu0 %v4999_v57  ;;  %2591 = vmatprep.subr.bf16.mxu1 %v5005_v63 }
 0xd77   :  { %2551 = vmatpush1.bf16.msra.mxu0 %v5011_v52  ;;  %2592 = vmatpush1.bf16.msra.mxu1 %v5017_v24 }
 0xd78   :  { %2552 = vmatprep.subr.bf16.mxu0 %v5023_v58  ;;  %2593 = vmatprep.subr.bf16.mxu1 %v5029_v47 }
 0xd7b   :  { %2553 = vmatpush1.bf16.msra.mxu0 %v5035_v48  ;;  %2594 = vmatpush1.bf16.msra.mxu1 %v5041_v50 }
 0xd7c   :  { %2554 = vmatprep.subr.bf16.mxu0 %v5047_v51  ;;  %2595 = vmatprep.subr.bf16.mxu1 %v5053_v54 }
 0xd7f   :  { %2555 = vmatpush1.bf16.msra.mxu0 %v5059_v59  ;;  %2596 = vmatpush1.bf16.msra.mxu1 %v5065_v62 }
 0xd80   :  { %2556 = vmatprep.subr.bf16.mxu0 %v5071_v2  ;;  %2597 = vmatprep.subr.bf16.mxu1 %v5077_v16 }
 0xd83   :  { %2557 = vmatpush1.bf16.msra.mxu0 %v5083_v5  ;;  %2598 = vmatpush1.bf16.msra.mxu1 %v5089_v49 }
 0xd84   :  { %2558 = vmatprep.subr.bf16.mxu0 %v5095_v8  ;;  %2599 = vmatprep.subr.bf16.mxu1 %v5101_v9 }
 0xd87   :  { %2559 = vmatpush1.bf16.msra.mxu0 %v5107_v10  ;;  %2600 = vmatpush1.bf16.msra.mxu1 %v5113_v11 }
 0xd88   :  { %2664 = vmatprep.subr.bf16.mxu0 %v4909_v3  ;;  %2705 = vmatprep.subr.bf16.mxu1 %v4915_v4 }
 0xe3d   :  { %v2458_v20 = vpop.f32.mrb[68].mxu0  ;;  %v2499_v21 = vpop.f32.mrb[68].mxu1 }
 0xe3e   :  { %v2506_v22 = vadd.f32 %v2458_v20, %v1538_v25  ;;  %v2508_v23 = vadd.f32 %v2499_v21, %v1611_v14  ;;  %v2460_v61 = vpop.f32.mrb[69].mxu0  ;;  %v2501_v3 = vpop.f32.mrb[69].mxu1 }
 0xe3f   :  { %v2507_v34 = vadd.f32 %v2460_v61, %v1540_v17  ;;  %v2509_v4 = vadd.f32 %v2501_v3, %v1613_v19  ;;  %v2462_v60 = vpop.f32.mrb[70].mxu0  ;;  %v2503_v39 = vpop.f32.mrb[70].mxu1 }
 0xe40   :  { %v2962_v41 = vmul.f32 -1.442695, %v2506_v22  ;;  %v2463_v1 = vpop.f32.mrb[71].mxu0  ;;  %v2504_v55 = vpop.f32.mrb[71].mxu1 }
 0xe41   :  { %v2963_v44 = vmul.f32 -1.442695, %v2507_v34  ;;  %v2964_v37 = vmul.f32 -1.442695, %v2509_v4 }
 0xe42   :  { %3333 = vpow2.f32 %v2962_v41 }
 0xe43   :  { %3335 = vpow2.f32 %v2963_v44 }
 0xe44   :  { %3337 = vpow2.f32 %v2964_v37 }
 0xe45   :  { %3339 = vtanh.f32 %v2508_v23 }
 0xe4c   :  { %v3334_v40 = vpop.eup %3333 }
 0xe4d   :  { %v3336_v43 = vpop.eup %3335  ;;  %v2513_v7 = vadd.f32 1.0, %v3334_v40 }
 0xe4e   :  { %v2519_v36 = vadd.f32 1.0, %v3336_v43  ;;  %v3338_v12 = vpop.eup %3337  ;;  %v5285_v43 = vld [vmem:[#allocation32_spill] sm:$0xff] }
 0xe4f   :  { %3341 = vrcp.f32 %v2513_v7  ;;  %v3340_v25 = vpop.eup %3339  ;;  %v2526_v17 = vadd.f32 1.0, %v3338_v12  ;;  %v1548_v7 = vadd.f32 %v5285_v43, %v4670_v38 }
 0xe50   :  { %3343 = vrcp.f32 %v2519_v36  ;;  %v5286_v36 = vld [vmem:[#allocation33_spill] sm:$0xff] }
 0xe51   :  { %3345 = vrcp.f32 %v2526_v17  ;;  %v1621_v12 = vadd.f32 %v5286_v36, %v4672_v28 }
 0xe59   :  { %v3342_v0 = vpop.eup %3341 }
 0xe5a   :  { %v3344_v14 = vpop.eup %3343  ;;  %v2530_v15 = vmul.f32 %v3342_v0, %v3340_v25  ;;  %v5287_v25 = vld [vmem:[#allocation34_spill] sm:$0xff] }
 0xe5b   :  { %v2529_v18 = vmul.f32 %v3344_v14, %v4930_v6  ;;  %v3346_v22 = vpop.eup %3345  ;;  %v1550_v0 = vadd.f32 %v5287_v25, %v4678_v13  ;;  %v5288_v14 = vld [vmem:[#allocation35_spill] sm:$0xff] }
 0xe5d   :  { %v2531_v19 = vadd.f32 %v2530_v15, %v2529_v18  ;;  %v1623_v15 = vadd.f32 %v5288_v14, %v4680_v56 }
 0xe5f   :  { %3347 = vtanh.f32 %v2531_v19  ;;  %v5130_v21 = vsel %vm997_vm14, %v2531_v19, %v4930_v6  ;;  %v5281_v6 = vld [vmem:[#allocation29_spill] sm:$0xff] }
 0xe69   :  { %v3348_v23 = vpop.eup %3347 }
 0xe6a   :  { %v2533_v61 = vmul.f32 %v3348_v23, %v3346_v22 }
 0xe6c   :  { %v5135_v3 = vsel %vm997_vm14, %v2533_v61, %v4935_v30  ;;  %v1617_v30 = vadd.f32 %v5281_v6, %v4672_v28 }
 0xe6d   :  { %v2543_v34 = vpack.c.bf16 %v5135_v3, %v5135_v3 }
 0xe6f   :  { %2577 = vmatmul.mubr.bf16.vlgmr.msra.gmra.mrb[72].mxu0 %v2543_v34  ;;  %2618 = vmatmul.mubr.bf16.vlgmr.msra.gmra.mrb[72].mxu1 %v2543_v34 }
 0xe70   :  { %2665 = vmatpush1.bf16.msra.mxu0 %v4872_v42  ;;  %2706 = vmatpush1.bf16.msra.mxu1 %v4943_v45  ;;  %v5282_v45 = vld [vmem:[#allocation30_spill] sm:$0xff] }
 0xe71   :  { %2666 = vmatprep.subr.bf16.mxu0 %v4949_v29  ;;  %2707 = vmatprep.subr.bf16.mxu1 %v4955_v46  ;;  %v1546_v29 = vadd.f32 %v5282_v45, %v4678_v13  ;;  %v5283_v46 = vld [vmem:[#allocation31_spill] sm:$0xff] }
 0xe72   :  { %2696 = vmatprep.mubr.bf16.mxu0 %v5249_v33  ;;  %2737 = vmatprep.mubr.bf16.mxu1 %v5249_v33  ;;  %v5280_v33 = vld [vmem:[#allocation28_spill] sm:$0xff] }
 0xe73   :  { %v1544_v42 = vadd.f32 %v5280_v33, %v4670_v38 }
 0xe74   :  { %2667 = vmatpush1.bf16.msra.mxu0 %v4963_v27  ;;  %2708 = vmatpush1.bf16.msra.mxu1 %v4969_v31  ;;  %v1619_v27 = vadd.f32 %v5283_v46, %v4680_v56 }
 0xe75   :  { %2668 = vmatprep.subr.bf16.mxu0 %v4975_v35  ;;  %2709 = vmatprep.subr.bf16.mxu1 %v4981_v53 }
 0xe78   :  { %2669 = vmatpush1.bf16.msra.mxu0 %v4987_v26  ;;  %2710 = vmatpush1.bf16.msra.mxu1 %v4993_v32 }
 0xe79   :  { %2670 = vmatprep.subr.bf16.mxu0 %v4999_v57  ;;  %2711 = vmatprep.subr.bf16.mxu1 %v5005_v63 }
 0xe7c   :  { %2671 = vmatpush1.bf16.msra.mxu0 %v5011_v52  ;;  %2712 = vmatpush1.bf16.msra.mxu1 %v5017_v24 }
 0xe7d   :  { %2672 = vmatprep.subr.bf16.mxu0 %v5023_v58  ;;  %2713 = vmatprep.subr.bf16.mxu1 %v5029_v47 }
 0xe80   :  { %2673 = vmatpush1.bf16.msra.mxu0 %v5035_v48  ;;  %2714 = vmatpush1.bf16.msra.mxu1 %v5041_v50 }
 0xe81   :  { %2674 = vmatprep.subr.bf16.mxu0 %v5047_v51  ;;  %2715 = vmatprep.subr.bf16.mxu1 %v5053_v54 }
 0xe84   :  { %2675 = vmatpush1.bf16.msra.mxu0 %v5059_v59  ;;  %2716 = vmatpush1.bf16.msra.mxu1 %v5065_v62 }
 0xe85   :  { %2676 = vmatprep.subr.bf16.mxu0 %v5071_v2  ;;  %2717 = vmatprep.subr.bf16.mxu1 %v5077_v16 }
 0xe88   :  { %2677 = vmatpush1.bf16.msra.mxu0 %v5083_v5  ;;  %2718 = vmatpush1.bf16.msra.mxu1 %v5089_v49 }
 0xe89   :  { %2678 = vmatprep.subr.bf16.mxu0 %v5095_v8  ;;  %2719 = vmatprep.subr.bf16.mxu1 %v5101_v9 }
 0xe8c   :  { %2679 = vmatpush1.bf16.msra.mxu0 %v5107_v10  ;;  %2720 = vmatpush1.bf16.msra.mxu1 %v5113_v11 }
 0xf42   :  { %v2578_v31 = vpop.f32.mrb[72].mxu0  ;;  %v2619_v35 = vpop.f32.mrb[72].mxu1 }
 0xf43   :  { %v2626_v53 = vadd.f32 %v2578_v31, %v1544_v42  ;;  %v2628_v26 = vadd.f32 %v2619_v35, %v1617_v30  ;;  %v2580_v32 = vpop.f32.mrb[73].mxu0  ;;  %v2621_v57 = vpop.f32.mrb[73].mxu1 }
 0xf44   :  { %v2627_v63 = vadd.f32 %v2580_v32, %v1546_v29  ;;  %v2629_v52 = vadd.f32 %v2621_v57, %v1619_v27  ;;  %v2582_v24 = vpop.f32.mrb[74].mxu0  ;;  %v2623_v58 = vpop.f32.mrb[74].mxu1 }
 0xf45   :  { %v2965_v47 = vmul.f32 -1.442695, %v2626_v53  ;;  %v2583_v48 = vpop.f32.mrb[75].mxu0  ;;  %v2624_v50 = vpop.f32.mrb[75].mxu1 }
 0xf46   :  { %v2966_v51 = vmul.f32 -1.442695, %v2627_v63  ;;  %v2967_v54 = vmul.f32 -1.442695, %v2629_v52 }
 0xf47   :  { %3349 = vpow2.f32 %v2965_v47 }
 0xf48   :  { %3351 = vpow2.f32 %v2966_v51 }
 0xf49   :  { %3353 = vpow2.f32 %v2967_v54 }
 0xf4a   :  { %3355 = vtanh.f32 %v2628_v26 }
 0xf51   :  { %v3350_v59 = vpop.eup %3349 }
 0xf52   :  { %v3352_v62 = vpop.eup %3351  ;;  %v2633_v2 = vadd.f32 1.0, %v3350_v59 }
 0xf53   :  { %v2639_v16 = vadd.f32 1.0, %v3352_v62  ;;  %v3354_v5 = vpop.eup %3353 }
 0xf54   :  { %3357 = vrcp.f32 %v2633_v2  ;;  %v3356_v49 = vpop.eup %3355  ;;  %v2646_v11 = vadd.f32 1.0, %v3354_v5 }
 0xf55   :  { %3359 = vrcp.f32 %v2639_v16 }
 0xf56   :  { %3361 = vrcp.f32 %v2646_v11 }
 0xf5e   :  { %v3358_v8 = vpop.eup %3357 }
 0xf5f   :  { %v3360_v9 = vpop.eup %3359  ;;  %v2650_v10 = vmul.f32 %v3358_v8, %v3356_v49 }
 0xf60   :  { %v2649_v4 = vmul.f32 %v3360_v9, %v5130_v21  ;;  %v3362_v1 = vpop.eup %3361 }
 0xf62   :  { %v2651_v60 = vadd.f32 %v2650_v10, %v2649_v4 }
 0xf64   :  { %3363 = vtanh.f32 %v2651_v60  ;;  %v2655_v41 = vsel %vm1123_vm15, %v2651_v60, %v5130_v21 }
 0xf6e   :  { %v3364_v55 = vpop.eup %3363 }
 0xf6f   :  { %v2653_v44 = vmul.f32 %v3364_v55, %v3362_v1 }
 0xf71   :  { %v2654_v37 = vsel %vm1123_vm15, %v2653_v44, %v5135_v3 }
 0xf72   :  { %v2663_v40 = vpack.c.bf16 %v2654_v37, %v2654_v37 }
 0xf74   :  { %2697 = vmatmul.mubr.bf16.vlgmr.msra.gmra.mrb[76].mxu0 %v2663_v40  ;;  %2738 = vmatmul.mubr.bf16.vlgmr.msra.gmra.mrb[76].mxu1 %v2663_v40 }
0x1047   :  { %v2698_v17 = vpop.f32.mrb[76].mxu0  ;;  %v2739_v18 = vpop.f32.mrb[76].mxu1 }
0x1048   :  { %v2746_v19 = vadd.f32 %v2698_v17, %v1548_v7  ;;  %v2748_v20 = vadd.f32 %v2739_v18, %v1621_v12  ;;  %v2700_v21 = vpop.f32.mrb[77].mxu0  ;;  %v2741_v22 = vpop.f32.mrb[77].mxu1 }
0x1049   :  { %v2747_v23 = vadd.f32 %v2700_v21, %v1550_v0  ;;  %v2749_v61 = vadd.f32 %v2741_v22, %v1623_v15  ;;  %v2702_v3 = vpop.f32.mrb[78].mxu0  ;;  %v2743_v34 = vpop.f32.mrb[78].mxu1 }
0x104a   :  { %v2968_v38 = vmul.f32 -1.442695, %v2746_v19  ;;  %v2703_v33 = vpop.f32.mrb[79].mxu0  ;;  %v2744_v42 = vpop.f32.mrb[79].mxu1 }
0x104b   :  { %v2969_v28 = vmul.f32 -1.442695, %v2747_v23  ;;  %v2970_v13 = vmul.f32 -1.442695, %v2749_v61 }
0x104c   :  { %3365 = vpow2.f32 %v2968_v38 }
0x104d   :  { %3367 = vpow2.f32 %v2969_v28 }
0x104e   :  { %3369 = vpow2.f32 %v2970_v13 }
0x104f   :  { %3371 = vtanh.f32 %v2748_v20 }
0x1056   :  { %v3366_v6 = vpop.eup %3365 }
0x1057   :  { %v3368_v30 = vpop.eup %3367  ;;  %v2753_v56 = vadd.f32 1.0, %v3366_v6 }
0x1058   :  { %v2759_v45 = vadd.f32 1.0, %v3368_v30  ;;  %v3370_v29 = vpop.eup %3369 }
0x1059   :  { %3373 = vrcp.f32 %v2753_v56  ;;  %v3372_v46 = vpop.eup %3371  ;;  %v2766_v53 = vadd.f32 1.0, %v3370_v29 }
0x105a   :  { %3375 = vrcp.f32 %v2759_v45 }
0x105b   :  { %3377 = vrcp.f32 %v2766_v53 }
0x1063   :  { %v3374_v27 = vpop.eup %3373 }
0x1064   :  { %v3376_v31 = vpop.eup %3375  ;;  %v2770_v35 = vmul.f32 %v3374_v27, %v3372_v46 }
0x1065   :  { %v2769_v26 = vmul.f32 %v3376_v31, %v2655_v41  ;;  %v3378_v57 = vpop.eup %3377 }
0x1067   :  { %v2771_v32 = vadd.f32 %v2770_v35, %v2769_v26 }
0x1069   :  { %3379 = vtanh.f32 %v2771_v32 }
0x1073   :  { %v3380_v63 = vpop.eup %3379 }
0x1074   :  { %v2773_v52 = vmul.f32 %v3380_v63, %v3378_v57 }
0x1076   :  { %v2774_v58 = vsel %vm1249_vm2, %v2773_v52, %v2654_v37 }
0x1077   :  { %2775 = vst [vmem:[%s5205_s6] sm:$0xff] %v2774_v58 }

</bundles_post_ra>
